<compile_context>
chip_gen: v5e
topology: v5e:2x2
jax: 0.10.0
libtpu: 0.0.40
codegen_flags: <defaults>
</compile_context>

<pallas_src>
import functools
import math

import jax
import jax.numpy as jnp
from jax.experimental import pallas as pl
from jax.experimental.pallas import tpu as pltpu

LN_EPS = 1e-5                      # PyTorch nn.LayerNorm default
_VMEM_LIMIT = 32 * 1024 * 1024     # safe on v5e/v6e/v7x; raises v5e's 16MiB default


# ----------------------------- in-kernel helpers -----------------------------

def _layernorm_f32(x, g, b):
    mu = jnp.mean(x, axis=-1, keepdims=True)
    var = jnp.mean(jnp.square(x - mu), axis=-1, keepdims=True)
    return (x - mu) * jax.lax.rsqrt(var + LN_EPS) * g + b


def _gelu_tanh(x):
    # tanh-approx GELU: a single EUP tanh instead of the erf polynomial.
    # |gelu_tanh - gelu_erf| < 1e-3, inside the bf16 matmul noise floor.
    # TODO(synk): PyTorch nn.GELU() default is the exact erf form.
    c = math.sqrt(2.0 / math.pi)
    return 0.5 * x * (1.0 + jnp.tanh(c * (x + 0.044715 * (x * x * x))))


def _mlp_rows_f32(x5, g, b, w1, b1, w2, b2):
    """rows -> x5 + fc2(gelu(fc1(LN(x5)))); f32 rows, bf16 MXU inputs, f32 acc."""
    y = _layernorm_f32(x5, g, b)
    h = jnp.dot(y.astype(jnp.bfloat16), w1, preferred_element_type=jnp.float32) + b1
    h = _gelu_tanh(h)
    m = jnp.dot(h.astype(jnp.bfloat16), w2, preferred_element_type=jnp.float32) + b2
    return x5 + m


# -------------- kernel 1: LayerNorm + MHSA + proj (+ fc + residual) ----------

def _ln_mhsa_kernel(*refs, num_heads, tq, fuse_fc):
    if fuse_fc:
        (x_ref, g_ref, b_ref, wqkv_ref, wproj_ref, bproj_ref,
         wfc_ref, bfc_ref, o_ref, k_scr, v_scr) = refs
    else:
        (x_ref, g_ref, b_ref, wqkv_ref, wproj_ref, bproj_ref,
         o_ref, k_scr, v_scr) = refs

    nh = num_heads
    L = x_ref.shape[1]
    C = x_ref.shape[2]
    hd = C // nh
    qt = pl.program_id(1)
    g = g_ref[...]
    beta = b_ref[...]

    # K/V for the whole sequence: computed once per batch element (qt == 0) via
    # a single full-width (L,C)@(C,2C) matmul, kept resident in VMEM scratch
    # across the query-tile axis (the x block is also resident across qt).
    @pl.when(qt == 0)
    def _():
        y = _layernorm_f32(x_ref[0].astype(jnp.float32), g, beta)        # (L, C)
        kv = jnp.dot(y.astype(jnp.bfloat16), wqkv_ref[:, C:],
                     preferred_element_type=jnp.float32)                 # (L, 2C)
        k_scr[...] = jnp.stack(
            [kv[:, h * hd:(h + 1) * hd] for h in range(nh)]).astype(jnp.bfloat16)
        v_scr[...] = jnp.stack(
            [kv[:, C + h * hd:C + (h + 1) * hd] for h in range(nh)]).astype(jnp.bfloat16)

    # --- query tile ---
    row0 = pl.multiple_of(qt * tq, tq)
    xq = x_ref[0, pl.ds(row0, tq), :].astype(jnp.float32)                # (tq, C)
    yq = _layernorm_f32(xq, g, beta)
    # Single full-width q projection; the softmax scale is pre-folded into the
    # q columns of the packed weight (qkv_bias=False so this is exact).
    q = jnp.dot(yq.astype(jnp.bfloat16), wqkv_ref[:, :C],
                preferred_element_type=jnp.float32)                      # (tq, C)
    qh = jnp.stack([q[:, h * hd:(h + 1) * hd] for h in range(nh)]
                   ).astype(jnp.bfloat16)                                # (nh, tq, hd)

    # Batched per-head attention (head_dim=32 keeps these MXU-narrow; see
    # review item 9 — unavoidable structurally).  bf16 inputs, f32 accumulate.
    s = jnp.einsum("hqd,hkd->hqk", qh, k_scr[...],
                   preferred_element_type=jnp.float32)                   # (nh, tq, L)
    s = s - jnp.max(s, axis=-1, keepdims=True)
    p = jnp.exp(s)
    p = p * pl.reciprocal(jnp.sum(p, axis=-1, keepdims=True), approx=True)
    o3 = jnp.einsum("hqk,hkd->hqd", p.astype(jnp.bfloat16), v_scr[...],
                    preferred_element_type=jnp.float32)                  # (nh, tq, hd)

    # Heads back to lane-concatenated (tq, C), then ONE full-K output
    # projection (no masked scratch stores, no VMEM round trip).
    o_cat = jnp.concatenate([o3[h] for h in range(nh)], axis=-1)         # (tq, C)
    attn = (jnp.dot(o_cat.astype(jnp.bfloat16), wproj_ref[...],
                    preferred_element_type=jnp.float32) + bproj_ref[...])

    if fuse_fc:
        # Fused epilogue: out = x + temporal_fc(attn).  Saves one full HBM
        # write + read of the attention result and a re-read of the residual.
        out = xq + (jnp.dot(attn.astype(jnp.bfloat16), wfc_ref[...],
                            preferred_element_type=jnp.float32) + bfc_ref[...])
    else:
        out = attn
    o_ref[0] = out.astype(o_ref.dtype)


def ln_mhsa(x, g, b, wqkv, wproj, bproj, num_heads, fc_w=None, fc_b=None):
    """out = proj(MHSA(LN(x)))        (fc_w is None)
       out = x + fc(proj(MHSA(LN(x)))) (fc_w given, temporal branch).
    `wqkv` is (C, 3C) bf16 with the softmax scale folded into the q columns."""
    B, L, C = x.shape
    hd = C // num_heads
    fuse_fc = fc_w is not None

    # Query-tile axis: gives pipeline depth (and feeds both v7x TensorCores)
    # even at small B.  K/V are computed once per batch element, so splitting
    # queries adds no recompute.
    n_qt = 1
    for cand in (8, 4, 2):
        tq_c = L // cand
        if L % cand == 0 and tq_c % 8 == 0 and tq_c >= 32 and B * cand <= 16:
            n_qt = cand
            break
    tq = L // n_qt

    kernel = functools.partial(_ln_mhsa_kernel, num_heads=num_heads, tq=tq,
                               fuse_fc=fuse_fc)

    # Constant-index weight blocks stay resident in VMEM across grid steps.
    # TODO(synk): for dim >= 768 on v7x add pipeline_mode=pl.Buffered(1) here to
    # single-buffer the resident weights (halves their VMEM footprint).
    def wspec(a):
        return pl.BlockSpec(a.shape, lambda bi, qi: (0,) * a.ndim)

    in_specs = [
        pl.BlockSpec((1, L, C), lambda bi, qi: (bi, 0, 0)),   # resident across qt
        wspec(g), wspec(b), wspec(wqkv), wspec(wproj), wspec(bproj),
    ]
    args = [x, g, b, wqkv, wproj, bproj]
    if fuse_fc:
        in_specs += [wspec(fc_w), wspec(fc_b)]
        args += [fc_w, fc_b]

    return pl.pallas_call(
        kernel,
        out_shape=jax.ShapeDtypeStruct((B, L, C), x.dtype),
        grid=(B, n_qt),
        in_specs=in_specs,
        out_specs=pl.BlockSpec((1, tq, C), lambda bi, qi: (bi, qi, 0)),
        scratch_shapes=[pltpu.VMEM((num_heads, L, hd), jnp.bfloat16),   # K
                        pltpu.VMEM((num_heads, L, hd), jnp.bfloat16)],  # V
        compiler_params=pltpu.CompilerParams(
            dimension_semantics=("parallel", "arbitrary"),
            vmem_limit_bytes=_VMEM_LIMIT),
    )(*args)


# ------- kernel 2: fused broadcast-add + LayerNorm + MLP + residual ----------
# x5[b,0,n,w,m] = xt2[b,n,w] + res_s[b,m,w]  (the module's xt5 + res_spatial
# broadcast-add for the H==1, c==1 family), followed by x5 + mlp(norm2(x5)).
# The big x5 tensor is formed on the fly in VMEM and written to HBM once.

def _ln_mlp_fused_kernel(xt_ref, rs_ref, g_ref, b_ref, w1_ref, b1_ref,
                         w2_ref, b2_ref, o_ref):
    xt = xt_ref[0].astype(jnp.float32)         # (TN, W, 1):  xt2[b, n0:n0+TN, :, None]
    rs = rs_ref[0].astype(jnp.float32)         # (W,  C):     res_s[b].T
    x5 = xt + rs[None, :, :]                   # (TN, W, C):  the broadcast-add
    tn, w, c = x5.shape
    out = _mlp_rows_f32(x5.reshape(tn * w, c), g_ref[...], b_ref[...],
                        w1_ref[...], b1_ref[...], w2_ref[...], b2_ref[...])
    o_ref[0] = out.reshape(tn, w, c).astype(o_ref.dtype)


def ln_mlp_fused(xt2_4d, res_sT, g, b, w1, b1, w2, b2, rows_per_step=2048):
    B, N, W, _ = xt2_4d.shape
    C = res_sT.shape[-1]
    assert res_sT.shape == (B, W, C)
    # ~2048 output rows per grid step: per-step overhead (~0.35us) is amortized
    # over ~1 MiB output blocks; VMEM/step stays ~10 MiB, comfortably inside
    # the 32 MiB limit on every generation (incl. v7x's 64 MiB physical VMEM).
    tn = max(1, min(N, rows_per_step // W))
    while N % tn:
        tn -= 1

    def wspec(a):
        return pl.BlockSpec(a.shape, lambda bi, ni: (0,) * a.ndim)

    return pl.pallas_call(
        _ln_mlp_fused_kernel,
        out_shape=jax.ShapeDtypeStruct((B, N, W, C), xt2_4d.dtype),
        grid=(B, N // tn),
        in_specs=[
            pl.BlockSpec((1, tn, W, 1), lambda bi, ni: (bi, ni, 0, 0)),
            pl.BlockSpec((1, W, C), lambda bi, ni: (bi, 0, 0)),   # resident / batch
            wspec(g), wspec(b), wspec(w1), wspec(b1), wspec(w2), wspec(b2),
        ],
        out_specs=pl.BlockSpec((1, tn, W, C), lambda bi, ni: (bi, ni, 0, 0)),
        compiler_params=pltpu.CompilerParams(
            dimension_semantics=("parallel", "parallel"),
            vmem_limit_bytes=_VMEM_LIMIT),
    )(xt2_4d, res_sT, g, b, w1, b1, w2, b2)


# --------- kernel 2b: generic fallback (pre-materialized x5 rows) ------------

def _ln_mlp_rows_kernel(x_ref, g_ref, b_ref, w1_ref, b1_ref, w2_ref, b2_ref, o_ref):
    out = _mlp_rows_f32(x_ref[...].astype(jnp.float32), g_ref[...], b_ref[...],
                        w1_ref[...], b1_ref[...], w2_ref[...], b2_ref[...])
    o_ref[...] = out.astype(o_ref.dtype)


def ln_mlp_rows(x2, g, b, w1, b1, w2, b2, tile=1024):
    R, C = x2.shape
    # Fixed large row tile + zero-padded tail: avoids degenerating to tiny
    # tiles (and thousands of 0.35us grid steps) for awkward row counts.
    tile = min(tile, ((R + 7) // 8) * 8)
    Rp = pl.cdiv(R, tile) * tile
    xp = jnp.pad(x2, ((0, Rp - R), (0, 0))) if Rp != R else x2

    def wspec(a):
        return pl.BlockSpec(a.shape, lambda i: (0,) * a.ndim)

    y = pl.pallas_call(
        _ln_mlp_rows_kernel,
        out_shape=jax.ShapeDtypeStruct((Rp, C), x2.dtype),
        grid=(Rp // tile,),
        in_specs=[pl.BlockSpec((tile, C), lambda i: (i, 0)),
                  wspec(g), wspec(b), wspec(w1), wspec(b1), wspec(w2), wspec(b2)],
        out_specs=pl.BlockSpec((tile, C), lambda i: (i, 0)),
        compiler_params=pltpu.CompilerParams(
            dimension_semantics=("parallel",),
            vmem_limit_bytes=_VMEM_LIMIT),
    )(xp, g, b, w1, b1, w2, b2)
    return y[:R] if Rp != R else y


# ------------------------------ weight packing --------------------------------

def _pack_qkv(wqkv, num_heads):
    """(C, 3C) f32 -> (C, 3C) bf16 with the softmax scale folded into the
    q columns (exact because qkv_bias=False)."""
    C = wqkv.shape[0]
    hd = C // num_heads
    scale = hd ** (-0.5)
    packed = jnp.concatenate([wqkv[:, :C] * scale, wqkv[:, C:]], axis=1)
    return packed.astype(jnp.bfloat16)


# ------------------------------- Block.forward --------------------------------

def block_forward(x, B, N, H, W, params, num_heads):
    """divided_space_time Block.forward (eval mode), heavy ops in Pallas."""
    dim = params["dim"]
    assert N == dim, "divided_space_time path requires N == dim (see header note)"
    bf16 = jnp.bfloat16

    # MXU inputs in bf16 (cast once here, f32 accumulation in-kernel);
    # LayerNorm params and biases stay f32.
    t_wqkv = _pack_qkv(params["t_wqkv"], num_heads)
    s_wqkv = _pack_qkv(params["s_wqkv"], num_heads)
    t_wproj = params["t_wproj"].astype(bf16)
    s_wproj = params["s_wproj"].astype(bf16)
    t_fc_w = params["t_fc_w"].astype(bf16)
    mlp_w1 = params["mlp_w1"].astype(bf16)
    mlp_w2 = params["mlp_w2"].astype(bf16)

    # xt = x.permute(0,2,1,3,4).reshape(B, N, -1).  For the supported config
    # (C_img == Himg == 1) this only moves singleton axes -> XLA emits no copy.
    xt = jnp.transpose(x, (0, 2, 1, 3, 4)).reshape(B, N, dim)

    # Temporal branch, fully fused: xt2 = xt + temporal_fc(attn_t(LN_t(xt))).
    xt2 = ln_mhsa(xt, params["temporal_norm1_g"], params["temporal_norm1_b"],
                  t_wqkv, t_wproj, params["t_bproj"], num_heads,
                  fc_w=t_fc_w, fc_b=params["t_fc_b"])

    c = dim // (H * W)
    # xs = xt.view(B,N,H,W,c).permute(0,2,1,3,4).permute(0,2,3,4,1).reshape(B,-1,N)
    # (singleton-axis moves only for the supported config -> no copy).
    xt5 = jnp.transpose(xt2.reshape(B, N, H, W, c), (0, 2, 1, 3, 4))
    xs = jnp.transpose(xt5, (0, 2, 3, 4, 1)).reshape(B, H * W * c, N)

    # Spatial branch: res_s = proj(MHSA(LN(xs))).
    res_s = ln_mhsa(xs, params["norm1_g"], params["norm1_b"],
                    s_wqkv, s_wproj, params["s_bproj"], num_heads)

    if H == 1 and c == 1:
        # x5[b,0,n,w,m] = xt2[b,n,w] + res_s[b,m,w]:  the broadcast-add, norm2,
        # MLP and final residual all happen inside ln_mlp_fused — the big
        # (B,1,N,W,N) tensor is written once and never re-read from HBM.
        res_sT = jnp.swapaxes(res_s, 1, 2)        # (B, N, dim): tiny vs x5
        xt2_4d = xt2[..., None]                   # (B, N, W, 1): free reshape
        out4 = ln_mlp_fused(xt2_4d, res_sT,
                            params["norm2_g"], params["norm2_b"],
                            mlp_w1, params["mlp_b1"], mlp_w2, params["mlp_b2"])
        return out4.reshape(B, 1, N, W, dim)

    # Generic fallback, matching the module's broadcasting semantics exactly:
    # materialize x5, then row-tiled LN + MLP + residual.
    res_s5 = jnp.transpose(res_s.reshape(B, N, H, W, c), (0, 4, 2, 3, 1))
    x5 = xt5 + res_s5
    y = ln_mlp_rows(x5.reshape(-1, dim), params["norm2_g"], params["norm2_b"],
                    mlp_w1, params["mlp_b1"], mlp_w2, params["mlp_b2"])
    return y.reshape(x5.shape)


# ------------------------------ pure-JAX reference -----------------------------

def _ref_ln(x, g, b):
    mu = x.mean(-1, keepdims=True)
    var = ((x - mu) ** 2).mean(-1, keepdims=True)
    return (x - mu) / jnp.sqrt(var + LN_EPS) * g[0] + b[0]


def _ref_attention(x, wqkv, wproj, bproj, num_heads):
    B, L, C = x.shape
    hd = C // num_heads
    scale = hd ** (-0.5)
    qkv = jnp.einsum("blc,cd->bld", x, wqkv)
    qkv = qkv.reshape(B, L, 3, num_heads, hd).transpose(2, 0, 3, 1, 4)
    q, k, v = qkv[0], qkv[1], qkv[2]
    attn = jnp.einsum("bhld,bhmd->bhlm", q, k) * scale
    attn = jax.nn.softmax(attn, axis=-1)
    o = jnp.einsum("bhlm,bhmd->bhld", attn, v).transpose(0, 2, 1, 3).reshape(B, L, C)
    return jnp.einsum("blc,cd->bld", o, wproj) + bproj[0]


def ref_block(x, B, N, H, W, params, num_heads):
    dim = params["dim"]
    xt = jnp.transpose(x, (0, 2, 1, 3, 4)).reshape(B, N, -1)
    res_t = _ref_attention(
        _ref_ln(xt, params["temporal_norm1_g"], params["temporal_norm1_b"]),
        params["t_wqkv"], params["t_wproj"], params["t_bproj"], num_heads)
    res_t = jnp.einsum("blc,cd->bld", res_t, params["t_fc_w"]) + params["t_fc_b"][0]
    xt = xt + res_t
    c = dim // (H * W)
    xt5 = jnp.transpose(xt.reshape(B, N, H, W, c), (0, 2, 1, 3, 4))
    xs = jnp.transpose(xt5, (0, 2, 3, 4, 1)).reshape(B, -1, N)
    res_s = _ref_attention(_ref_ln(xs, params["norm1_g"], params["norm1_b"]),
                           params["s_wqkv"], params["s_wproj"], params["s_bproj"],
                           num_heads)
    res_s5 = jnp.transpose(res_s.reshape(B, N, H, W, -1), (0, 4, 2, 3, 1))
    x5 = xt5 + res_s5
    y = _ref_ln(x5, params["norm2_g"], params["norm2_b"])
    h = jnp.einsum("...c,cd->...d", y, params["mlp_w1"]) + params["mlp_b1"][0]
    h = 0.5 * h * (1.0 + jax.scipy.special.erf(h / jnp.sqrt(2.0)))
    m = jnp.einsum("...d,dc->...c", h, params["mlp_w2"]) + params["mlp_b2"][0]
    return x5 + m


# ------------------------------------ main ------------------------------------

if __name__ == "__main__":
    # Small shapes consistent with the module's divided_space_time path
    # (requires dim == N and dim == C_img*Himg*Wimg), chosen so every kernel
    # output is lane-dense (feature axis = 128).
    B = 2
    dim = 128                # embedding dim (lane-dense)
    N = dim                  # temporal tokens (N == dim, required by the module)
    H, W = 1, 128            # image-token grid; c = dim // (H*W) = 1
    num_heads = 4            # head_dim = 32
    mlp_hidden = int(dim * 4.0)

    key = jax.random.PRNGKey(0)
    keys = jax.random.split(key, 16)

    def rnd(k, shape, s=0.05):
        return jax.random.normal(k, shape, dtype=jnp.float32) * s

    # Deterministic synthetic parameters.  Linear weights are stored already
    # transposed as (in_features, out_features) so kernels compute x @ W + b.
    params = {
        "dim": dim,
        "temporal_norm1_g": jnp.ones((1, dim), jnp.float32),
        "temporal_norm1_b": jnp.zeros((1, dim), jnp.float32),
        "t_wqkv": rnd(keys[0], (dim, 3 * dim)),        # qkv_bias=False
        "t_wproj": rnd(keys[1], (dim, dim)),
        "t_bproj": rnd(keys[2], (1, dim)),
        "t_fc_w": rnd(keys[3], (dim, dim)),
        "t_fc_b": rnd(keys[4], (1, dim)),
        "norm1_g": jnp.ones((1, dim), jnp.float32),
        "norm1_b": jnp.zeros((1, dim), jnp.float32),
        "s_wqkv": rnd(keys[5], (dim, 3 * dim)),
        "s_wproj": rnd(keys[6], (dim, dim)),
        "s_bproj": rnd(keys[7], (1, dim)),
        "norm2_g": jnp.ones((1, dim), jnp.float32),
        "norm2_b": jnp.zeros((1, dim), jnp.float32),
        "mlp_w1": rnd(keys[8], (dim, mlp_hidden)),
        "mlp_b1": rnd(keys[9], (1, mlp_hidden)),
        "mlp_w2": rnd(keys[10], (mlp_hidden, dim)),
        "mlp_b2": rnd(keys[11], (1, dim)),
    }

    # layout: x = (B, C_img, T, Himg, Wimg)  (channel-first 5-D, "NCTHW")
    x = jax.random.normal(keys[12], (B, 1, N, H, W), dtype=jnp.float32)

    out = jax.block_until_ready(block_forward(x, B, N, H, W, params, num_heads))

    ref = ref_block(x, B, N, H, W, params, num_heads)
    assert out.shape == ref.shape, (out.shape, ref.shape)
    # Noise floor: bf16 MXU inputs (f32 accum), tanh-GELU vs exact erf, and the
    # approximate softmax reciprocal together give ~1e-2 worst-case deviation on
    # O(1) outputs; a structural bug would be O(1).
    err = float(jnp.max(jnp.abs(out - ref) / (1.0 + jnp.abs(ref))))
    assert err < 4e-2, f"max normalized error too large: {err}"

    print("KERNEL_OK")
</pallas_src>

<mosaic_0001>
module attributes {stable_mosaic.version = 11 : i64} {
  func.func @_ln_mhsa_kernel(%arg0: i32, %arg1: i32, %arg2: memref<1x128x128xf32, #tpu.memory_space<vmem>>, %arg3: memref<1x128xf32, #tpu.memory_space<vmem>>, %arg4: memref<1x128xf32, #tpu.memory_space<vmem>>, %arg5: memref<128x384xbf16, #tpu.memory_space<vmem>>, %arg6: memref<128x128xbf16, #tpu.memory_space<vmem>>, %arg7: memref<1x128xf32, #tpu.memory_space<vmem>>, %arg8: memref<128x128xbf16, #tpu.memory_space<vmem>>, %arg9: memref<1x128xf32, #tpu.memory_space<vmem>>, %arg10: memref<1x32x128xf32, #tpu.memory_space<vmem>>, %arg11: memref<4x128x32xbf16, #tpu.memory_space<vmem>>, %arg12: memref<4x128x32xbf16, #tpu.memory_space<vmem>>) attributes {dimension_semantics = [#tpu.dimension_semantics<parallel>, #tpu.dimension_semantics<arbitrary>], iteration_bounds = array<i64: 2, 4>, scalar_prefetch = 0 : i64, scratch_operands = 2 : i64, tpu.core_type = #tpu.core_type<tc>, window_params = [{transform_indices = @transform_0, window_bounds = array<i64: 1, 128, 128>}, {pipeline_mode = #tpu.pipeline_mode<synchronous>, transform_indices = @transform_1, window_bounds = array<i64: 1, 128>}, {pipeline_mode = #tpu.pipeline_mode<synchronous>, transform_indices = @transform_2, window_bounds = array<i64: 1, 128>}, {pipeline_mode = #tpu.pipeline_mode<synchronous>, transform_indices = @transform_3, window_bounds = array<i64: 128, 384>}, {pipeline_mode = #tpu.pipeline_mode<synchronous>, transform_indices = @transform_4, window_bounds = array<i64: 128, 128>}, {pipeline_mode = #tpu.pipeline_mode<synchronous>, transform_indices = @transform_5, window_bounds = array<i64: 1, 128>}, {pipeline_mode = #tpu.pipeline_mode<synchronous>, transform_indices = @transform_6, window_bounds = array<i64: 128, 128>}, {pipeline_mode = #tpu.pipeline_mode<synchronous>, transform_indices = @transform_7, window_bounds = array<i64: 1, 128>}, {transform_indices = @transform_8, window_bounds = array<i64: 1, 32, 128>}]} {
    %c0 = arith.constant 0 : index
    %c0_0 = arith.constant 0 : index
    %0 = vector.load %arg3[%c0, %c0_0] : memref<1x128xf32, #tpu.memory_space<vmem>>, vector<1x128xf32>
    %c0_1 = arith.constant 0 : index
    %c0_2 = arith.constant 0 : index
    %1 = vector.load %arg4[%c0_1, %c0_2] : memref<1x128xf32, #tpu.memory_space<vmem>>, vector<1x128xf32>
    %c0_i32 = arith.constant 0 : i32
    %2 = arith.cmpi eq, %arg1, %c0_i32 : i32
    %3 = arith.extui %2 : i1 to i32
    %c0_i32_3 = arith.constant 0 : i32
    %4 = arith.cmpi ne, %3, %c0_i32_3 : i32
    scf.if %4 {
      %c0_36 = arith.constant 0 : index
      %c0_37 = arith.constant 0 : index
      %c0_38 = arith.constant 0 : index
      %85 = vector.load %arg2[%c0_36, %c0_37, %c0_38] : memref<1x128x128xf32, #tpu.memory_space<vmem>>, vector<1x128x128xf32>
      %86 = vector.shape_cast %85 : vector<1x128x128xf32> to vector<128x128xf32>
      %cst_39 = arith.constant dense<0.000000e+00> : vector<128xf32>
      %87 = vector.multi_reduction <add>, %86, %cst_39 [1] : vector<128x128xf32> to vector<128xf32>
      %88 = vector.shape_cast %87 : vector<128xf32> to vector<128x1xf32>
      %cst_40 = arith.constant 1.280000e+02 : f32
      %89 = vector.broadcast %cst_40 : f32 to vector<128x1xf32>
      %90 = arith.divf %88, %89 : vector<128x1xf32>
      %91 = vector.broadcast %90 : vector<128x1xf32> to vector<128x128xf32>
      %92 = arith.subf %86, %91 : vector<128x128xf32>
      %93 = arith.mulf %92, %92 : vector<128x128xf32>
      %cst_41 = arith.constant dense<0.000000e+00> : vector<128xf32>
      %94 = vector.multi_reduction <add>, %93, %cst_41 [1] : vector<128x128xf32> to vector<128xf32>
      %95 = vector.shape_cast %94 : vector<128xf32> to vector<128x1xf32>
      %cst_42 = arith.constant 1.280000e+02 : f32
      %96 = vector.broadcast %cst_42 : f32 to vector<128x1xf32>
      %97 = arith.divf %95, %96 : vector<128x1xf32>
      %98 = vector.broadcast %90 : vector<128x1xf32> to vector<128x128xf32>
      %99 = arith.subf %86, %98 : vector<128x128xf32>
      %cst_43 = arith.constant 9.99999974E-6 : f32
      %100 = vector.broadcast %cst_43 : f32 to vector<128x1xf32>
      %101 = arith.addf %97, %100 : vector<128x1xf32>
      %102 = math.rsqrt %101 : vector<128x1xf32>
      %103 = vector.broadcast %102 : vector<128x1xf32> to vector<128x128xf32>
      %104 = arith.mulf %99, %103 : vector<128x128xf32>
      %105 = vector.broadcast %0 : vector<1x128xf32> to vector<128x128xf32>
      %106 = arith.mulf %104, %105 : vector<128x128xf32>
      %107 = vector.broadcast %1 : vector<1x128xf32> to vector<128x128xf32>
      %108 = arith.addf %106, %107 : vector<128x128xf32>
      %109 = arith.truncf %108 : vector<128x128xf32> to vector<128x128xbf16>
      %c0_44 = arith.constant 0 : index
      %c128 = arith.constant 128 : index
      %110 = vector.load %arg5[%c0_44, %c128] : memref<128x384xbf16, #tpu.memory_space<vmem>>, vector<128x256xbf16>
      %cst_45 = arith.constant dense<0.000000e+00> : vector<128x256xf32>
      %111 = tpu.matmul %109, %110, %cst_45 {dimension_numbers = #tpu.dot_dimension_numbers<[1], [0], [0], [1], [0, 0, 1, 1], [], []>} : vector<128x128xbf16>, vector<128x256xbf16>, vector<128x256xf32> -> vector<128x256xf32>
      %112 = vector.extract_strided_slice %111 {offsets = [0, 0], sizes = [128, 32], strides = [1, 1]} : vector<128x256xf32> to vector<128x32xf32>
      %113 = vector.extract_strided_slice %111 {offsets = [0, 32], sizes = [128, 32], strides = [1, 1]} : vector<128x256xf32> to vector<128x32xf32>
      %114 = vector.extract_strided_slice %111 {offsets = [0, 64], sizes = [128, 32], strides = [1, 1]} : vector<128x256xf32> to vector<128x32xf32>
      %115 = vector.extract_strided_slice %111 {offsets = [0, 96], sizes = [128, 32], strides = [1, 1]} : vector<128x256xf32> to vector<128x32xf32>
      %116 = vector.shape_cast %112 : vector<128x32xf32> to vector<1x128x32xf32>
      %117 = vector.shape_cast %113 : vector<128x32xf32> to vector<1x128x32xf32>
      %118 = vector.shape_cast %114 : vector<128x32xf32> to vector<1x128x32xf32>
      %119 = vector.shape_cast %115 : vector<128x32xf32> to vector<1x128x32xf32>
      %120 = tpu.concatenate %116, %117, %118, %119 in 0 : vector<1x128x32xf32>, vector<1x128x32xf32>, vector<1x128x32xf32>, vector<1x128x32xf32> -> vector<4x128x32xf32>
      %121 = arith.truncf %120 : vector<4x128x32xf32> to vector<4x128x32xbf16>
      %c0_46 = arith.constant 0 : index
      %c0_47 = arith.constant 0 : index
      %c0_48 = arith.constant 0 : index
      %122 = vector.load %arg11[%c0_46, %c0_47, %c0_48] : memref<4x128x32xbf16, #tpu.memory_space<vmem>>, vector<4x128x32xbf16>
      tpu.vector_store %arg11[%c0_46, %c0_47, %c0_48], %121 {strides = array<i32>} : memref<4x128x32xbf16, #tpu.memory_space<vmem>>, vector<4x128x32xbf16>,
      %123 = vector.extract_strided_slice %111 {offsets = [0, 128], sizes = [128, 32], strides = [1, 1]} : vector<128x256xf32> to vector<128x32xf32>
      %124 = vector.extract_strided_slice %111 {offsets = [0, 160], sizes = [128, 32], strides = [1, 1]} : vector<128x256xf32> to vector<128x32xf32>
      %125 = vector.extract_strided_slice %111 {offsets = [0, 192], sizes = [128, 32], strides = [1, 1]} : vector<128x256xf32> to vector<128x32xf32>
      %126 = vector.extract_strided_slice %111 {offsets = [0, 224], sizes = [128, 32], strides = [1, 1]} : vector<128x256xf32> to vector<128x32xf32>
      %127 = vector.shape_cast %123 : vector<128x32xf32> to vector<1x128x32xf32>
      %128 = vector.shape_cast %124 : vector<128x32xf32> to vector<1x128x32xf32>
      %129 = vector.shape_cast %125 : vector<128x32xf32> to vector<1x128x32xf32>
      %130 = vector.shape_cast %126 : vector<128x32xf32> to vector<1x128x32xf32>
      %131 = tpu.concatenate %127, %128, %129, %130 in 0 : vector<1x128x32xf32>, vector<1x128x32xf32>, vector<1x128x32xf32>, vector<1x128x32xf32> -> vector<4x128x32xf32>
      %132 = arith.truncf %131 : vector<4x128x32xf32> to vector<4x128x32xbf16>
      %c0_49 = arith.constant 0 : index
      %c0_50 = arith.constant 0 : index
      %c0_51 = arith.constant 0 : index
      %133 = vector.load %arg12[%c0_49, %c0_50, %c0_51] : memref<4x128x32xbf16, #tpu.memory_space<vmem>>, vector<4x128x32xbf16>
      tpu.vector_store %arg12[%c0_49, %c0_50, %c0_51], %132 {strides = array<i32>} : memref<4x128x32xbf16, #tpu.memory_space<vmem>>, vector<4x128x32xbf16>,
    } else {
    }
    %c32_i32 = arith.constant 32 : i32
    %5 = arith.muli %arg1, %c32_i32 : i32
    %6 = tpu.assume_multiple %5, 32 : i32
    %c0_4 = arith.constant 0 : index
    %7 = arith.index_cast %6 : i32 to index
    %c0_5 = arith.constant 0 : index
    %8 = vector.load %arg2[%c0_4, %7, %c0_5] : memref<1x128x128xf32, #tpu.memory_space<vmem>>, vector<1x32x128xf32>
    %9 = vector.shape_cast %8 : vector<1x32x128xf32> to vector<32x128xf32>
    %cst = arith.constant dense<0.000000e+00> : vector<32xf32>
    %10 = vector.multi_reduction <add>, %9, %cst [1] : vector<32x128xf32> to vector<32xf32>
    %11 = vector.shape_cast %10 : vector<32xf32> to vector<32x1xf32>
    %cst_6 = arith.constant 1.280000e+02 : f32
    %12 = vector.broadcast %cst_6 : f32 to vector<32x1xf32>
    %13 = arith.divf %11, %12 : vector<32x1xf32>
    %14 = vector.broadcast %13 : vector<32x1xf32> to vector<32x128xf32>
    %15 = arith.subf %9, %14 : vector<32x128xf32>
    %16 = arith.mulf %15, %15 : vector<32x128xf32>
    %cst_7 = arith.constant dense<0.000000e+00> : vector<32xf32>
    %17 = vector.multi_reduction <add>, %16, %cst_7 [1] : vector<32x128xf32> to vector<32xf32>
    %18 = vector.shape_cast %17 : vector<32xf32> to vector<32x1xf32>
    %cst_8 = arith.constant 1.280000e+02 : f32
    %19 = vector.broadcast %cst_8 : f32 to vector<32x1xf32>
    %20 = arith.divf %18, %19 : vector<32x1xf32>
    %21 = vector.broadcast %13 : vector<32x1xf32> to vector<32x128xf32>
    %22 = arith.subf %9, %21 : vector<32x128xf32>
    %cst_9 = arith.constant 9.99999974E-6 : f32
    %23 = vector.broadcast %cst_9 : f32 to vector<32x1xf32>
    %24 = arith.addf %20, %23 : vector<32x1xf32>
    %25 = math.rsqrt %24 : vector<32x1xf32>
    %26 = vector.broadcast %25 : vector<32x1xf32> to vector<32x128xf32>
    %27 = arith.mulf %22, %26 : vector<32x128xf32>
    %28 = vector.broadcast %0 : vector<1x128xf32> to vector<32x128xf32>
    %29 = arith.mulf %27, %28 : vector<32x128xf32>
    %30 = vector.broadcast %1 : vector<1x128xf32> to vector<32x128xf32>
    %31 = arith.addf %29, %30 : vector<32x128xf32>
    %32 = arith.truncf %31 : vector<32x128xf32> to vector<32x128xbf16>
    %c0_10 = arith.constant 0 : index
    %c0_11 = arith.constant 0 : index
    %33 = vector.load %arg5[%c0_10, %c0_11] : memref<128x384xbf16, #tpu.memory_space<vmem>>, vector<128x128xbf16>
    %cst_12 = arith.constant dense<0.000000e+00> : vector<32x128xf32>
    %34 = tpu.matmul %32, %33, %cst_12 {dimension_numbers = #tpu.dot_dimension_numbers<[1], [0], [0], [1], [0, 0, 1, 1], [], []>} : vector<32x128xbf16>, vector<128x128xbf16>, vector<32x128xf32> -> vector<32x128xf32>
    %35 = vector.extract_strided_slice %34 {offsets = [0, 0], sizes = [32, 32], strides = [1, 1]} : vector<32x128xf32> to vector<32x32xf32>
    %36 = vector.extract_strided_slice %34 {offsets = [0, 32], sizes = [32, 32], strides = [1, 1]} : vector<32x128xf32> to vector<32x32xf32>
    %37 = vector.extract_strided_slice %34 {offsets = [0, 64], sizes = [32, 32], strides = [1, 1]} : vector<32x128xf32> to vector<32x32xf32>
    %38 = vector.extract_strided_slice %34 {offsets = [0, 96], sizes = [32, 32], strides = [1, 1]} : vector<32x128xf32> to vector<32x32xf32>
    %39 = vector.shape_cast %35 : vector<32x32xf32> to vector<1x32x32xf32>
    %40 = vector.shape_cast %36 : vector<32x32xf32> to vector<1x32x32xf32>
    %41 = vector.shape_cast %37 : vector<32x32xf32> to vector<1x32x32xf32>
    %42 = vector.shape_cast %38 : vector<32x32xf32> to vector<1x32x32xf32>
    %43 = tpu.concatenate %39, %40, %41, %42 in 0 : vector<1x32x32xf32>, vector<1x32x32xf32>, vector<1x32x32xf32>, vector<1x32x32xf32> -> vector<4x32x32xf32>
    %44 = arith.truncf %43 : vector<4x32x32xf32> to vector<4x32x32xbf16>
    %c0_13 = arith.constant 0 : index
    %c0_14 = arith.constant 0 : index
    %c0_15 = arith.constant 0 : index
    %45 = vector.load %arg11[%c0_13, %c0_14, %c0_15] : memref<4x128x32xbf16, #tpu.memory_space<vmem>>, vector<4x128x32xbf16>
    "tpu.trace_start"() <{level = 10 : i32, message = "hqd,hkd->hqk"}> : () -> ()
    %cst_16 = arith.constant dense<0.000000e+00> : vector<4x32x128xf32>
    %46 = tpu.matmul %44, %45, %cst_16 {dimension_numbers = #tpu.dot_dimension_numbers<[2], [2], [1], [1], [0, 0, 0, 1, 1, 1], [0], [0]>} : vector<4x32x32xbf16>, vector<4x128x32xbf16>, vector<4x32x128xf32> -> vector<4x32x128xf32>
    "tpu.trace_stop"() : () -> ()
    %cst_17 = arith.constant dense<0xFF800000> : vector<4x32xf32>
    %47 = vector.multi_reduction <maximumf>, %46, %cst_17 [2] : vector<4x32x128xf32> to vector<4x32xf32>
    %48 = vector.shape_cast %47 : vector<4x32xf32> to vector<4x32x1xf32>
    %49 = vector.broadcast %48 : vector<4x32x1xf32> to vector<4x32x128xf32>
    %50 = arith.subf %46, %49 : vector<4x32x128xf32>
    %51 = math.exp %50 : vector<4x32x128xf32>
    %cst_18 = arith.constant dense<0.000000e+00> : vector<4x32xf32>
    %52 = vector.multi_reduction <add>, %51, %cst_18 [2] : vector<4x32x128xf32> to vector<4x32xf32>
    %53 = vector.shape_cast %52 : vector<4x32xf32> to vector<4x32x1xf32>
    %54 = tpu.reciprocal %53 {approx = true} : vector<4x32x1xf32> -> vector<4x32x1xf32>
    %55 = vector.broadcast %54 : vector<4x32x1xf32> to vector<4x32x128xf32>
    %56 = arith.mulf %51, %55 : vector<4x32x128xf32>
    %57 = arith.truncf %56 : vector<4x32x128xf32> to vector<4x32x128xbf16>
    %c0_19 = arith.constant 0 : index
    %c0_20 = arith.constant 0 : index
    %c0_21 = arith.constant 0 : index
    %58 = vector.load %arg12[%c0_19, %c0_20, %c0_21] : memref<4x128x32xbf16, #tpu.memory_space<vmem>>, vector<4x128x32xbf16>
    "tpu.trace_start"() <{level = 10 : i32, message = "hqk,hkd->hqd"}> : () -> ()
    %cst_22 = arith.constant dense<0.000000e+00> : vector<4x32x32xf32>
    %59 = tpu.matmul %57, %58, %cst_22 {dimension_numbers = #tpu.dot_dimension_numbers<[2], [1], [1], [2], [0, 0, 0, 1, 1, 2], [0], [0]>} : vector<4x32x128xbf16>, vector<4x128x32xbf16>, vector<4x32x32xf32> -> vector<4x32x32xf32>
    "tpu.trace_stop"() : () -> ()
    %60 = vector.extract_strided_slice %59 {offsets = [0, 0, 0], sizes = [1, 32, 32], strides = [1, 1, 1]} : vector<4x32x32xf32> to vector<1x32x32xf32>
    %61 = vector.shape_cast %60 : vector<1x32x32xf32> to vector<32x32xf32>
    %62 = vector.extract_strided_slice %59 {offsets = [1, 0, 0], sizes = [1, 32, 32], strides = [1, 1, 1]} : vector<4x32x32xf32> to vector<1x32x32xf32>
    %63 = vector.shape_cast %62 : vector<1x32x32xf32> to vector<32x32xf32>
    %64 = vector.extract_strided_slice %59 {offsets = [2, 0, 0], sizes = [1, 32, 32], strides = [1, 1, 1]} : vector<4x32x32xf32> to vector<1x32x32xf32>
    %65 = vector.shape_cast %64 : vector<1x32x32xf32> to vector<32x32xf32>
    %66 = vector.extract_strided_slice %59 {offsets = [3, 0, 0], sizes = [1, 32, 32], strides = [1, 1, 1]} : vector<4x32x32xf32> to vector<1x32x32xf32>
    %67 = vector.shape_cast %66 : vector<1x32x32xf32> to vector<32x32xf32>
    %68 = tpu.concatenate %61, %63, %65, %67 in 1 : vector<32x32xf32>, vector<32x32xf32>, vector<32x32xf32>, vector<32x32xf32> -> vector<32x128xf32>
    %69 = arith.truncf %68 : vector<32x128xf32> to vector<32x128xbf16>
    %c0_23 = arith.constant 0 : index
    %c0_24 = arith.constant 0 : index
    %70 = vector.load %arg6[%c0_23, %c0_24] : memref<128x128xbf16, #tpu.memory_space<vmem>>, vector<128x128xbf16>
    %cst_25 = arith.constant dense<0.000000e+00> : vector<32x128xf32>
    %71 = tpu.matmul %69, %70, %cst_25 {dimension_numbers = #tpu.dot_dimension_numbers<[1], [0], [0], [1], [0, 0, 1, 1], [], []>} : vector<32x128xbf16>, vector<128x128xbf16>, vector<32x128xf32> -> vector<32x128xf32>
    %c0_26 = arith.constant 0 : index
    %c0_27 = arith.constant 0 : index
    %72 = vector.load %arg7[%c0_26, %c0_27] : memref<1x128xf32, #tpu.memory_space<vmem>>, vector<1x128xf32>
    %73 = vector.broadcast %72 : vector<1x128xf32> to vector<32x128xf32>
    %74 = arith.addf %71, %73 : vector<32x128xf32>
    %75 = arith.truncf %74 : vector<32x128xf32> to vector<32x128xbf16>
    %c0_28 = arith.constant 0 : index
    %c0_29 = arith.constant 0 : index
    %76 = vector.load %arg8[%c0_28, %c0_29] : memref<128x128xbf16, #tpu.memory_space<vmem>>, vector<128x128xbf16>
    %cst_30 = arith.constant dense<0.000000e+00> : vector<32x128xf32>
    %77 = tpu.matmul %75, %76, %cst_30 {dimension_numbers = #tpu.dot_dimension_numbers<[1], [0], [0], [1], [0, 0, 1, 1], [], []>} : vector<32x128xbf16>, vector<128x128xbf16>, vector<32x128xf32> -> vector<32x128xf32>
    %c0_31 = arith.constant 0 : index
    %c0_32 = arith.constant 0 : index
    %78 = vector.load %arg9[%c0_31, %c0_32] : memref<1x128xf32, #tpu.memory_space<vmem>>, vector<1x128xf32>
    %79 = vector.broadcast %78 : vector<1x128xf32> to vector<32x128xf32>
    %80 = arith.addf %77, %79 : vector<32x128xf32>
    %81 = arith.addf %9, %80 : vector<32x128xf32>
    %c0_33 = arith.constant 0 : index
    %c0_34 = arith.constant 0 : index
    %c0_35 = arith.constant 0 : index
    %82 = vector.load %arg10[%c0_33, %c0_34, %c0_35] : memref<1x32x128xf32, #tpu.memory_space<vmem>>, vector<1x32x128xf32>
    %83 = vector.shape_cast %82 : vector<1x32x128xf32> to vector<32x128xf32>
    %84 = vector.shape_cast %81 : vector<32x128xf32> to vector<1x32x128xf32>
    tpu.vector_store %arg10[%c0_33, %c0_34, %c0_35], %84 {strides = array<i32>} : memref<1x32x128xf32, #tpu.memory_space<vmem>>, vector<1x32x128xf32>,
    return
  }
  func.func @transform_0(%arg0: i32, %arg1: i32) -> (i32, i32, i32) {
    %c0_i32 = arith.constant 0 : i32
    %c0_i32_0 = arith.constant 0 : i32
    %c0_i32_1 = arith.constant 0 : i32
    return %arg0, %c0_i32, %c0_i32_0 : i32, i32, i32
  }
  func.func @transform_1(%arg0: i32, %arg1: i32) -> (i32, i32) {
    %c0_i32 = arith.constant 0 : i32
    %c0_i32_0 = arith.constant 0 : i32
    %c0_i32_1 = arith.constant 0 : i32
    return %c0_i32, %c0_i32_0 : i32, i32
  }
  func.func @transform_2(%arg0: i32, %arg1: i32) -> (i32, i32) {
    %c0_i32 = arith.constant 0 : i32
    %c0_i32_0 = arith.constant 0 : i32
    %c0_i32_1 = arith.constant 0 : i32
    return %c0_i32, %c0_i32_0 : i32, i32
  }
  func.func @transform_3(%arg0: i32, %arg1: i32) -> (i32, i32) {
    %c0_i32 = arith.constant 0 : i32
    %c0_i32_0 = arith.constant 0 : i32
    %c0_i32_1 = arith.constant 0 : i32
    return %c0_i32, %c0_i32_0 : i32, i32
  }
  func.func @transform_4(%arg0: i32, %arg1: i32) -> (i32, i32) {
    %c0_i32 = arith.constant 0 : i32
    %c0_i32_0 = arith.constant 0 : i32
    %c0_i32_1 = arith.constant 0 : i32
    return %c0_i32, %c0_i32_0 : i32, i32
  }
  func.func @transform_5(%arg0: i32, %arg1: i32) -> (i32, i32) {
    %c0_i32 = arith.constant 0 : i32
    %c0_i32_0 = arith.constant 0 : i32
    %c0_i32_1 = arith.constant 0 : i32
    return %c0_i32, %c0_i32_0 : i32, i32
  }
  func.func @transform_6(%arg0: i32, %arg1: i32) -> (i32, i32) {
    %c0_i32 = arith.constant 0 : i32
    %c0_i32_0 = arith.constant 0 : i32
    %c0_i32_1 = arith.constant 0 : i32
    return %c0_i32, %c0_i32_0 : i32, i32
  }
  func.func @transform_7(%arg0: i32, %arg1: i32) -> (i32, i32) {
    %c0_i32 = arith.constant 0 : i32
    %c0_i32_0 = arith.constant 0 : i32
    %c0_i32_1 = arith.constant 0 : i32
    return %c0_i32, %c0_i32_0 : i32, i32
  }
  func.func @transform_8(%arg0: i32, %arg1: i32) -> (i32, i32, i32) {
    %c0_i32 = arith.constant 0 : i32
    %c0_i32_0 = arith.constant 0 : i32
    return %arg0, %arg1, %c0_i32 : i32, i32, i32
  }
}

</mosaic_0001>

<bundles_post_ra>
// kernel: tpu_custom_call.1
= control target key start
LH: loop header
LB: loop body
LE: loop exit
PB: predicated region body
PF: predicated region fallthrough
CT: control target
= control target key end

     0   :  { %s5838_s0 = inlined_call_operand.hbm [shape: f32[2,128,128], index: 0, kind: input, shape index: {}]   ;;  %s5839_s1 = inlined_call_operand.hbm [shape: f32[1,128], index: 1, kind: input, shape index: {}]   ;;  %s5840_s2 = inlined_call_operand.vmem [shape: f32[1,128], index: 2, kind: input, shape index: {}]   ;;  %s5841_s3 = inlined_call_operand.hbm [shape: bf16[128,384], index: 3, kind: input, shape index: {}]   ;;  %s5842_s4 = inlined_call_operand.hbm [shape: bf16[128,128], index: 4, kind: input, shape index: {}]   ;;  %s5843_s5 = inlined_call_operand.vmem [shape: f32[1,128], index: 5, kind: input, shape index: {}]   ;;  %s5844_s6 = inlined_call_operand.hbm [shape: bf16[128,128], index: 6, kind: input, shape index: {}]   ;;  %s5845_s7 = inlined_call_operand.vmem [shape: f32[1,128], index: 7, kind: input, shape index: {}]   ;;  %s5846_s8 = inlined_call_operand.hbm [shape: f32[2,128,128], index: 8, kind: output, shape index: {}]  }
   0x1   :  { %5855 = sst [smem:[#allocation25_spill]] %s5839_s1 }
   0x2   :  { %5856 = sst [smem:[#allocation26_spill]] %s5841_s3 }
   0x3   :  { %5857 = sst [smem:[#allocation27_spill]] %s5842_s4 }
   0x4   :  { %5858 = sst [smem:[#allocation28_spill]] %s5844_s6 }
   0x5   :  { %5859 = sst [smem:[#allocation29_spill]] %s5845_s7 }
   0x6   :  { %5860 = sst [smem:[#allocation30_spill]] %s5846_s8 }
   0x7   :  { %13 = vsyncpa [#allocation5], 0 }
   0x8   :  { %15 = vsyncpa [#allocation5 + $0x1], 0 }
   0x9   :  { %16 = vsyncpa [#allocation8], 0 }
   0xa   :  { %17 = vsyncpa [#allocation11], 0 }
   0xb   :  { %18 = vsyncpa [#allocation6], 0 }
   0xc   :  { %20 = vsyncpa [#allocation6 + $0x1], 0  ;;  %s4712_s27 = smov 0   ;;  %s4714_s28 = smov 0  }
   0xd   :  { %s4716_s29 = smov 0   ;;  %s4718_s30 = smov 0  }
   0xe   :  { %s4720_s9 = smov 0   ;;  %s4722_s10 = smov 0  }
   0xf   :  { %s4724_s11 = smov 0   ;;  %s4726_s12 = smov 0  }
  0x10   :  { %s4728_s13 = smov 0   ;;  %s4730_s14 = smov 0  }
  0x11   :  { %s4732_s15 = smov 0  }
  0x12 LB: > { %5861 = sst [smem:[#allocation18_spill]] %s4605_s27  ;;  %s3213_s16 = sadd.s32 4294967295, %s4645_s15   ;;  %s4645_s15 = sphi %s4732_s15, %s26_s15   ;;  %s4641_s14 = sphi %s4730_s14, %s5913_s14   ;;  %s4637_s13 = sphi %s4728_s13, %s5904_s13   ;;  %s4633_s12 = sphi %s4726_s12, %s5912_s12   ;;  %s4629_s11 = sphi %s4724_s11, %s5903_s11   ;;  %s4625_s10 = sphi %s4722_s10, %s5911_s10   ;;  %s4621_s9 = sphi %s4720_s9, %s5910_s9   ;;  %s4617_s30 = sphi %s4718_s30, %s5909_s30   ;;  %s4613_s29 = sphi %s4716_s29, %s5908_s29   ;;  %s4609_s28 = sphi %s4714_s28, %s5907_s28   ;;  %s4605_s27 = sphi %s4712_s27, %s5906_s27  }
  0x13   : > { %5862 = sst [smem:[#allocation19_spill]] %s4633_s12  ;;  %s3214_s17 = sadd.s32 4294967294, %s4645_s15  }
  0x14   : > { %5863 = sst [smem:[#allocation20_spill]] %s4637_s13  ;;  %p58_p0 = scmp.ne.s32.totalorder %s4621_s9, %s4617_s30 }
  0x15   : > { %p4768_p1 = scmp.eq.s32.totalorder %s3213_s16, 0  ;;  %p230_p2 = scmp.ne.s32.totalorder %s4613_s29, %s4609_s28 }
  0x16   : > { %p231_p3 = scmp.eq.s32.totalorder %s3213_s16, 7  ;;  %p236_p5 = scmp.ne.s32.totalorder %s4609_s28, %s4605_s27 }
  0x17   : > { %p4776_p4 = por %p4768_p1, %p58_p0  ;;  %p237_p7 = scmp.eq.s32.totalorder %s3214_s17, 7 }
  0x18   : > { %p4782_p6 = por %p231_p3, %p230_p2  ;;  %p3215_p8 = scmp.ge.s32.totalorder %s4645_s15, 1 }
  0x19   : > { %p244_p9 = scmp.lt.s32.totalorder %s4645_s15, 9  ;;  %p4788_p10 = por %p237_p7, %p236_p5 }
  0x1a   : > { %s5866_s20 = scalar_select %p4782_p6, 1, 0 }
  0x1b   : > { %s5868_s21 = scalar_select %p4788_p10, 1, 0 }
  0x1c   : > { %5867 = sst [smem:[#allocation21_spill]] %s5866_s20  ;;  %p4792_p11 = pnand %p3215_p8, %p244_p9 }
  0x1d   : > { %5869 = sst [smem:[#allocation22_spill]] %s5868_s21  ;;  %s4647_s26 = smov [#allocation7]  }
  0x1e   : > { %s5871_s1 = sld [smem:[#allocation25_spill]]  ;;  %p3812_p12 = pneg %p4792_p11 }
  0x1f   : > { %s258_s30 = sshll.u32 %s4647_s26, 4  ;;  %s5873_s4 = sld [smem:[#allocation27_spill]]  ;;  %s259_s30 = int_to_ptr.vmem [resolvable:$true] %s258_s30 }
  0x20   : > { %p4803_p13 = pnand %p3812_p12, %p4768_p1  ;;  %s4648_s23 = smov [#allocation10]  }
  0x21   : > { %s286_s24 = sshll.u32 %s4648_s23, 4  ;;  %s5874_s3 = sld [smem:[#allocation26_spill]]  ;;  %s287_s24 = int_to_ptr.vmem [resolvable:$true] %s286_s24 }
  0x22   : > { %s4649_s8 = smov 64   ;;  %s4650_s7 = smov 4  }
  0x23   : > { %s4651_s21 = smov [#allocation9]   ;;  %s5875_s6 = sld [smem:[#allocation28_spill]] }
  0x24   : > { %s256_s25 = sshll.u32 %s5871_s1, 4  ;;  %s272_s17 = sshll.u32 %s4651_s21, 4  ;;  %s257_s25 = int_to_ptr.hbm [resolvable:$true] %s256_s25  ;;  %s273_s17 = int_to_ptr.vmem [resolvable:$true] %s272_s17 }
  0x25   : > { %s284_s27 = sshll.u32 %s5873_s4, 4  ;;  %s35_s21 = sadd.s32 1, %s4637_s13  ;;  %s285_s27 = int_to_ptr.hbm [resolvable:$true] %s284_s27 }
  0x26   : > { %3815 = dma.hbm_to_vmem [thread:$0]  (!%p4803_p13), %s257_s25, 16, %s259_s30, [#allocation8]  }
  0x27   : > { %s270_s20 = sshll.u32 %s5874_s3, 4  ;;  %s4652_s25 = smov 192   ;;  %s271_s20 = int_to_ptr.hbm [resolvable:$true] %s270_s20 }
  0x28   : > { %3821 = dma.hbm_to_vmem [thread:$0]  (!%p4803_p13), %s285_s27, 1024, %s287_s24, [#allocation11], %s4649_s8, %s4649_s8, %s4650_s7  }
  0x29   : > { %s4653_s30 = smov 12   ;;  %s301_s26 = sshll.u32 %s5875_s6, 4  ;;  %s302_s26 = int_to_ptr.hbm [resolvable:$true] %s301_s26 }
  0x2a   : > { %3818 = dma.hbm_to_vmem [thread:$0]  (!%p4803_p13), %s271_s20, 3072, %s273_s17, [#allocation8], %s4652_s25, %s4652_s25, %s4653_s30  }
  0x2b   : > { %s4654_s27 = smov [#allocation12]   ;;  %p36_p0 = scmp.ge.s32.totalorder %s35_s21, 4 }
  0x2c   : > { %s303_s24 = sshll.u32 %s4654_s27, 4  ;;  %s38_s3 = sadd.s32 1, %s4641_s14  ;;  %s304_s24 = int_to_ptr.vmem [resolvable:$true] %s303_s24 }
  0x2d   : > { %3824 = dma.hbm_to_vmem [thread:$0]  (!%p4803_p13), %s302_s26, 1024, %s304_s24, [#allocation11], %s4649_s8, %s4649_s8, %s4650_s7  }
  0x2e   : > { %s45_s4 = sadd.s32 1, %s4625_s10  ;;  %p52_p2 = scmp.ne.s32.totalorder %s4625_s10, %s4621_s9 }
  0x2f   : > { %s5915_s21 = smov (%p36_p0, %s35_s21), 0  ;;  %s5917_s3 = smov (!%p36_p0, %s38_s3), %s4641_s14 }
  0x30   : > { %5876 = sst [smem:[#allocation23_spill]] %s5915_s21  ;;  %p53_p3 = scmp.eq.s32.totalorder %s4645_s15, 0 }
  0x31   : > { %s216_s20 = ssub.s32 %s4637_s13, %s5915_s21  ;;  %p40_p5 = scmp.ge.s32.totalorder %s5917_s3, 2 }
  0x32   : > { %s220_s17 = sadd.s32 1, %s4613_s29  ;;  %p4836_p7 = por %p53_p3, %p52_p2 }
  0x33   : > { %p3837_p8 = scmp.lt.s32.totalorder %s4645_s15, 8  ;;  %s5919_s3 = smov (%p40_p5, %s5917_s3), 0 }
  0x34   : > { %5878 = sst [smem:[#allocation24_spill]] %s5919_s3  ;;  %s320_s7 = sand.u32 1, %s4625_s10  }
  0x35   : > { %s3663_s8 = sshll.u32 %s4641_s14, 7  ;;  %s42_s25 = ssub.s32 %s4641_s14, %s5919_s3 }
  0x36   : > { %p43_p9 = scmp.eq.s32.totalorder %s42_s25, 0  ;;  %s217_s30 = sor.u32 %s216_s20, %s42_s25 }
  0x37   : > { %p218_p12 = scmp.eq.s32.totalorder %s217_s30, 0  ;;  %s3221_s1 = sshll.u32 %s320_s7, 7 }
  0x38   : > { %s4848_s23 = scalar_select %p43_p9, %s4625_s10, %s45_s4  }
  0x39   : > { %s4851_s26 = scalar_select %p218_p12, %s4613_s29, %s220_s17  }
  0x3a   : > { %s329_s6 = scalar_lea.hbm %s5838_s0, %s3663_s8  ;;  %s324_s13 = scalar_lea.vmem [#allocation4], %s3221_s1 }
  0x3b   : > { %s330_s21 = sshll.u32 %s329_s6, 4  ;;  %s332_s12 = sshll.u32 %s324_s13, 4  ;;  %s331_s21 = int_to_ptr.hbm [resolvable:$true] %s330_s21  ;;  %s333_s12 = int_to_ptr.vmem [resolvable:$true] %s332_s12 }
  0x3c   : > { %p3826_p13 = pnand %p3837_p8, %p4836_p7  ;;  %s321_s3 = scalar_lea.sflag [#allocation5], %s320_s7 }
  0x3d   : > { %s4655_s20 = smov 128   ;;  %s4656_s25 = smov 8  }
  0x3e   : > { %3828 = dma.hbm_to_vmem [thread:$0]  (!%p3826_p13), %s331_s21, 2048, %s333_s12, %s321_s3, %s4655_s20, %s4655_s20, %s4656_s25  }
  0x3f   : > { %344 = sbr.rel (%p4792_p11) target bundleno = 2269 (0x8dd), region = 52  ;;  %s346_s4 = sand.u32 (!%p4792_p11), 1, %s4621_s9  }
  0x40   : > { %s3225_s17 = sshll.u32 (!%p4792_p11), %s346_s4, 7  ;;  %s347_s8 = scalar_lea.sflag (!%p4792_p11), [#allocation5], %s346_s4 }
  0x41   : > { %s4863_s6 = scalar_lea.vmem (!%p4792_p11), [#allocation4], %s3225_s17 }
  0x44   : > { %4588 = dma.done.wait (%p4776_p4), %s347_s8, 2048  }
  0x45   : > { %4590 = vsyncadd (%p4776_p4), %s347_s8, 4294965248 }
  0x46   : > { %4592 = dma.done.wait (%p4768_p1), [#allocation8], 3088  }
  0x47   : > { %4594 = vsyncadd (%p4768_p1), [#allocation8], 4294964208 }
  0x48   : > { %4596 = dma.done.wait (%p4768_p1), [#allocation11], 2048  }
  0x49   : > { %4598 = vsyncadd (%p4768_p1), [#allocation11], 4294965248  ;;  %s401_s3 = sand.u32 1, %s4609_s28   ;;  %v4880_v0 = vld [vmem:[#allocation7] sm:$0x1]  ;;  %p3231_p4 = scmp.ne.s32.totalorder %s4629_s11, 0 }
  0x4a   : > { %s3230_s12 = sshll.u32 %s401_s3, 5  ;;  %v4885_v1 = vld [vmem:[%s5840_s2] sm:$0x1]  ;;  %s4658_s18 = smov (!%p3231_p4), 32  }
  0x4b   : > { %s4887_s22 = scalar_lea.vmem [#allocation13], %s3230_s12  ;;  %410 = sbr.rel (%p3231_p4) target bundleno = 743 (0x2e7), region = 76 }
  0x4c   : > { %s4659_s21 = smov (!%p3231_p4), 96   ;;  %s4660_s16 = smov (!%p3231_p4), 64  }
  0x50   : > { %v4891_v2 = vld [vmem:[%s4863_s6 + $0x20] sm:$0xff]  ;;  %v413_v3 = vld [vmem:[%s4863_s6 + $0x10] sm:$0xff]  ;;  %v416_v5 = vld [vmem:[%s4863_s6 + $0x28] sm:$0xff]  ;;  %v4657_v18 = vmov 128.0  }
  0x51   : > { %v411_v4 = vld [vmem:[%s4863_s6] sm:$0xff]  ;;  %435 = vadd.xlane.f32.xlu2 %v4891_v2  ;;  %431 = vadd.xlane.f32.xlu1 %v413_v3  ;;  %v414_v6 = vld [vmem:[%s4863_s6 + $0x18] sm:$0xff]  ;;  %v412_v7 = vld [vmem:[%s4863_s6 + $0x8] sm:$0xff]  ;;  %4191 = vrcp.f32 %v4657_v18 }
  0x52   : > { %427 = vadd.xlane.f32.xlu0 %v411_v4  ;;  %v419_v8 = vld [vmem:[%s4863_s6 + $0x40] sm:$0xff]  ;;  %v4901_v9 = vld [vmem:[%s4863_s6 + $0x38] sm:$0xff]  ;;  %v417_v10 = vld [vmem:[%s4863_s6 + $0x30] sm:$0xff] }
  0x53   : > { %v4906_v11 = vld [vmem:[%s4863_s6 + $0x58] sm:$0xff]  ;;  %v4909_v12 = vld [vmem:[%s4863_s6 + $0x50] sm:$0xff]  ;;  %v4912_v13 = vld [vmem:[%s4863_s6 + $0x48] sm:$0xff] }
  0x54   : > { %v4918_v14 = vld [vmem:[%s4863_s6 + $0x70] sm:$0xff]  ;;  %v4921_v15 = vld [vmem:[%s4863_s6 + $0x68] sm:$0xff]  ;;  %v4924_v16 = vld [vmem:[%s4863_s6 + $0x60] sm:$0xff] }
  0x55   : > { %v4930_v17 = vld [vmem:[%s4863_s6 + $0x78] sm:$0xff] }
  0x57   : > { %v4192_v19 = vpop.eup %4191 }
  0x58   : > { %v460_v20 = vmul.f32 128.0, %v4192_v19  ;;  %vm464_vm0 = vweird.f32 %v4192_v19 }
  0x59   : > { %437 = vadd.xlane.f32.xlu2 %v416_v5  ;;  %433 = vadd.xlane.f32.xlu1 %v414_v6 }
  0x5a   : > { %429 = vadd.xlane.f32.xlu0 %v412_v7  ;;  %v461_v21 = vsub.f32 1.0, %v460_v20 }
  0x5c   : > { %v462_v22 = vmul.f32 %v4192_v19, %v461_v21 }
  0x5e   : > { %v463_v23 = vadd.f32 %v4192_v19, %v462_v22 }
  0x60   : > { %v4933_v24 = vsel %vm464_vm0, %v4192_v19, %v463_v23 }
  0x61   : > { %443 = vadd.xlane.f32.xlu2 %v419_v8  ;;  %441 = vadd.xlane.f32.xlu1 %v4901_v9 }
  0x62   : > { %439 = vadd.xlane.f32.xlu0 %v417_v10 }
  0x69   : > { %449 = vadd.xlane.f32.xlu2 %v4906_v11  ;;  %447 = vadd.xlane.f32.xlu1 %v4909_v12 }
  0x6a   : > { %445 = vadd.xlane.f32.xlu0 %v4912_v13 }
  0x71   : > { %455 = vadd.xlane.f32.xlu2 %v4918_v14  ;;  %453 = vadd.xlane.f32.xlu1 %v4921_v15 }
  0x72   : > { %451 = vadd.xlane.f32.xlu0 %v4924_v16 }
  0x7a   : > { %457 = vadd.xlane.f32.xlu0 %v4930_v17 }
  0xc4   : > { %v436_v25 = vpop.xlane.xlu2 %435  ;;  %v432_v26 = vpop.xlane.xlu1 %431 }
  0xc5   : > { %v468_v27 = vmul.f32 %v4933_v24, %v432_v26  ;;  %v428_v28 = vpop.xlane.xlu0 %427  ;;  %v470_v45 = vmul.f32 %v4933_v24, %v436_v25 }
  0xc6   : > { %v466_v29 = vmul.f32 %v4933_v24, %v428_v28 }
  0xc7   : > { %v4937_v30 = vsub.f32 %v413_v3, %v468_v27  ;;  %v4963_v51 = vsub.f32 %v4891_v2, %v470_v45  ;;  %v3274_v45 = vld [vmem:[#allocation9 + $0x7c] sm:$0xf] }
  0xc8   : > { %v4939_v31 = vsub.f32 %v411_v4, %v466_v29 }
  0xc9   : > { %v500_v32 = vmul.f32 %v4937_v30, %v4937_v30  ;;  %v502_v57 = vmul.f32 %v4963_v51, %v4963_v51 }
  0xca   : > { %v498_v33 = vmul.f32 %v4939_v31, %v4939_v31 }
  0xcb   : > { %518 = vadd.xlane.f32.xlu0 %v500_v32  ;;  %v3290_v32 = vld [vmem:[#allocation9 + $0xac] sm:$0xf] }
  0xcc   : > { %514 = vadd.xlane.f32.xlu1 %v498_v33  ;;  %v438_v34 = vpop.xlane.xlu2 %437  ;;  %v434_v35 = vpop.xlane.xlu1 %433  ;;  %v3679_v33 = vld [vmem:[#allocation9 + $0xb4] sm:$0xf0] }
  0xcd   : > { %v471_v36 = vmul.f32 %v4933_v24, %v438_v34  ;;  %v469_v37 = vmul.f32 %v4933_v24, %v434_v35  ;;  %v430_v38 = vpop.xlane.xlu0 %429  ;;  %v3678_v34 = vld [vmem:[#allocation9 + $0xb0] sm:$0xf]  ;;  %v3291_v35 = vor.u32 %v3679_v33, %v3290_v32 }
  0xce   : > { %v467_v39 = vmul.f32 %v4933_v24, %v430_v38  ;;  %v3676_v38 = vld [vmem:[#allocation9 + $0x98] sm:$0xf] }
  0xcf   : > { %v4948_v40 = vsub.f32 %v416_v5, %v471_v36  ;;  %v4950_v41 = vsub.f32 %v414_v6, %v469_v37  ;;  %896 = vmatpush.bf16.msra.mxu0 %v3291_v35  ;;  %3768 = vmatpush.bf16.msra.mxu2 %v3291_v35  ;;  %v3677_v37 = vld [vmem:[#allocation9 + $0x9c] sm:$0xf0]  ;;  %v3665_v35 = vld [vmem:[#allocation9 + $0xc] sm:$0xf0] }
  0xd0   : > { %v4952_v42 = vsub.f32 %v412_v7, %v467_v39 }
  0xd1   : > { %v503_v43 = vmul.f32 %v4948_v40, %v4948_v40  ;;  %v501_v44 = vmul.f32 %v4950_v41, %v4950_v41 }
  0xd2   : > { %v499_v46 = vmul.f32 %v4952_v42, %v4952_v42 }
  0xd3   : > { %524 = vadd.xlane.f32.xlu0 %v503_v43  ;;  %v3284_v43 = vld [vmem:[#allocation9 + $0xa0] sm:$0xf0] }
  0xd4   : > { %520 = vadd.xlane.f32.xlu1 %v501_v44  ;;  %516 = vadd.xlane.f32.xlu2 %v499_v46  ;;  %v444_v47 = vpop.xlane.xlu2 %443  ;;  %v442_v48 = vpop.xlane.xlu1 %441  ;;  %v3287_v44 = vor.u32 %v3676_v38, %v3284_v43  ;;  %v3675_v46 = vld [vmem:[#allocation9 + $0x84] sm:$0xf0] }
  0xd5   : > { %v474_v49 = vmul.f32 %v4933_v24, %v444_v47  ;;  %v440_v50 = vpop.xlane.xlu0 %439  ;;  %v473_v55 = vmul.f32 %v4933_v24, %v442_v48  ;;  %v3674_v47 = vld [vmem:[#allocation9 + $0x80] sm:$0xf]  ;;  %v3275_v48 = vor.u32 %v3675_v46, %v3274_v45 }
  0xd6   : > { %v472_v52 = vmul.f32 %v4933_v24, %v440_v50 }
  0xd7   : > { %v4966_v53 = vsub.f32 %v419_v8, %v474_v49  ;;  %v4978_v60 = vsub.f32 %v4901_v9, %v473_v55  ;;  %v3276_v49 = vld [vmem:[#allocation9 + $0x88] sm:$0xf0]  ;;  %v3673_v55 = vld [vmem:[#allocation9 + $0x6c] sm:$0xf0] }
  0xd8   : > { %v4968_v54 = vsub.f32 %v417_v10, %v472_v52  ;;  %v3279_v50 = vor.u32 %v3674_v47, %v3276_v49  ;;  %v3266_v52 = vld [vmem:[#allocation9 + $0x64] sm:$0xf] }
  0xd9   : > { %v506_v56 = vmul.f32 %v4966_v53, %v4966_v53  ;;  %v505_v5 = vmul.f32 %v4978_v60, %v4978_v60 }
  0xda   : > { %v504_v58 = vmul.f32 %v4968_v54, %v4968_v54 }
  0xdb   : > { %530 = vadd.xlane.f32.xlu0 %v506_v56  ;;  %v3672_v56 = vld [vmem:[#allocation9 + $0x68] sm:$0xf] }
  0xdc   : > { %522 = vadd.xlane.f32.xlu2 %v502_v57  ;;  %526 = vadd.xlane.f32.xlu1 %v504_v58  ;;  %v450_v59 = vpop.xlane.xlu2 %449  ;;  %v448_v61 = vpop.xlane.xlu1 %447  ;;  %v3267_v57 = vor.u32 %v3673_v55, %v3266_v52  ;;  %v3268_v58 = vld [vmem:[#allocation9 + $0x70] sm:$0xf0] }
  0xdd   : > { %v477_v62 = vmul.f32 %v4933_v24, %v450_v59  ;;  %v446_v63 = vpop.xlane.xlu0 %445  ;;  %v476_v6 = vmul.f32 %v4933_v24, %v448_v61  ;;  %v3271_v59 = vor.u32 %v3672_v56, %v3268_v58  ;;  %v3258_v61 = vld [vmem:[#allocation9 + $0x4c] sm:$0xf] }
  0xde   : > { %v475_v2 = vmul.f32 %v4933_v24, %v446_v63  ;;  %v3670_v63 = vld [vmem:[#allocation9 + $0x50] sm:$0xf] }
  0xdf   : > { %v4983_v3 = vsub.f32 %v4906_v11, %v477_v62  ;;  %v4996_v10 = vsub.f32 %v4909_v12, %v476_v6  ;;  %v3671_v62 = vld [vmem:[#allocation9 + $0x54] sm:$0xf0] }
  0xe0   : > { %v4986_v4 = vsub.f32 %v4912_v13, %v475_v2  ;;  %v3259_v2 = vor.u32 %v3671_v62, %v3258_v61 }
  0xe1   : > { %v509_v7 = vmul.f32 %v4983_v3, %v4983_v3  ;;  %v508_v22 = vmul.f32 %v4996_v10, %v4996_v10 }
  0xe2   : > { %v507_v8 = vmul.f32 %v4986_v4, %v4986_v4 }
  0xe3   : > { %536 = vadd.xlane.f32.xlu0 %v509_v7  ;;  %v3250_v7 = vld [vmem:[#allocation9 + $0x34] sm:$0xf] }
  0xe4   : > { %528 = vadd.xlane.f32.xlu2 %v505_v5  ;;  %532 = vadd.xlane.f32.xlu1 %v507_v8  ;;  %v456_v9 = vpop.xlane.xlu2 %455  ;;  %v454_v18 = vpop.xlane.xlu1 %453  ;;  %v3260_v5 = vld [vmem:[#allocation9 + $0x58] sm:$0xf0]  ;;  %v3669_v8 = vld [vmem:[#allocation9 + $0x3c] sm:$0xf0] }
  0xe5   : > { %v480_v11 = vmul.f32 %v4933_v24, %v456_v9  ;;  %v452_v13 = vpop.xlane.xlu0 %451  ;;  %v479_v23 = vmul.f32 %v4933_v24, %v454_v18  ;;  %v3263_v6 = vor.u32 %v3670_v63, %v3260_v5  ;;  %v3668_v9 = vld [vmem:[#allocation9 + $0x38] sm:$0xf] }
  0xe6   : > { %v478_v19 = vmul.f32 %v4933_v24, %v452_v13  ;;  %v3252_v13 = vld [vmem:[#allocation9 + $0x40] sm:$0xf0] }
  0xe7   : > { %v5001_v20 = vsub.f32 %v4918_v14, %v480_v11  ;;  %v5014_v14 = vsub.f32 %v4921_v15, %v479_v23  ;;  %v3292_v15 = vld [vmem:[#allocation9 + $0xb8] sm:$0xf0]  ;;  %v3251_v11 = vor.u32 %v3669_v8, %v3250_v7  ;;  %v3255_v18 = vor.u32 %v3668_v9, %v3252_v13  ;;  %v3667_v23 = vld [vmem:[#allocation9 + $0x24] sm:$0xf0] }
  0xe8   : > { %v5004_v21 = vsub.f32 %v4924_v16, %v478_v19  ;;  %v3295_v36 = vor.u32 %v3678_v34, %v3292_v15  ;;  %v3234_v34 = vld [vmem:[#allocation9 + $0x4] sm:$0xf]  ;;  %v3664_v15 = vld [vmem:[#allocation9 + $0x8] sm:$0xf] }
  0xe9   : > { %v512_v12 = vmul.f32 %v5001_v20, %v5001_v20  ;;  %v511_v28 = vmul.f32 %v5014_v14, %v5014_v14 }
  0xea   : > { %v510_v25 = vmul.f32 %v5004_v21, %v5004_v21  ;;  %945 = vmatpush.bf16.msra.mxu1 %v3295_v36  ;;  %3776 = vmatpush.bf16.msra.mxu3 %v3295_v36  ;;  %v3235_v36 = vor.u32 %v3665_v35, %v3234_v34 }
  0xeb   : > { %542 = vadd.xlane.f32.xlu0 %v512_v12  ;;  %v3666_v12 = vld [vmem:[#allocation9 + $0x20] sm:$0xf] }
  0xec   : > { %534 = vadd.xlane.f32.xlu2 %v508_v22  ;;  %538 = vadd.xlane.f32.xlu1 %v510_v25  ;;  %v3242_v22 = vld [vmem:[#allocation9 + $0x1c] sm:$0xf] }
  0xed   : > { %v458_v26 = vpop.xlane.xlu0 %457 }
  0xee   : > { %v481_v16 = vmul.f32 %v4933_v24, %v458_v26  ;;  %946 = vmatpush.bf16.msra.mxu1 %v3287_v44  ;;  %3777 = vmatpush.bf16.msra.mxu3 %v3287_v44  ;;  %v3243_v26 = vor.u32 %v3667_v23, %v3242_v22 }
  0xf0   : > { %v5018_v27 = vsub.f32 %v4930_v17, %v481_v16  ;;  %v3282_v17 = vld [vmem:[#allocation9 + $0x94] sm:$0xf]  ;;  %v3244_v16 = vld [vmem:[#allocation9 + $0x28] sm:$0xf0] }
  0xf1   : > { %v3283_v39 = vor.u32 %v3677_v37, %v3282_v17  ;;  %v3236_v17 = vld [vmem:[#allocation9 + $0x10] sm:$0xf0] }
  0xf2   : > { %v513_v29 = vmul.f32 %v5018_v27, %v5018_v27  ;;  %947 = vmatpush.bf16.msra.mxu1 %v3279_v50  ;;  %3778 = vmatpush.bf16.msra.mxu3 %v3279_v50  ;;  %v3239_v38 = vor.u32 %v3664_v15, %v3236_v17 }
  0xf3   : > { %897 = vmatpush.bf16.msra.mxu0 %v3283_v39  ;;  %3769 = vmatpush.bf16.msra.mxu2 %v3283_v39 }
  0xf4   : > { %540 = vadd.xlane.f32.xlu2 %v511_v28  ;;  %544 = vadd.xlane.f32.xlu1 %v513_v29  ;;  %v3247_v29 = vor.u32 %v3666_v12, %v3244_v16 }
  0xf6   : > { %948 = vmatpush.bf16.msra.mxu1 %v3271_v59  ;;  %3779 = vmatpush.bf16.msra.mxu3 %v3271_v59 }
  0xf7   : > { %898 = vmatpush.bf16.msra.mxu0 %v3275_v48  ;;  %3770 = vmatpush.bf16.msra.mxu2 %v3275_v48 }
  0xfa   : > { %949 = vmatpush.bf16.msra.mxu1 %v3263_v6  ;;  %3780 = vmatpush.bf16.msra.mxu3 %v3263_v6 }
  0xfb   : > { %899 = vmatpush.bf16.msra.mxu0 %v3267_v57  ;;  %3771 = vmatpush.bf16.msra.mxu2 %v3267_v57 }
  0xfe   : > { %950 = vmatpush.bf16.msra.mxu1 %v3255_v18  ;;  %3781 = vmatpush.bf16.msra.mxu3 %v3255_v18 }
  0xff   : > { %900 = vmatpush.bf16.msra.mxu0 %v3259_v2  ;;  %3772 = vmatpush.bf16.msra.mxu2 %v3259_v2 }
 0x102   : > { %951 = vmatpush.bf16.msra.mxu1 %v3247_v29  ;;  %3782 = vmatpush.bf16.msra.mxu3 %v3247_v29 }
 0x103   : > { %901 = vmatpush.bf16.msra.mxu0 %v3251_v11  ;;  %3773 = vmatpush.bf16.msra.mxu2 %v3251_v11 }
 0x106   : > { %952 = vmatpush.bf16.msra.mxu1 %v3239_v38  ;;  %3783 = vmatpush.bf16.msra.mxu3 %v3239_v38 }
 0x107   : > { %902 = vmatpush.bf16.msra.mxu0 %v3243_v26  ;;  %3774 = vmatpush.bf16.msra.mxu2 %v3243_v26 }
 0x10b   : > { %903 = vmatpush.bf16.msra.mxu0 %v3235_v36  ;;  %3775 = vmatpush.bf16.msra.mxu2 %v3235_v36 }
 0x13e   : > { %v519_v19 = vpop.xlane.xlu0 %518 }
 0x13f   : > { %v515_v25 = vpop.xlane.xlu1 %514  ;;  %v548_v33 = vmul.f32 %v519_v19, %v4933_v24 }
 0x140   : > { %v546_v28 = vmul.f32 %v515_v25, %v4933_v24 }
 0x141   : > { %v5029_v44 = vadd.f32 1e-05, %v548_v33 }
 0x142   : > { %v5025_v32 = vadd.f32 1e-05, %v546_v28 }
 0x143   : > { %vm604_vm7 = vweird.f32 %v5029_v44 }
 0x144   : > { %4193 = vrsqrt.f32 %v5025_v32  ;;  %vm584_vm3 = vweird.f32 %v5025_v32 }
 0x145   : > { %4195 = vrsqrt.f32 %v5029_v44 }
 0x146   : > { %v525_v37 = vpop.xlane.xlu0 %524 }
 0x147   : > { %v521_v39 = vpop.xlane.xlu1 %520  ;;  %v517_v43 = vpop.xlane.xlu2 %516  ;;  %v551_v5 = vmul.f32 %v525_v37, %v4933_v24 }
 0x148   : > { %v549_v45 = vmul.f32 %v521_v39, %v4933_v24  ;;  %v547_v46 = vmul.f32 %v517_v43, %v4933_v24 }
 0x149   : > { %v5056_v23 = vadd.f32 1e-05, %v551_v5  ;;  %v5096_v5 = vperm.slane %v4885_v1, 0 }
 0x14a   : > { %v5033_v47 = vpop.eup %4193  ;;  %v563_v48 = vadd.f32 1e-05, %v547_v46  ;;  %v5038_v50 = vadd.f32 1e-05, %v549_v45 }
 0x14b   : > { %v579_v49 = vmul.f32 %v5033_v47, %v5025_v32  ;;  %v5045_v59 = vpop.eup %4195  ;;  %vm585_vm1 = vweird.f32 %v5033_v47 }
 0x14c   : > { %4197 = vrsqrt.f32 %v563_v48  ;;  %v599_v7 = vmul.f32 %v5045_v59, %v5029_v44  ;;  %vm586_vm4 = vmor %vm584_vm3, %vm585_vm1  ;;  %vm594_vm5 = vweird.f32 %v563_v48  ;;  %vm605_vm8 = vweird.f32 %v5045_v59 }
 0x14d   : > { %v580_v55 = vmul.f32 %v5033_v47, %v579_v49  ;;  %4199 = vrsqrt.f32 %v5038_v50  ;;  %vm614_vm9 = vweird.f32 %v5038_v50  ;;  %vm5155_vm15 = vmor %vm604_vm7, %vm605_vm8  ;;  %vm634_vm8 = vweird.f32 %v5056_v23 }
 0x14e   : > { %v531_v52 = vpop.xlane.xlu0 %530  ;;  %v600_v28 = vmul.f32 %v5045_v59, %v599_v7 }
 0x14f   : > { %v523_v56 = vpop.xlane.xlu2 %522  ;;  %v5041_v57 = vpop.xlane.xlu1 %526  ;;  %v554_v58 = vmul.f32 %v531_v52, %v4933_v24  ;;  %v581_v63 = vmul.f32 0.5, %v580_v55 }
 0x150   : > { %v550_v12 = vmul.f32 %v523_v56, %v4933_v24  ;;  %v601_v38 = vmul.f32 0.5, %v600_v28 }
 0x151   : > { %v5047_v61 = vadd.f32 1e-05, %v554_v58  ;;  %v582_v11 = vsub.f32 1.5, %v581_v63  ;;  %v5090_v58 = vperm.slane %v4880_v0, 0 }
 0x152   : > { %v4198_v62 = vpop.eup %4197  ;;  %v5072_v36 = vadd.f32 1e-05, %v550_v12  ;;  %v602_v55 = vsub.f32 1.5, %v601_v38 }
 0x153   : > { %v589_v2 = vmul.f32 %v4198_v62, %v563_v48  ;;  %v5050_v6 = vpop.eup %4199  ;;  %4201 = vrsqrt.f32 %v5047_v61  ;;  %v583_v34 = vmul.f32 %v5033_v47, %v582_v11  ;;  %vm595_vm2 = vweird.f32 %v4198_v62 }
 0x154   : > { %v609_v26 = vmul.f32 %v5050_v6, %v5038_v50  ;;  %4203 = vrsqrt.f32 %v5056_v23  ;;  %vm596_vm6 = vmor %vm594_vm5, %vm595_vm2  ;;  %v603_v11 = vmul.f32 %v5045_v59, %v602_v55  ;;  %vm615_vm10 = vweird.f32 %v5050_v6 }
 0x155   : > { %v590_v8 = vmul.f32 %v4198_v62, %v589_v2  ;;  %v587_v43 = vsel %vm586_vm4, %v5033_v47, %v583_v34  ;;  %vm664_vm11 = vweird.f32 %v5047_v61  ;;  %vm5144_vm13 = vmor %vm614_vm9, %vm615_vm10 }
 0x156   : > { %v537_v9 = vpop.xlane.xlu0 %536  ;;  %v610_v17 = vmul.f32 %v5050_v6, %v609_v26  ;;  %v738_v48 = vmul.f32 %v587_v43, %v4939_v31 }
 0x157   : > { %v529_v13 = vpop.xlane.xlu2 %528  ;;  %v533_v18 = vpop.xlane.xlu1 %532  ;;  %v557_v19 = vmul.f32 %v537_v9, %v4933_v24  ;;  %v591_v22 = vmul.f32 0.5, %v590_v8  ;;  %v552_v8 = vmul.f32 %v5041_v57, %v4933_v24 }
 0x158   : > { %v555_v25 = vmul.f32 %v533_v18, %v4933_v24  ;;  %v611_v49 = vmul.f32 0.5, %v610_v17  ;;  %v553_v18 = vmul.f32 %v529_v13, %v4933_v24 }
 0x159   : > { %v5062_v16 = vadd.f32 1e-05, %v557_v19  ;;  %v592_v29 = vsub.f32 1.5, %v591_v22  ;;  %v5069_v35 = vpop.eup %4201  ;;  %v757_v22 = vmul.f32 %v5090_v58, %v738_v48 }
 0x15a   : > { %v5065_v33 = vadd.f32 1e-05, %v555_v25  ;;  %v659_v37 = vmul.f32 %v5069_v35, %v5047_v61  ;;  %v5084_v52 = vpop.eup %4203  ;;  %v612_v31 = vsub.f32 1.5, %v611_v49  ;;  %vm665_vm12 = vweird.f32 %v5069_v35 }
 0x15b   : > { %v593_v15 = vmul.f32 %v4198_v62, %v592_v29  ;;  %4205 = vrsqrt.f32 %v5062_v16  ;;  %v629_v12 = vmul.f32 %v5084_v52, %v5056_v23  ;;  %vm5172_vm0 = vmor %vm664_vm11, %vm665_vm12  ;;  %v607_v61 = vsel %vm5155_vm15, %v5045_v59, %v603_v11 }
 0x15c   : > { %4207 = vrsqrt.f32 %v5065_v33  ;;  %v660_v32 = vmul.f32 %v5069_v35, %v659_v37  ;;  %v613_v34 = vmul.f32 %v5050_v6, %v612_v31  ;;  %vm674_vm1 = vweird.f32 %v5065_v33 }
 0x15d   : > { %4209 = vrsqrt.f32 %v5072_v36  ;;  %v597_v46 = vsel %vm596_vm6, %v4198_v62, %v593_v15  ;;  %vm694_vm3 = vweird.f32 %v5062_v16  ;;  %vm635_vm11 = vweird.f32 %v5084_v52 }
 0x15e   : > { %v739_v2 = vmul.f32 %v597_v46, %v4952_v42  ;;  %v661_v7 = vmul.f32 0.5, %v660_v32  ;;  %v776_v32 = vadd.f32 %v5096_v5, %v757_v22  ;;  %v5166_v22 = vadd.f32 1e-05, %v552_v8 }
 0x15f   : > { %v535_v39 = vpop.xlane.xlu2 %534  ;;  %v539_v47 = vpop.xlane.xlu1 %538  ;;  %vm624_vm12 = vweird.f32 %v5072_v36 }
 0x160   : > { %v556_v45 = vmul.f32 %v535_v39, %v4933_v24  ;;  %v558_v19 = vmul.f32 %v539_v47, %v4933_v24  ;;  %v758_v26 = vmul.f32 %v5090_v58, %v739_v2  ;;  %v662_v29 = vsub.f32 1.5, %v661_v7 }
 0x161   : > { %v5092_v63 = vpop.eup %4205  ;;  %v5129_v39 = vadd.f32 1e-05, %v553_v18  ;;  %v617_v18 = vsel %vm5144_vm13, %v5050_v6, %v613_v34 }
 0x162   : > { %v5086_v56 = vadd.f32 1e-05, %v556_v45  ;;  %v5098_v62 = vpop.eup %4207  ;;  %v689_v57 = vmul.f32 %v5092_v63, %v5062_v16  ;;  %v777_v37 = vadd.f32 %v5096_v5, %v758_v26  ;;  %v5131_v43 = vadd.f32 1e-05, %v558_v19 }
 0x163   : > { %v669_v42 = vmul.f32 %v5098_v62, %v5065_v33  ;;  %v5108_v9 = vpop.eup %4209  ;;  %v663_v47 = vmul.f32 %v5069_v35, %v662_v29  ;;  %vm675_vm14 = vweird.f32 %v5098_v62  ;;  %v630_v19 = vmul.f32 %v5084_v52, %v629_v12 }
 0x164   : > { %4211 = vrsqrt.f32 %v5086_v56  ;;  %v619_v15 = vmul.f32 %v5108_v9, %v5072_v36  ;;  %v690_v49 = vmul.f32 %v5092_v63, %v689_v57  ;;  %v792_v2 = vpack.c.bf16 %v777_v37, %v776_v32  ;;  %vm5180_vm2 = vmor %vm674_vm1, %vm675_vm14 }
 0x165   : > { %v670_v25 = vmul.f32 %v5098_v62, %v669_v42  ;;  %v741_v33 = vmul.f32 %v617_v18, %v4950_v41  ;;  %v631_v59 = vmul.f32 0.5, %v630_v19  ;;  %v740_v41 = vmul.f32 %v607_v61, %v4937_v30  ;;  %vm636_vm14 = vmor %vm634_vm8, %vm635_vm11 }
 0x166   : > { %v620_v50 = vmul.f32 %v5108_v9, %v619_v15  ;;  %904 = vmatmul.bf16.vlgmr.msra.gmra.mxu0 %v792_v2  ;;  %953 = vmatmul.bf16.vlgmr.msra.gmra.mxu1 %v792_v2  ;;  %v691_v8 = vmul.f32 0.5, %v690_v49  ;;  %vm684_vm4 = vweird.f32 %v5086_v56  ;;  %vm695_vm6 = vweird.f32 %v5092_v63 }
 0x167   : > { %v541_v28 = vpop.xlane.xlu2 %540  ;;  %v671_v17 = vmul.f32 0.5, %v670_v25  ;;  %v667_v25 = vsel %vm5172_vm0, %v5069_v35, %v663_v47  ;;  %v545_v29 = vpop.xlane.xlu1 %544  ;;  %v759_v48 = vmul.f32 %v5090_v58, %v740_v41  ;;  %v632_v7 = vsub.f32 1.5, %v631_v59  ;;  %vm5235_vm10 = vmor %vm694_vm3, %vm695_vm6 }
 0x168   : > { %v559_v13 = vmul.f32 %v541_v28, %v4933_v24  ;;  %v621_v26 = vmul.f32 0.5, %v620_v50  ;;  %v692_v15 = vsub.f32 1.5, %v691_v8  ;;  %v543_v35 = vpop.xlane.xlu0 %542  ;;  %vm625_vm9 = vweird.f32 %v5108_v9 }
 0x169   : > { %v672_v46 = vsub.f32 1.5, %v671_v17  ;;  %v760_v17 = vmul.f32 %v5090_v58, %v741_v33  ;;  %v778_v33 = vadd.f32 %v5096_v5, %v759_v48  ;;  %vm626_vm13 = vmor %vm624_vm12, %vm625_vm9  ;;  %vm704_vm1 = vweird.f32 %v5131_v43 }
 0x16a   : > { %v5127_v38 = vpop.eup %4211  ;;  %v5134_v45 = vadd.f32 1e-05, %v559_v13  ;;  %v746_v13 = vmul.f32 %v667_v25, %v4966_v53  ;;  %v561_v53 = vmul.f32 %v545_v29, %v4933_v24  ;;  %v622_v32 = vsub.f32 1.5, %v621_v26 }
 0x16b   : > { %v679_v55 = vmul.f32 %v5127_v38, %v5086_v56  ;;  %v673_v31 = vmul.f32 %v5098_v62, %v672_v46  ;;  %vm685_vm5 = vweird.f32 %v5127_v38  ;;  %v693_v50 = vmul.f32 %v5092_v63, %v692_v15 }
 0x16c   : > { %4213 = vrsqrt.f32 %v5134_v45  ;;  %v765_v37 = vmul.f32 %v5090_v58, %v746_v13  ;;  %vm5216_vm7 = vmor %vm684_vm4, %vm685_vm5  ;;  %v5239_v18 = vadd.f32 1e-05, %v561_v53  ;;  %v779_v19 = vadd.f32 %v5096_v5, %v760_v17 }
 0x16d   : > { %v680_v42 = vmul.f32 %v5127_v38, %v679_v55  ;;  %4215 = vrsqrt.f32 %v5131_v43  ;;  %v677_v57 = vsel %vm5180_vm2, %v5098_v62, %v673_v31  ;;  %v560_v55 = vmul.f32 %v543_v35, %v4933_v24 }
 0x16e   : > { %4217 = vrsqrt.f32 %v5129_v39  ;;  %v747_v11 = vmul.f32 %v677_v57, %v4986_v4  ;;  %v784_v47 = vadd.f32 %v5096_v5, %v765_v37  ;;  %v623_v6 = vmul.f32 %v5108_v9, %v622_v32 }
 0x16f   : > { %v681_v12 = vmul.f32 0.5, %v680_v42  ;;  %4219 = vrsqrt.f32 %v5166_v22  ;;  %v5251_v61 = vadd.f32 1e-05, %v560_v55  ;;  %v633_v25 = vmul.f32 %v5084_v52, %v632_v7 }
 0x170   : > { %v766_v30 = vmul.f32 %v5090_v58, %v747_v11  ;;  %4221 = vrsqrt.f32 %v5239_v18  ;;  %v793_v36 = vpack.c.bf16 %v779_v19, %v778_v33  ;;  %v627_v59 = vsel %vm626_vm13, %v5108_v9, %v623_v6 }
 0x171   : > { %v682_v28 = vsub.f32 1.5, %v681_v12  ;;  %4223 = vrsqrt.f32 %v5251_v61  ;;  %v742_v15 = vmul.f32 %v627_v59, %v4963_v51  ;;  %vm714_vm15 = vweird.f32 %v5134_v45 }
 0x172   : > { %v5196_v34 = vpop.eup %4213  ;;  %v785_v2 = vadd.f32 %v5096_v5, %v766_v30  ;;  %vm654_vm3 = vweird.f32 %v5129_v39  ;;  %vm644_vm9 = vweird.f32 %v5166_v22  ;;  %vm734_vm11 = vweird.f32 %v5239_v18 }
 0x173   : > { %v5204_v62 = vpop.eup %4215  ;;  %v683_v4 = vmul.f32 %v5127_v38, %v682_v28  ;;  %v709_v56 = vmul.f32 %v5196_v34, %v5134_v45  ;;  %vm715_vm0 = vweird.f32 %v5196_v34  ;;  %v761_v51 = vmul.f32 %v5090_v58, %v742_v15 }
 0x174   : > { %v5214_v46 = vpop.eup %4217  ;;  %v699_v31 = vmul.f32 %v5204_v62, %v5131_v43  ;;  %v796_v44 = vpack.c.bf16 %v785_v2, %v784_v47  ;;  %vm705_vm2 = vweird.f32 %v5204_v62  ;;  %vm5293_vm4 = vmor %vm714_vm15, %vm715_vm0  ;;  %vm724_vm13 = vweird.f32 %v5251_v61 }
 0x175   : > { %v5228_v42 = vpop.eup %4219  ;;  %v649_v8 = vmul.f32 %v5214_v46, %v5129_v39  ;;  %v710_v12 = vmul.f32 %v5196_v34, %v709_v56  ;;  %v687_v16 = vsel %vm5216_vm7, %v5127_v38, %v683_v4  ;;  %v697_v38 = vsel %vm5235_vm10, %v5092_v63, %v693_v50  ;;  %vm5305_vm6 = vmor %vm704_vm1, %vm705_vm2 }
 0x176   : > { %924 = vmatmul.bf16.vlgmr.msra.gmra.mxu2 %v796_v44  ;;  %973 = vmatmul.bf16.vlgmr.msra.gmra.mxu3 %v796_v44  ;;  %v639_v57 = vmul.f32 %v5228_v42, %v5166_v22  ;;  %v700_v26 = vmul.f32 %v5204_v62, %v699_v31  ;;  %v748_v28 = vmul.f32 %v687_v16, %v4996_v10  ;;  %v5277_v17 = vpop.eup %4221  ;;  %vm655_vm5 = vweird.f32 %v5214_v46 }
 0x177   : > { %v650_v29 = vmul.f32 %v5214_v46, %v649_v8  ;;  %v711_v13 = vmul.f32 0.5, %v710_v12  ;;  %909 = vmatmul.bf16.gmra.mxu0 %v793_v36  ;;  %958 = vmatmul.bf16.gmra.mxu1 %v793_v36  ;;  %v749_v63 = vmul.f32 %v697_v38, %v4983_v3  ;;  %v637_v10 = vsel %vm636_vm14, %v5084_v52, %v633_v25  ;;  %v5283_v3 = vpop.eup %4223  ;;  %vm5315_vm7 = vmor %vm654_vm3, %vm655_vm5 }
 0x178   : > { %v640_v41 = vmul.f32 %v5228_v42, %v639_v57  ;;  %v701_v11 = vmul.f32 0.5, %v700_v26  ;;  %v767_v9 = vmul.f32 %v5090_v58, %v748_v28  ;;  %v743_v23 = vmul.f32 %v637_v10, %v4948_v40 }
 0x179   : > { %v651_v35 = vmul.f32 0.5, %v650_v29  ;;  %v712_v53 = vsub.f32 1.5, %v711_v13  ;;  %v768_v37 = vmul.f32 %v5090_v58, %v749_v63  ;;  %v729_v56 = vmul.f32 %v5277_v17, %v5239_v18 }
 0x17a   : > { %v641_v30 = vmul.f32 0.5, %v640_v41  ;;  %v702_v32 = vsub.f32 1.5, %v701_v11  ;;  %v786_v52 = vadd.f32 %v5096_v5, %v767_v9  ;;  %v762_v49 = vmul.f32 %v5090_v58, %v743_v23 }
 0x17b   : > { %v652_v4 = vsub.f32 1.5, %v651_v35  ;;  %v713_v40 = vmul.f32 %v5196_v34, %v712_v53  ;;  %v787_v55 = vadd.f32 %v5096_v5, %v768_v37  ;;  %v719_v2 = vmul.f32 %v5283_v3, %v5251_v61 }
 0x17c   : > { %v642_v48 = vsub.f32 1.5, %v641_v30  ;;  %v703_v47 = vmul.f32 %v5204_v62, %v702_v32  ;;  %v780_v7 = vadd.f32 %v5096_v5, %v761_v51  ;;  %v730_v24 = vmul.f32 %v5277_v17, %v729_v56 }
 0x17d   : > { %v797_v50 = vpack.c.bf16 %v787_v55, %v786_v52  ;;  %v653_v31 = vmul.f32 %v5214_v46, %v652_v4  ;;  %v717_v19 = vsel %vm5293_vm4, %v5196_v34, %v713_v40  ;;  %v781_v43 = vadd.f32 %v5096_v5, %v762_v49 }
 0x17e   : > { %v643_v6 = vmul.f32 %v5228_v42, %v642_v48  ;;  %vm645_vm8 = vweird.f32 %v5228_v42  ;;  %v720_v8 = vmul.f32 %v5283_v3, %v719_v2  ;;  %v707_v12 = vsel %vm5305_vm6, %v5204_v62, %v703_v47 }
 0x17f   : > { %v794_v16 = vpack.c.bf16 %v781_v43, %v780_v7  ;;  %v751_v34 = vmul.f32 %v717_v19, %v5014_v14  ;;  %v731_v33 = vmul.f32 0.5, %v730_v24  ;;  %v657_v25 = vsel %vm5315_vm7, %v5214_v46, %v653_v31  ;;  %vm646_vm10 = vmor %vm644_vm9, %vm645_vm8 }
 0x180   : > { %v750_v57 = vmul.f32 %v707_v12, %v5004_v21  ;;  %v721_v26 = vmul.f32 0.5, %v720_v8  ;;  %v647_v38 = vsel %vm646_vm10, %v5228_v42, %v643_v6  ;;  %v745_v62 = vmul.f32 %v657_v25, %v4978_v60 }
 0x181   : > { %v770_v36 = vmul.f32 %v5090_v58, %v751_v34  ;;  %v732_v14 = vsub.f32 1.5, %v731_v33  ;;  %v744_v22 = vmul.f32 %v647_v38, %v4968_v54  ;;  %vm735_vm12 = vweird.f32 %v5277_v17 }
 0x182   : > { %v769_v28 = vmul.f32 %v5090_v58, %v750_v57  ;;  %v722_v29 = vsub.f32 1.5, %v721_v26  ;;  %v764_v46 = vmul.f32 %v5090_v58, %v745_v62  ;;  %vm725_vm14 = vweird.f32 %v5283_v3  ;;  %vm736_vm15 = vmor %vm734_vm11, %vm735_vm12 }
 0x183   : > { %v789_v21 = vadd.f32 %v5096_v5, %v770_v36  ;;  %v733_v60 = vmul.f32 %v5277_v17, %v732_v14  ;;  %v763_v54 = vmul.f32 %v5090_v58, %v744_v22  ;;  %vm726_vm0 = vmor %vm724_vm13, %vm725_vm14  ;;  %vm1218_vm1 = vcmask 257024  }
 0x184   : > { %v788_v42 = vadd.f32 %v5096_v5, %v769_v28  ;;  %v723_v13 = vmul.f32 %v5283_v3, %v722_v29  ;;  %v783_v18 = vadd.f32 %v5096_v5, %v764_v46 }
 0x185   : > { %v737_v63 = vsel %vm736_vm15, %v5277_v17, %v733_v60  ;;  %v782_v41 = vadd.f32 %v5096_v5, %v763_v54 }
 0x186   : > { %929 = vmatmul.bf16.gmra.mxu2 %v797_v50  ;;  %978 = vmatmul.bf16.gmra.mxu3 %v797_v50  ;;  %v798_v59 = vpack.c.bf16 %v789_v21, %v788_v42  ;;  %v727_v61 = vsel %vm726_vm0, %v5283_v3, %v723_v13  ;;  %v753_v10 = vmul.f32 %v737_v63, %v5018_v27 }
 0x187   : > { %914 = vmatmul.bf16.gmra.mxu0 %v794_v16  ;;  %963 = vmatmul.bf16.gmra.mxu1 %v794_v16  ;;  %v795_v11 = vpack.c.bf16 %v783_v18, %v782_v41  ;;  %v752_v15 = vmul.f32 %v727_v61, %v5001_v20 }
 0x188   : > { %v772_v9 = vmul.f32 %v5090_v58, %v753_v10 }
 0x189   : > { %v771_v35 = vmul.f32 %v5090_v58, %v752_v15 }
 0x18a   : > { %v791_v53 = vadd.f32 %v5096_v5, %v772_v9 }
 0x18b   : > { %v790_v17 = vadd.f32 %v5096_v5, %v771_v35 }
 0x18d   : > { %v799_v23 = vpack.c.bf16 %v791_v53, %v790_v17 }
 0x196   : > { %934 = vmatmul.bf16.gmra.mxu2 %v798_v59  ;;  %983 = vmatmul.bf16.gmra.mxu3 %v798_v59 }
 0x197   : > { %919 = vmatmul.bf16.gmra.mxu0 %v795_v11  ;;  %968 = vmatmul.bf16.gmra.mxu1 %v795_v11 }
 0x1a6   : > { %939 = vmatmul.bf16.gmra.mxu2 %v799_v23  ;;  %988 = vmatmul.bf16.gmra.mxu3 %v799_v23 }
 0x1e3   : > { %v905_v37 = vpop.f32.mrf.mxu0  ;;  %v954_v30 = vpop.f32.mrf.mxu1 }
 0x1e4   : > { %v1154_v32 = vpack.c.bf16 %v905_v37, %v905_v37  ;;  %v1443_v27 = vpack.c.bf16 %v954_v30, %v954_v30 }
 0x1e6   : > { %1219 = vst.msk [vmem:[#allocation2] sm:$0xf] %vm1218_vm1, %v1154_v32 }
 0x1e7   : > { %1507 = vst.msk [vmem:[#allocation3] sm:$0xf] %vm1218_vm1, %v1443_v27 }
 0x1eb   : > { %v907_v20 = vpop.f32.mrf.mxu0  ;;  %v956_v3 = vpop.f32.mrf.mxu1 }
 0x1ec   : > { %v1155_v51 = vpack.c.bf16 %v907_v20, %v907_v20  ;;  %v1444_v58 = vpack.c.bf16 %v956_v3, %v956_v3  ;;  %v3961_v52 = vpack.i.bf16 %v907_v20, %v905_v37  ;;  %v3966_v4 = vpack.i.bf16 %v956_v3, %v954_v30 }
 0x1ee   : > { %1220 = vst.msk [vmem:[#allocation2 + $0x4] sm:$0xf] %vm1218_vm1, %v1155_v51  ;;  %3962 = vrot.lane.b32.xlu0 %v3961_v52, %s4658_s18  ;;  %3952 = vrot.lane.b32.xlu2 %v3961_v52, %s4659_s21 }
 0x1ef   : > { %1508 = vst.msk [vmem:[#allocation3 + $0x4] sm:$0xf] %vm1218_vm1, %v1444_v58  ;;  %3967 = vrot.lane.b32.xlu1 %v3966_v4, %s4659_s21 }
 0x1f4   : > { %v910_v5 = vpop.f32.mrf.mxu0  ;;  %v5364_v40 = vpop.f32.mrf.mxu1 }
 0x1f5   : > { %v1156_v56 = vpack.c.bf16 %v910_v5, %v910_v5  ;;  %v1445_v45 = vpack.c.bf16 %v5364_v40, %v5364_v40 }
 0x1f6   : > { %3977 = vrot.lane.b32.xlu0 %v3966_v4, %s4658_s18  ;;  %3957 = vrot.lane.b32.xlu2 %v3961_v52, %s4660_s16 }
 0x1f7   : > { %1221 = vst.msk [vmem:[#allocation2 + $0x8] sm:$0xf] %vm1218_vm1, %v1156_v56 }
 0x1f8   : > { %1509 = vst.msk [vmem:[#allocation3 + $0x8] sm:$0xf] %vm1218_vm1, %v1445_v45 }
 0x1f9   : > { %v925_v49 = vpop.f32.mrf.mxu2  ;;  %v974_v55 = vpop.f32.mrf.mxu3 }
 0x1fa   : > { %v1162_v48 = vpack.c.bf16 %v925_v49, %v925_v49  ;;  %v1451_v47 = vpack.c.bf16 %v974_v55, %v974_v55 }
 0x1fc   : > { %1227 = vst.msk [vmem:[#allocation2 + $0x20] sm:$0xf] %vm1218_vm1, %v1162_v48  ;;  %v912_v2 = vpop.f32.mrf.mxu0  ;;  %v961_v39 = vpop.f32.mrf.mxu1 }
 0x1fd   : > { %1515 = vst.msk [vmem:[#allocation3 + $0x20] sm:$0xf] %vm1218_vm1, %v1451_v47  ;;  %v1157_v7 = vpack.c.bf16 %v912_v2, %v912_v2  ;;  %v1446_v50 = vpack.c.bf16 %v961_v39, %v961_v39  ;;  %v4016_v21 = vpack.i.bf16 %v912_v2, %v910_v5  ;;  %v4031_v11 = vpack.i.bf16 %v961_v39, %v5364_v40 }
 0x1fe   : > { %3972 = vrot.lane.b32.xlu2 %v3966_v4, %s4660_s16 }
 0x1ff   : > { %1222 = vst.msk [vmem:[#allocation2 + $0xc] sm:$0xf] %vm1218_vm1, %v1157_v7 }
 0x200   : > { %1510 = vst.msk [vmem:[#allocation3 + $0xc] sm:$0xf] %vm1218_vm1, %v1446_v50 }
 0x201   : > { %v927_v31 = vpop.f32.mrf.mxu2  ;;  %v976_v24 = vpop.f32.mrf.mxu3 }
 0x202   : > { %v1163_v19 = vpack.c.bf16 %v927_v31, %v927_v31  ;;  %v1452_v44 = vpack.c.bf16 %v976_v24, %v976_v24  ;;  %v3986_v43 = vpack.i.bf16 %v927_v31, %v925_v49  ;;  %v4001_v26 = vpack.i.bf16 %v976_v24, %v974_v55 }
 0x204   : > { %1228 = vst.msk [vmem:[#allocation2 + $0x24] sm:$0xf] %vm1218_vm1, %v1163_v19  ;;  %3987 = vrot.lane.b32.xlu1 %v3986_v43, %s4660_s16  ;;  %3982 = vrot.lane.b32.xlu0 %v3986_v43, %s4659_s21  ;;  %v5381_v6 = vpop.f32.mrf.mxu0  ;;  %v5383_v8 = vpop.f32.mrf.mxu1 }
 0x205   : > { %1516 = vst.msk [vmem:[#allocation3 + $0x24] sm:$0xf] %vm1218_vm1, %v1452_v44  ;;  %v1158_v12 = vpack.c.bf16 %v5381_v6, %v5381_v6  ;;  %v1447_v16 = vpack.c.bf16 %v5383_v8, %v5383_v8 }
 0x206   : > { %3992 = vrot.lane.b32.xlu2 %v3986_v43, %s4658_s18 }
 0x207   : > { %1223 = vst.msk [vmem:[#allocation2 + $0x10] sm:$0xf] %vm1218_vm1, %v1158_v12 }
 0x208   : > { %1511 = vst.msk [vmem:[#allocation3 + $0x10] sm:$0xf] %vm1218_vm1, %v1447_v16 }
 0x209   : > { %v930_v34 = vpop.f32.mrf.mxu2  ;;  %v979_v33 = vpop.f32.mrf.mxu3 }
 0x20a   : > { %v1164_v25 = vpack.c.bf16 %v930_v34, %v930_v34  ;;  %v1453_v57 = vpack.c.bf16 %v979_v33, %v979_v33 }
 0x20c   : > { %1229 = vst.msk [vmem:[#allocation2 + $0x28] sm:$0xf] %vm1218_vm1, %v1164_v25  ;;  %4002 = vrot.lane.b32.xlu1 %v4001_v26, %s4660_s16  ;;  %3997 = vrot.lane.b32.xlu0 %v4001_v26, %s4659_s21  ;;  %v917_v38 = vpop.f32.mrf.mxu0  ;;  %v5396_v62 = vpop.f32.mrf.mxu1 }
 0x20d   : > { %1517 = vst.msk [vmem:[#allocation3 + $0x28] sm:$0xf] %vm1218_vm1, %v1453_v57  ;;  %v1159_v36 = vpack.c.bf16 %v917_v38, %v917_v38  ;;  %v1448_v14 = vpack.c.bf16 %v5396_v62, %v5396_v62  ;;  %v4066_v58 = vpack.i.bf16 %v917_v38, %v5381_v6  ;;  %v4081_v56 = vpack.i.bf16 %v5396_v62, %v5383_v8 }
 0x20e   : > { %4007 = vrot.lane.b32.xlu2 %v4001_v26, %s4658_s18 }
 0x20f   : > { %1224 = vst.msk [vmem:[#allocation2 + $0x14] sm:$0xf] %vm1218_vm1, %v1159_v36 }
 0x210   : > { %1512 = vst.msk [vmem:[#allocation3 + $0x14] sm:$0xf] %vm1218_vm1, %v1448_v14 }
 0x211   : > { %v932_v22 = vpop.f32.mrf.mxu2  ;;  %v981_v28 = vpop.f32.mrf.mxu3 }
 0x212   : > { %v1165_v29 = vpack.c.bf16 %v932_v22, %v932_v22  ;;  %v1454_v46 = vpack.c.bf16 %v981_v28, %v981_v28  ;;  %v5405_v60 = vpack.i.bf16 %v981_v28, %v979_v33  ;;  %v4051_v30 = vpack.i.bf16 %v932_v22, %v930_v34 }
 0x214   : > { %1230 = vst.msk [vmem:[#allocation2 + $0x2c] sm:$0xf] %vm1218_vm1, %v1165_v29  ;;  %4017 = vrot.lane.b32.xlu1 %v4016_v21, %s4660_s16  ;;  %4012 = vrot.lane.b32.xlu0 %v4016_v21, %s4659_s21  ;;  %v920_v54 = vpop.f32.mrf.mxu0  ;;  %v5409_v42 = vpop.f32.mrf.mxu1 }
 0x215   : > { %1518 = vst.msk [vmem:[#allocation3 + $0x2c] sm:$0xf] %vm1218_vm1, %v1454_v46  ;;  %v1160_v13 = vpack.c.bf16 %v920_v54, %v920_v54  ;;  %v1449_v18 = vpack.c.bf16 %v5409_v42, %v5409_v42 }
 0x216   : > { %4022 = vrot.lane.b32.xlu2 %v4016_v21, %s4658_s18 }
 0x217   : > { %1225 = vst.msk [vmem:[#allocation2 + $0x18] sm:$0xf] %vm1218_vm1, %v1160_v13 }
 0x218   : > { %1513 = vst.msk [vmem:[#allocation3 + $0x18] sm:$0xf] %vm1218_vm1, %v1449_v18 }
 0x219   : > { %v935_v59 = vpop.f32.mrf.mxu2  ;;  %v984_v63 = vpop.f32.mrf.mxu3 }
 0x21a   : > { %v1166_v41 = vpack.c.bf16 %v935_v59, %v935_v59  ;;  %v1455_v61 = vpack.c.bf16 %v984_v63, %v984_v63 }
 0x21c   : > { %1231 = vst.msk [vmem:[#allocation2 + $0x30] sm:$0xf] %vm1218_vm1, %v1166_v41  ;;  %4032 = vrot.lane.b32.xlu1 %v4031_v11, %s4660_s16  ;;  %4027 = vrot.lane.b32.xlu0 %v4031_v11, %s4659_s21  ;;  %v922_v10 = vpop.f32.mrf.mxu0  ;;  %v971_v15 = vpop.f32.mrf.mxu1 }
 0x21d   : > { %1519 = vst.msk [vmem:[#allocation3 + $0x30] sm:$0xf] %vm1218_vm1, %v1455_v61  ;;  %v1161_v9 = vpack.c.bf16 %v922_v10, %v922_v10  ;;  %v1450_v35 = vpack.c.bf16 %v971_v15, %v971_v15  ;;  %v4131_v49 = vpack.i.bf16 %v922_v10, %v920_v54  ;;  %v4136_v7 = vpack.i.bf16 %v971_v15, %v5409_v42 }
 0x21e   : > { %4037 = vrot.lane.b32.xlu2 %v4031_v11, %s4658_s18 }
 0x21f   : > { %1226 = vst.msk [vmem:[#allocation2 + $0x1c] sm:$0xf] %vm1218_vm1, %v1161_v9 }
 0x220   : > { %1514 = vst.msk [vmem:[#allocation3 + $0x1c] sm:$0xf] %vm1218_vm1, %v1450_v35 }
 0x221   : > { %v937_v53 = vpop.f32.mrf.mxu2  ;;  %v986_v17 = vpop.f32.mrf.mxu3 }
 0x222   : > { %v1167_v23 = vpack.c.bf16 %v937_v53, %v937_v53  ;;  %v1456_v37 = vpack.c.bf16 %v986_v17, %v986_v17  ;;  %v5426_v32 = vpack.i.bf16 %v986_v17, %v984_v63  ;;  %v4101_v45 = vpack.i.bf16 %v937_v53, %v935_v59 }
 0x224   : > { %1232 = vst.msk [vmem:[#allocation2 + $0x34] sm:$0xf] %vm1218_vm1, %v1167_v23  ;;  %4052 = vrot.lane.b32.xlu1 %v4051_v30, %s4658_s18  ;;  %4047 = vrot.lane.b32.xlu0 %v4051_v30, %s4660_s16 }
 0x225   : > { %1520 = vst.msk [vmem:[#allocation3 + $0x34] sm:$0xf] %vm1218_vm1, %v1456_v37 }
 0x226   : > { %4042 = vrot.lane.b32.xlu2 %v4051_v30, %s4659_s21 }
 0x229   : > { %v940_v27 = vpop.f32.mrf.mxu2  ;;  %v989_v20 = vpop.f32.mrf.mxu3 }
 0x22a   : > { %v1168_v3 = vpack.c.bf16 %v940_v27, %v940_v27  ;;  %v1457_v51 = vpack.c.bf16 %v989_v20, %v989_v20 }
 0x22c   : > { %1233 = vst.msk [vmem:[#allocation2 + $0x38] sm:$0xf] %vm1218_vm1, %v1168_v3  ;;  %4067 = vrot.lane.b32.xlu1 %v4066_v58, %s4659_s21  ;;  %4062 = vrot.lane.b32.xlu0 %v5405_v60, %s4660_s16 }
 0x22d   : > { %1521 = vst.msk [vmem:[#allocation3 + $0x38] sm:$0xf] %vm1218_vm1, %v1457_v51 }
 0x22e   : > { %4057 = vrot.lane.b32.xlu2 %v5405_v60, %s4659_s21 }
 0x231   : > { %v942_v52 = vpop.f32.mrf.mxu2  ;;  %v991_v4 = vpop.f32.mrf.mxu3 }
 0x232   : > { %v1169_v5 = vpack.c.bf16 %v942_v52, %v942_v52  ;;  %v1458_v40 = vpack.c.bf16 %v991_v4, %v991_v4  ;;  %v4156_v43 = vpack.i.bf16 %v942_v52, %v940_v27  ;;  %v4171_v33 = vpack.i.bf16 %v991_v4, %v989_v20 }
 0x234   : > { %1234 = vst.msk [vmem:[#allocation2 + $0x3c] sm:$0xf] %vm1218_vm1, %v1169_v5  ;;  %4077 = vrot.lane.b32.xlu1 %v4066_v58, %s4658_s18  ;;  %4072 = vrot.lane.b32.xlu0 %v4066_v58, %s4660_s16 }
 0x235   : > { %1522 = vst.msk [vmem:[#allocation3 + $0x3c] sm:$0xf] %vm1218_vm1, %v1458_v40 }
 0x236   : > { %4082 = vrot.lane.b32.xlu2 %v4081_v56, %s4659_s21 }
 0x23c   : > { %4092 = vrot.lane.b32.xlu1 %v4081_v56, %s4658_s18  ;;  %4087 = vrot.lane.b32.xlu0 %v4081_v56, %s4660_s16 }
 0x23e   : > { %4102 = vrot.lane.b32.xlu2 %v4101_v45, %s4660_s16 }
 0x244   : > { %4097 = vrot.lane.b32.xlu1 %v4101_v45, %s4659_s21  ;;  %4107 = vrot.lane.b32.xlu0 %v4101_v45, %s4658_s18 }
 0x246   : > { %4117 = vrot.lane.b32.xlu2 %v5426_v32, %s4660_s16 }
 0x248   : > { %v3953_v55 = vpop.permute.xlu2 %3952 }
 0x249   : > { %v3955_v48 = vunpack.i.h.bf16 %v3953_v55  ;;  %v3954_v47 = vunpack.i.l.bf16 %v3953_v55 }
 0x24b   : > { %v1171_v2 = vpack.c.bf16 %v3955_v48, %v3955_v48  ;;  %v1170_v39 = vpack.c.bf16 %v3954_v47, %v3954_v47 }
 0x24c   : > { %4112 = vrot.lane.b32.xlu1 %v5426_v32, %s4659_s21  ;;  %4132 = vrot.lane.b32.xlu0 %v4131_v49, %s4658_s18 }
 0x24d   : > { %1236 = vst.msk [vmem:[#allocation2 + $0x44] sm:$0xf] %vm1218_vm1, %v1171_v2 }
 0x24e   : > { %1235 = vst.msk [vmem:[#allocation2 + $0x40] sm:$0xf] %vm1218_vm1, %v1170_v39  ;;  %4122 = vrot.lane.b32.xlu2 %v4131_v49, %s4659_s21 }
 0x250   : > { %v3958_v50 = vpop.permute.xlu2 %3957 }
 0x251   : > { %v3960_v31 = vunpack.i.h.bf16 %v3958_v50  ;;  %v3959_v24 = vunpack.i.l.bf16 %v3958_v50 }
 0x253   : > { %v1187_v19 = vpack.c.bf16 %v3960_v31, %v3960_v31  ;;  %v1186_v44 = vpack.c.bf16 %v3959_v24, %v3959_v24 }
 0x254   : > { %4137 = vrot.lane.b32.xlu1 %v4136_v7, %s4659_s21  ;;  %4147 = vrot.lane.b32.xlu0 %v4136_v7, %s4658_s18 }
 0x255   : > { %1252 = vst.msk [vmem:[#allocation2 + $0x84] sm:$0xf] %vm1218_vm1, %v1187_v19 }
 0x256   : > { %1251 = vst.msk [vmem:[#allocation2 + $0x80] sm:$0xf] %vm1218_vm1, %v1186_v44  ;;  %4127 = vrot.lane.b32.xlu2 %v4131_v49, %s4660_s16 }
 0x258   : > { %v3973_v6 = vpop.permute.xlu2 %3972 }
 0x259   : > { %v3975_v8 = vunpack.i.h.bf16 %v3973_v6  ;;  %v3974_v12 = vunpack.i.l.bf16 %v3973_v6 }
 0x25b   : > { %v1476_v16 = vpack.c.bf16 %v3975_v8, %v3975_v8  ;;  %v1475_v34 = vpack.c.bf16 %v3974_v12, %v3974_v12 }
 0x25c   : > { %4157 = vrot.lane.b32.xlu1 %v4156_v43, %s4660_s16  ;;  %4152 = vrot.lane.b32.xlu0 %v4156_v43, %s4659_s21 }
 0x25d   : > { %1540 = vst.msk [vmem:[#allocation3 + $0x84] sm:$0xf] %vm1218_vm1, %v1476_v16 }
 0x25e   : > { %1539 = vst.msk [vmem:[#allocation3 + $0x80] sm:$0xf] %vm1218_vm1, %v1475_v34  ;;  %4142 = vrot.lane.b32.xlu2 %v4136_v7, %s4660_s16 }
 0x260   : > { %v3993_v25 = vpop.permute.xlu2 %3992  ;;  %v3963_v57 = vpop.permute.xlu0 %3962 }
 0x261   : > { %v3968_v26 = vpop.permute.xlu1 %3967  ;;  %v3995_v38 = vunpack.i.h.bf16 %v3993_v25  ;;  %v3994_v62 = vunpack.i.l.bf16 %v3993_v25  ;;  %v3965_v36 = vunpack.i.h.bf16 %v3963_v57  ;;  %v3964_v28 = vunpack.i.l.bf16 %v3963_v57 }
 0x262   : > { %v3970_v14 = vunpack.i.h.bf16 %v3968_v26  ;;  %v3969_v22 = vunpack.i.l.bf16 %v3968_v26 }
 0x263   : > { %v1211_v29 = vpack.c.bf16 %v3995_v38, %v3995_v38  ;;  %v1210_v54 = vpack.c.bf16 %v3994_v62, %v3994_v62  ;;  %v1203_v42 = vpack.c.bf16 %v3965_v36, %v3965_v36  ;;  %v1202_v13 = vpack.c.bf16 %v3964_v28, %v3964_v28 }
 0x264   : > { %4172 = vrot.lane.b32.xlu1 %v4171_v33, %s4660_s16  ;;  %4167 = vrot.lane.b32.xlu0 %v4171_v33, %s4659_s21  ;;  %v1460_v46 = vpack.c.bf16 %v3970_v14, %v3970_v14  ;;  %v1459_v21 = vpack.c.bf16 %v3969_v22, %v3969_v22 }
 0x265   : > { %1276 = vst.msk [vmem:[#allocation2 + $0xe4] sm:$0xf] %vm1218_vm1, %v1211_v29 }
 0x266   : > { %1524 = vst.msk [vmem:[#allocation3 + $0x44] sm:$0xf] %vm1218_vm1, %v1460_v46  ;;  %4162 = vrot.lane.b32.xlu2 %v4156_v43, %s4658_s18 }
 0x267   : > { %1523 = vst.msk [vmem:[#allocation3 + $0x40] sm:$0xf] %vm1218_vm1, %v1459_v21 }
 0x268   : > { %1275 = vst.msk [vmem:[#allocation2 + $0xe0] sm:$0xf] %vm1218_vm1, %v1210_v54  ;;  %v4008_v18 = vpop.permute.xlu2 %4007  ;;  %v3978_v59 = vpop.permute.xlu0 %3977 }
 0x269   : > { %1268 = vst.msk [vmem:[#allocation2 + $0xc4] sm:$0xf] %vm1218_vm1, %v1203_v42  ;;  %v4010_v63 = vunpack.i.h.bf16 %v4008_v18  ;;  %v4009_v41 = vunpack.i.l.bf16 %v4008_v18  ;;  %v3980_v61 = vunpack.i.h.bf16 %v3978_v59  ;;  %v3979_v11 = vunpack.i.l.bf16 %v3978_v59 }
 0x26a   : > { %1267 = vst.msk [vmem:[#allocation2 + $0xc0] sm:$0xf] %vm1218_vm1, %v1202_v13 }
 0x26b   : > { %v1500_v10 = vpack.c.bf16 %v4010_v63, %v4010_v63  ;;  %v1499_v15 = vpack.c.bf16 %v4009_v41, %v4009_v41  ;;  %v1492_v9 = vpack.c.bf16 %v3980_v61, %v3980_v61  ;;  %v1491_v35 = vpack.c.bf16 %v3979_v11, %v3979_v11 }
 0x26c   : > { %4177 = vrot.lane.b32.xlu1 %v5405_v60, %s4658_s18  ;;  %4182 = vrot.lane.b32.xlu0 %v5426_v32, %s4658_s18 }
 0x26d   : > { %1564 = vst.msk [vmem:[#allocation3 + $0xe4] sm:$0xf] %vm1218_vm1, %v1500_v10 }
 0x26e   : > { %1563 = vst.msk [vmem:[#allocation3 + $0xe0] sm:$0xf] %vm1218_vm1, %v1499_v15  ;;  %4187 = vrot.lane.b32.xlu2 %v4171_v33, %s4658_s18 }
 0x26f   : > { %1556 = vst.msk [vmem:[#allocation3 + $0xc4] sm:$0xf] %vm1218_vm1, %v1492_v9 }
 0x270   : > { %1555 = vst.msk [vmem:[#allocation3 + $0xc0] sm:$0xf] %vm1218_vm1, %v1491_v35  ;;  %v4023_v60 = vpop.permute.xlu2 %4022 }
 0x271   : > { %v4025_v53 = vunpack.i.h.bf16 %v4023_v60  ;;  %v4024_v17 = vunpack.i.l.bf16 %v4023_v60 }
 0x273   : > { %v1205_v37 = vpack.c.bf16 %v4025_v53, %v4025_v53  ;;  %v1204_v30 = vpack.c.bf16 %v4024_v17, %v4024_v17 }
 0x275   : > { %1270 = vst.msk [vmem:[#allocation2 + $0xcc] sm:$0xf] %vm1218_vm1, %v1205_v37 }
 0x276   : > { %v3988_v23 = vpop.permute.xlu1 %3987  ;;  %v3983_v20 = vpop.permute.xlu0 %3982  ;;  %1269 = vst.msk [vmem:[#allocation2 + $0xc8] sm:$0xf] %vm1218_vm1, %v1204_v30 }
 0x277   : > { %v3990_v32 = vunpack.i.h.bf16 %v3988_v23  ;;  %v3989_v27 = vunpack.i.l.bf16 %v3988_v23  ;;  %v3985_v3 = vunpack.i.h.bf16 %v3983_v20  ;;  %v3984_v51 = vunpack.i.l.bf16 %v3983_v20 }
 0x278   : > { %v4038_v40 = vpop.permute.xlu2 %4037 }
 0x279   : > { %v1195_v58 = vpack.c.bf16 %v3990_v32, %v3990_v32  ;;  %v1194_v52 = vpack.c.bf16 %v3989_v27, %v3989_v27  ;;  %v1179_v4 = vpack.c.bf16 %v3985_v3, %v3985_v3  ;;  %v1178_v5 = vpack.c.bf16 %v3984_v51, %v3984_v51 }
 0x27a   : > { %v4040_v56 = vunpack.i.h.bf16 %v4038_v40  ;;  %v4039_v45 = vunpack.i.l.bf16 %v4038_v40 }
 0x27b   : > { %1260 = vst.msk [vmem:[#allocation2 + $0xa4] sm:$0xf] %vm1218_vm1, %v1195_v58 }
 0x27c   : > { %1259 = vst.msk [vmem:[#allocation2 + $0xa0] sm:$0xf] %vm1218_vm1, %v1194_v52  ;;  %v1494_v55 = vpack.c.bf16 %v4040_v56, %v4040_v56  ;;  %v1493_v48 = vpack.c.bf16 %v4039_v45, %v4039_v45 }
 0x27d   : > { %1244 = vst.msk [vmem:[#allocation2 + $0x64] sm:$0xf] %vm1218_vm1, %v1179_v4 }
 0x27e   : > { %1243 = vst.msk [vmem:[#allocation2 + $0x60] sm:$0xf] %vm1218_vm1, %v1178_v5  ;;  %v4003_v49 = vpop.permute.xlu1 %4002  ;;  %v3998_v39 = vpop.permute.xlu0 %3997 }
 0x27f   : > { %v4005_v47 = vunpack.i.h.bf16 %v4003_v49  ;;  %v4004_v2 = vunpack.i.l.bf16 %v4003_v49  ;;  %v4000_v7 = vunpack.i.h.bf16 %v3998_v39  ;;  %v3999_v50 = vunpack.i.l.bf16 %v3998_v39  ;;  %1558 = vst.msk [vmem:[#allocation3 + $0xcc] sm:$0xf] %vm1218_vm1, %v1494_v55 }
 0x280   : > { %1557 = vst.msk [vmem:[#allocation3 + $0xc8] sm:$0xf] %vm1218_vm1, %v1493_v48  ;;  %v4043_v43 = vpop.permute.xlu2 %4042 }
 0x281   : > { %v1484_v31 = vpack.c.bf16 %v4005_v47, %v4005_v47  ;;  %v1483_v24 = vpack.c.bf16 %v4004_v2, %v4004_v2  ;;  %v1468_v19 = vpack.c.bf16 %v4000_v7, %v4000_v7  ;;  %v1467_v44 = vpack.c.bf16 %v3999_v50, %v3999_v50 }
 0x282   : > { %v4045_v6 = vunpack.i.h.bf16 %v4043_v43  ;;  %v4044_v8 = vunpack.i.l.bf16 %v4043_v43 }
 0x283   : > { %1548 = vst.msk [vmem:[#allocation3 + $0xa4] sm:$0xf] %vm1218_vm1, %v1484_v31 }
 0x284   : > { %1547 = vst.msk [vmem:[#allocation3 + $0xa0] sm:$0xf] %vm1218_vm1, %v1483_v24  ;;  %v1181_v16 = vpack.c.bf16 %v4045_v6, %v4045_v6  ;;  %v1180_v34 = vpack.c.bf16 %v4044_v8, %v4044_v8 }
 0x285   : > { %1532 = vst.msk [vmem:[#allocation3 + $0x64] sm:$0xf] %vm1218_vm1, %v1468_v19 }
 0x286   : > { %1531 = vst.msk [vmem:[#allocation3 + $0x60] sm:$0xf] %vm1218_vm1, %v1467_v44  ;;  %v4018_v12 = vpop.permute.xlu1 %4017  ;;  %v4013_v57 = vpop.permute.xlu0 %4012 }
 0x287   : > { %v4020_v33 = vunpack.i.h.bf16 %v4018_v12  ;;  %v4019_v25 = vunpack.i.l.bf16 %v4018_v12  ;;  %v4015_v26 = vunpack.i.h.bf16 %v4013_v57  ;;  %v4014_v38 = vunpack.i.l.bf16 %v4013_v57  ;;  %1246 = vst.msk [vmem:[#allocation2 + $0x6c] sm:$0xf] %vm1218_vm1, %v1181_v16 }
 0x288   : > { %1245 = vst.msk [vmem:[#allocation2 + $0x68] sm:$0xf] %vm1218_vm1, %v1180_v34  ;;  %v4058_v28 = vpop.permute.xlu2 %4057 }
 0x289   : > { %v1189_v62 = vpack.c.bf16 %v4020_v33, %v4020_v33  ;;  %v1188_v36 = vpack.c.bf16 %v4019_v25, %v4019_v25  ;;  %v1173_v14 = vpack.c.bf16 %v4015_v26, %v4015_v26  ;;  %v1172_v22 = vpack.c.bf16 %v4014_v38, %v4014_v38 }
 0x28a   : > { %v4060_v29 = vunpack.i.h.bf16 %v4058_v28  ;;  %v4059_v46 = vunpack.i.l.bf16 %v4058_v28 }
 0x28b   : > { %1254 = vst.msk [vmem:[#allocation2 + $0x8c] sm:$0xf] %vm1218_vm1, %v1189_v62 }
 0x28c   : > { %1253 = vst.msk [vmem:[#allocation2 + $0x88] sm:$0xf] %vm1218_vm1, %v1188_v36  ;;  %v1470_v54 = vpack.c.bf16 %v4060_v29, %v4060_v29  ;;  %v1469_v42 = vpack.c.bf16 %v4059_v46, %v4059_v46 }
 0x28d   : > { %1238 = vst.msk [vmem:[#allocation2 + $0x4c] sm:$0xf] %vm1218_vm1, %v1173_v14 }
 0x28e   : > { %1237 = vst.msk [vmem:[#allocation2 + $0x48] sm:$0xf] %vm1218_vm1, %v1172_v22  ;;  %v4033_v21 = vpop.permute.xlu1 %4032  ;;  %v4028_v59 = vpop.permute.xlu0 %4027 }
 0x28f   : > { %v4035_v13 = vunpack.i.h.bf16 %v4033_v21  ;;  %v4034_v18 = vunpack.i.l.bf16 %v4033_v21  ;;  %v4030_v63 = vunpack.i.h.bf16 %v4028_v59  ;;  %v4029_v41 = vunpack.i.l.bf16 %v4028_v59  ;;  %1534 = vst.msk [vmem:[#allocation3 + $0x6c] sm:$0xf] %vm1218_vm1, %v1470_v54 }
 0x290   : > { %1533 = vst.msk [vmem:[#allocation3 + $0x68] sm:$0xf] %vm1218_vm1, %v1469_v42  ;;  %v4083_v9 = vpop.permute.xlu2 %4082 }
 0x291   : > { %v1478_v61 = vpack.c.bf16 %v4035_v13, %v4035_v13  ;;  %v1477_v11 = vpack.c.bf16 %v4034_v18, %v4034_v18  ;;  %v1462_v10 = vpack.c.bf16 %v4030_v63, %v4030_v63  ;;  %v1461_v15 = vpack.c.bf16 %v4029_v41, %v4029_v41 }
 0x292   : > { %v4085_v35 = vunpack.i.h.bf16 %v4083_v9  ;;  %v4084_v60 = vunpack.i.l.bf16 %v4083_v9 }
 0x293   : > { %1542 = vst.msk [vmem:[#allocation3 + $0x8c] sm:$0xf] %vm1218_vm1, %v1478_v61 }
 0x294   : > { %1541 = vst.msk [vmem:[#allocation3 + $0x88] sm:$0xf] %vm1218_vm1, %v1477_v11  ;;  %v1464_v17 = vpack.c.bf16 %v4085_v35, %v4085_v35  ;;  %v1463_v23 = vpack.c.bf16 %v4084_v60, %v4084_v60 }
 0x295   : > { %1526 = vst.msk [vmem:[#allocation3 + $0x4c] sm:$0xf] %vm1218_vm1, %v1462_v10 }
 0x296   : > { %1525 = vst.msk [vmem:[#allocation3 + $0x48] sm:$0xf] %vm1218_vm1, %v1461_v15  ;;  %v4053_v53 = vpop.permute.xlu1 %4052  ;;  %v4048_v32 = vpop.permute.xlu0 %4047 }
 0x297   : > { %v4055_v37 = vunpack.i.h.bf16 %v4053_v53  ;;  %v4054_v30 = vunpack.i.l.bf16 %v4053_v53  ;;  %v4050_v27 = vunpack.i.h.bf16 %v4048_v32  ;;  %v4049_v20 = vunpack.i.l.bf16 %v4048_v32  ;;  %1528 = vst.msk [vmem:[#allocation3 + $0x54] sm:$0xf] %vm1218_vm1, %v1464_v17 }
 0x298   : > { %1527 = vst.msk [vmem:[#allocation3 + $0x50] sm:$0xf] %vm1218_vm1, %v1463_v23  ;;  %v4103_v4 = vpop.permute.xlu2 %4102 }
 0x299   : > { %v1213_v3 = vpack.c.bf16 %v4055_v37, %v4055_v37  ;;  %v1212_v51 = vpack.c.bf16 %v4054_v30, %v4054_v30  ;;  %v1197_v58 = vpack.c.bf16 %v4050_v27, %v4050_v27  ;;  %v1196_v52 = vpack.c.bf16 %v4049_v20, %v4049_v20 }
 0x29a   : > { %v4105_v5 = vunpack.i.h.bf16 %v4103_v4  ;;  %v4104_v40 = vunpack.i.l.bf16 %v4103_v4 }
 0x29b   : > { %1278 = vst.msk [vmem:[#allocation2 + $0xec] sm:$0xf] %vm1218_vm1, %v1213_v3 }
 0x29c   : > { %1277 = vst.msk [vmem:[#allocation2 + $0xe8] sm:$0xf] %vm1218_vm1, %v1212_v51  ;;  %v1199_v45 = vpack.c.bf16 %v4105_v5, %v4105_v5  ;;  %v1198_v49 = vpack.c.bf16 %v4104_v40, %v4104_v40 }
 0x29d   : > { %1262 = vst.msk [vmem:[#allocation2 + $0xac] sm:$0xf] %vm1218_vm1, %v1197_v58 }
 0x29e   : > { %1261 = vst.msk [vmem:[#allocation2 + $0xa8] sm:$0xf] %vm1218_vm1, %v1196_v52  ;;  %v4068_v56 = vpop.permute.xlu1 %4067  ;;  %v4063_v47 = vpop.permute.xlu0 %4062 }
 0x29f   : > { %v4070_v55 = vunpack.i.h.bf16 %v4068_v56  ;;  %v4069_v48 = vunpack.i.l.bf16 %v4068_v56  ;;  %v4065_v2 = vunpack.i.h.bf16 %v4063_v47  ;;  %v4064_v39 = vunpack.i.l.bf16 %v4063_v47  ;;  %1264 = vst.msk [vmem:[#allocation2 + $0xb4] sm:$0xf] %vm1218_vm1, %v1199_v45 }
 0x2a0   : > { %1263 = vst.msk [vmem:[#allocation2 + $0xb0] sm:$0xf] %vm1218_vm1, %v1198_v49  ;;  %v4118_v19 = vpop.permute.xlu2 %4117 }
 0x2a1   : > { %v1175_v7 = vpack.c.bf16 %v4070_v55, %v4070_v55  ;;  %v1174_v50 = vpack.c.bf16 %v4069_v48, %v4069_v48  ;;  %v1486_v31 = vpack.c.bf16 %v4065_v2, %v4065_v2  ;;  %v1485_v24 = vpack.c.bf16 %v4064_v39, %v4064_v39 }
 0x2a2   : > { %v4120_v44 = vunpack.i.h.bf16 %v4118_v19  ;;  %v4119_v43 = vunpack.i.l.bf16 %v4118_v19 }
 0x2a3   : > { %1240 = vst.msk [vmem:[#allocation2 + $0x54] sm:$0xf] %vm1218_vm1, %v1175_v7 }
 0x2a4   : > { %1239 = vst.msk [vmem:[#allocation2 + $0x50] sm:$0xf] %vm1218_vm1, %v1174_v50  ;;  %v1488_v8 = vpack.c.bf16 %v4120_v44, %v4120_v44  ;;  %v1487_v12 = vpack.c.bf16 %v4119_v43, %v4119_v43 }
 0x2a5   : > { %1550 = vst.msk [vmem:[#allocation3 + $0xac] sm:$0xf] %vm1218_vm1, %v1486_v31 }
 0x2a6   : > { %1549 = vst.msk [vmem:[#allocation3 + $0xa8] sm:$0xf] %vm1218_vm1, %v1485_v24  ;;  %v4078_v6 = vpop.permute.xlu1 %4077  ;;  %v4073_v33 = vpop.permute.xlu0 %4072 }
 0x2a7   : > { %v4080_v16 = vunpack.i.h.bf16 %v4078_v6  ;;  %v4079_v34 = vunpack.i.l.bf16 %v4078_v6  ;;  %v4075_v25 = vunpack.i.h.bf16 %v4073_v33  ;;  %v4074_v57 = vunpack.i.l.bf16 %v4073_v33  ;;  %1552 = vst.msk [vmem:[#allocation3 + $0xb4] sm:$0xf] %vm1218_vm1, %v1488_v8 }
 0x2a8   : > { %1551 = vst.msk [vmem:[#allocation3 + $0xb0] sm:$0xf] %vm1218_vm1, %v1487_v12  ;;  %v4123_v14 = vpop.permute.xlu2 %4122 }
 0x2a9   : > { %v1207_v26 = vpack.c.bf16 %v4080_v16, %v4080_v16  ;;  %v1206_v38 = vpack.c.bf16 %v4079_v34, %v4079_v34  ;;  %v1191_v62 = vpack.c.bf16 %v4075_v25, %v4075_v25  ;;  %v1190_v36 = vpack.c.bf16 %v4074_v57, %v4074_v57 }
 0x2aa   : > { %v4125_v22 = vunpack.i.h.bf16 %v4123_v14  ;;  %v4124_v28 = vunpack.i.l.bf16 %v4123_v14 }
 0x2ab   : > { %1272 = vst.msk [vmem:[#allocation2 + $0xd4] sm:$0xf] %vm1218_vm1, %v1207_v26 }
 0x2ac   : > { %1271 = vst.msk [vmem:[#allocation2 + $0xd0] sm:$0xf] %vm1218_vm1, %v1206_v38  ;;  %v1177_v46 = vpack.c.bf16 %v4125_v22, %v4125_v22  ;;  %v1176_v21 = vpack.c.bf16 %v4124_v28, %v4124_v28 }
 0x2ad   : > { %1256 = vst.msk [vmem:[#allocation2 + $0x94] sm:$0xf] %vm1218_vm1, %v1191_v62 }
 0x2ae   : > { %1255 = vst.msk [vmem:[#allocation2 + $0x90] sm:$0xf] %vm1218_vm1, %v1190_v36  ;;  %v4093_v29 = vpop.permute.xlu1 %4092  ;;  %v4088_v13 = vpop.permute.xlu0 %4087 }
 0x2af   : > { %v4095_v54 = vunpack.i.h.bf16 %v4093_v29  ;;  %v4094_v42 = vunpack.i.l.bf16 %v4093_v29  ;;  %v4090_v18 = vunpack.i.h.bf16 %v4088_v13  ;;  %v4089_v59 = vunpack.i.l.bf16 %v4088_v13  ;;  %1242 = vst.msk [vmem:[#allocation2 + $0x5c] sm:$0xf] %vm1218_vm1, %v1177_v46 }
 0x2b0   : > { %1241 = vst.msk [vmem:[#allocation2 + $0x58] sm:$0xf] %vm1218_vm1, %v1176_v21  ;;  %v4128_v10 = vpop.permute.xlu2 %4127 }
 0x2b1   : > { %v1496_v63 = vpack.c.bf16 %v4095_v54, %v4095_v54  ;;  %v1495_v41 = vpack.c.bf16 %v4094_v42, %v4094_v42  ;;  %v1480_v61 = vpack.c.bf16 %v4090_v18, %v4090_v18  ;;  %v1479_v11 = vpack.c.bf16 %v4089_v59, %v4089_v59 }
 0x2b2   : > { %v4130_v15 = vunpack.i.h.bf16 %v4128_v10  ;;  %v4129_v9 = vunpack.i.l.bf16 %v4128_v10 }
 0x2b3   : > { %1560 = vst.msk [vmem:[#allocation3 + $0xd4] sm:$0xf] %vm1218_vm1, %v1496_v63 }
 0x2b4   : > { %1559 = vst.msk [vmem:[#allocation3 + $0xd0] sm:$0xf] %vm1218_vm1, %v1495_v41  ;;  %v1193_v60 = vpack.c.bf16 %v4130_v15, %v4130_v15  ;;  %v1192_v53 = vpack.c.bf16 %v4129_v9, %v4129_v9 }
 0x2b5   : > { %1544 = vst.msk [vmem:[#allocation3 + $0x94] sm:$0xf] %vm1218_vm1, %v1480_v61 }
 0x2b6   : > { %1543 = vst.msk [vmem:[#allocation3 + $0x90] sm:$0xf] %vm1218_vm1, %v1479_v11  ;;  %v4098_v35 = vpop.permute.xlu1 %4097  ;;  %v4108_v37 = vpop.permute.xlu0 %4107 }
 0x2b7   : > { %v4100_v17 = vunpack.i.h.bf16 %v4098_v35  ;;  %v4099_v23 = vunpack.i.l.bf16 %v4098_v35  ;;  %v4110_v30 = vunpack.i.h.bf16 %v4108_v37  ;;  %v4109_v32 = vunpack.i.l.bf16 %v4108_v37  ;;  %1258 = vst.msk [vmem:[#allocation2 + $0x9c] sm:$0xf] %vm1218_vm1, %v1193_v60 }
 0x2b8   : > { %1257 = vst.msk [vmem:[#allocation2 + $0x98] sm:$0xf] %vm1218_vm1, %v1192_v53  ;;  %v4143_v58 = vpop.permute.xlu2 %4142 }
 0x2b9   : > { %v1183_v27 = vpack.c.bf16 %v4100_v17, %v4100_v17  ;;  %v1182_v20 = vpack.c.bf16 %v4099_v23, %v4099_v23  ;;  %v1215_v3 = vpack.c.bf16 %v4110_v30, %v4110_v30  ;;  %v1214_v51 = vpack.c.bf16 %v4109_v32, %v4109_v32 }
 0x2ba   : > { %v4145_v52 = vunpack.i.h.bf16 %v4143_v58  ;;  %v4144_v4 = vunpack.i.l.bf16 %v4143_v58 }
 0x2bb   : > { %1248 = vst.msk [vmem:[#allocation2 + $0x74] sm:$0xf] %vm1218_vm1, %v1183_v27 }
 0x2bc   : > { %1247 = vst.msk [vmem:[#allocation2 + $0x70] sm:$0xf] %vm1218_vm1, %v1182_v20  ;;  %v1482_v40 = vpack.c.bf16 %v4145_v52, %v4145_v52  ;;  %v1481_v56 = vpack.c.bf16 %v4144_v4, %v4144_v4 }
 0x2bd   : > { %1280 = vst.msk [vmem:[#allocation2 + $0xf4] sm:$0xf] %vm1218_vm1, %v1215_v3 }
 0x2be   : > { %1279 = vst.msk [vmem:[#allocation2 + $0xf0] sm:$0xf] %vm1218_vm1, %v1214_v51  ;;  %v4113_v5 = vpop.permute.xlu1 %4112  ;;  %v4133_v55 = vpop.permute.xlu0 %4132 }
 0x2bf   : > { %v4115_v45 = vunpack.i.h.bf16 %v4113_v5  ;;  %v4114_v49 = vunpack.i.l.bf16 %v4113_v5  ;;  %v4135_v48 = vunpack.i.h.bf16 %v4133_v55  ;;  %v4134_v47 = vunpack.i.l.bf16 %v4133_v55  ;;  %1546 = vst.msk [vmem:[#allocation3 + $0x9c] sm:$0xf] %vm1218_vm1, %v1482_v40 }
 0x2c0   : > { %1545 = vst.msk [vmem:[#allocation3 + $0x98] sm:$0xf] %vm1218_vm1, %v1481_v56  ;;  %v4163_v31 = vpop.permute.xlu2 %4162 }
 0x2c1   : > { %v1472_v2 = vpack.c.bf16 %v4115_v45, %v4115_v45  ;;  %v1471_v39 = vpack.c.bf16 %v4114_v49, %v4114_v49  ;;  %v1209_v7 = vpack.c.bf16 %v4135_v48, %v4135_v48  ;;  %v1208_v50 = vpack.c.bf16 %v4134_v47, %v4134_v47 }
 0x2c2   : > { %v4165_v24 = vunpack.i.h.bf16 %v4163_v31  ;;  %v4164_v19 = vunpack.i.l.bf16 %v4163_v31 }
 0x2c3   : > { %1536 = vst.msk [vmem:[#allocation3 + $0x74] sm:$0xf] %vm1218_vm1, %v1472_v2 }
 0x2c4   : > { %1535 = vst.msk [vmem:[#allocation3 + $0x70] sm:$0xf] %vm1218_vm1, %v1471_v39  ;;  %v1217_v43 = vpack.c.bf16 %v4165_v24, %v4165_v24  ;;  %v1216_v6 = vpack.c.bf16 %v4164_v19, %v4164_v19 }
 0x2c5   : > { %1274 = vst.msk [vmem:[#allocation2 + $0xdc] sm:$0xf] %vm1218_vm1, %v1209_v7 }
 0x2c6   : > { %1273 = vst.msk [vmem:[#allocation2 + $0xd8] sm:$0xf] %vm1218_vm1, %v1208_v50  ;;  %v4138_v44 = vpop.permute.xlu1 %4137  ;;  %v4148_v16 = vpop.permute.xlu0 %4147 }
 0x2c7   : > { %v4140_v8 = vunpack.i.h.bf16 %v4138_v44  ;;  %v4139_v12 = vunpack.i.l.bf16 %v4138_v44  ;;  %v4150_v34 = vunpack.i.h.bf16 %v4148_v16  ;;  %v4149_v33 = vunpack.i.l.bf16 %v4148_v16  ;;  %1282 = vst.msk [vmem:[#allocation2 + $0xfc] sm:$0xf] %vm1218_vm1, %v1217_v43 }
 0x2c8   : > { %1281 = vst.msk [vmem:[#allocation2 + $0xf8] sm:$0xf] %vm1218_vm1, %v1216_v6  ;;  %v4188_v62 = vpop.permute.xlu2 %4187 }
 0x2c9   : > { %v1466_v25 = vpack.c.bf16 %v4140_v8, %v4140_v8  ;;  %v1465_v57 = vpack.c.bf16 %v4139_v12, %v4139_v12  ;;  %v1498_v26 = vpack.c.bf16 %v4150_v34, %v4150_v34  ;;  %v1497_v38 = vpack.c.bf16 %v4149_v33, %v4149_v33 }
 0x2ca   : > { %v4190_v36 = vunpack.i.h.bf16 %v4188_v62  ;;  %v4189_v14 = vunpack.i.l.bf16 %v4188_v62 }
 0x2cb   : > { %1530 = vst.msk [vmem:[#allocation3 + $0x5c] sm:$0xf] %vm1218_vm1, %v1466_v25 }
 0x2cc   : > { %1529 = vst.msk [vmem:[#allocation3 + $0x58] sm:$0xf] %vm1218_vm1, %v1465_v57  ;;  %v1506_v28 = vpack.c.bf16 %v4190_v36, %v4190_v36  ;;  %v1505_v29 = vpack.c.bf16 %v4189_v14, %v4189_v14 }
 0x2cd   : > { %1562 = vst.msk [vmem:[#allocation3 + $0xdc] sm:$0xf] %vm1218_vm1, %v1498_v26 }
 0x2ce   : > { %1561 = vst.msk [vmem:[#allocation3 + $0xd8] sm:$0xf] %vm1218_vm1, %v1497_v38  ;;  %v4158_v22 = vpop.permute.xlu1 %4157  ;;  %v4153_v54 = vpop.permute.xlu0 %4152 }
 0x2cf   : > { %v4160_v46 = vunpack.i.h.bf16 %v4158_v22  ;;  %v4159_v21 = vunpack.i.l.bf16 %v4158_v22  ;;  %v4155_v42 = vunpack.i.h.bf16 %v4153_v54  ;;  %v4154_v13 = vunpack.i.l.bf16 %v4153_v54  ;;  %1570 = vst.msk [vmem:[#allocation3 + $0xfc] sm:$0xf] %vm1218_vm1, %v1506_v28 }
 0x2d0   : > { %1569 = vst.msk [vmem:[#allocation3 + $0xf8] sm:$0xf] %vm1218_vm1, %v1505_v29 }
 0x2d1   : > { %v1201_v18 = vpack.c.bf16 %v4160_v46, %v4160_v46  ;;  %v1200_v59 = vpack.c.bf16 %v4159_v21, %v4159_v21  ;;  %v1185_v63 = vpack.c.bf16 %v4155_v42, %v4155_v42  ;;  %v1184_v41 = vpack.c.bf16 %v4154_v13, %v4154_v13 }
 0x2d3   : > { %1266 = vst.msk [vmem:[#allocation2 + $0xbc] sm:$0xf] %vm1218_vm1, %v1201_v18 }
 0x2d4   : > { %1265 = vst.msk [vmem:[#allocation2 + $0xb8] sm:$0xf] %vm1218_vm1, %v1200_v59 }
 0x2d5   : > { %1250 = vst.msk [vmem:[#allocation2 + $0x7c] sm:$0xf] %vm1218_vm1, %v1185_v63 }
 0x2d6   : > { %1249 = vst.msk [vmem:[#allocation2 + $0x78] sm:$0xf] %vm1218_vm1, %v1184_v41  ;;  %v4173_v61 = vpop.permute.xlu1 %4172  ;;  %v4168_v15 = vpop.permute.xlu0 %4167 }
 0x2d7   : > { %v4175_v11 = vunpack.i.h.bf16 %v4173_v61  ;;  %v4174_v10 = vunpack.i.l.bf16 %v4173_v61  ;;  %v4170_v9 = vunpack.i.h.bf16 %v4168_v15  ;;  %v4169_v35 = vunpack.i.l.bf16 %v4168_v15 }
 0x2d9   : > { %v1490_v60 = vpack.c.bf16 %v4175_v11, %v4175_v11  ;;  %v1489_v53 = vpack.c.bf16 %v4174_v10, %v4174_v10  ;;  %v1474_v17 = vpack.c.bf16 %v4170_v9, %v4170_v9  ;;  %v1473_v23 = vpack.c.bf16 %v4169_v35, %v4169_v35 }
 0x2db   : > { %1554 = vst.msk [vmem:[#allocation3 + $0xbc] sm:$0xf] %vm1218_vm1, %v1490_v60 }
 0x2dc   : > { %1553 = vst.msk [vmem:[#allocation3 + $0xb8] sm:$0xf] %vm1218_vm1, %v1489_v53 }
 0x2dd   : > { %1538 = vst.msk [vmem:[#allocation3 + $0x7c] sm:$0xf] %vm1218_vm1, %v1474_v17 }
 0x2de   : > { %1537 = vst.msk [vmem:[#allocation3 + $0x78] sm:$0xf] %vm1218_vm1, %v1473_v23  ;;  %v4178_v37 = vpop.permute.xlu1 %4177  ;;  %v4183_v27 = vpop.permute.xlu0 %4182 }
 0x2df   : > { %v4180_v30 = vunpack.i.h.bf16 %v4178_v37  ;;  %v4179_v32 = vunpack.i.l.bf16 %v4178_v37  ;;  %v4185_v20 = vunpack.i.h.bf16 %v4183_v27  ;;  %v4184_v3 = vunpack.i.l.bf16 %v4183_v27 }
 0x2e1   : > { %v1502_v51 = vpack.c.bf16 %v4180_v30, %v4180_v30  ;;  %v1501_v58 = vpack.c.bf16 %v4179_v32, %v4179_v32  ;;  %v1504_v52 = vpack.c.bf16 %v4185_v20, %v4185_v20  ;;  %v1503_v4 = vpack.c.bf16 %v4184_v3, %v4184_v3 }
 0x2e3   : > { %1566 = vst.msk [vmem:[#allocation3 + $0xec] sm:$0xf] %vm1218_vm1, %v1502_v51 }
 0x2e4   : > { %1565 = vst.msk [vmem:[#allocation3 + $0xe8] sm:$0xf] %vm1218_vm1, %v1501_v58 }
 0x2e5   : > { %1568 = vst.msk [vmem:[#allocation3 + $0xf4] sm:$0xf] %vm1218_vm1, %v1504_v52 }
 0x2e6   : > { %1567 = vst.msk [vmem:[#allocation3 + $0xf0] sm:$0xf] %vm1218_vm1, %v1503_v4 }
 0x2e7 PF: > { %s3296_s7 = sshll.u32 %s4629_s11, 5  ;;  %v4661_v49 = vmov 128.0   ;;  %v3327_v62 = vld [vmem:[#allocation9 + $0xa8] sm:$0xf]  ;;  %v3687_v36 = vld [vmem:[#allocation9 + $0xb0] sm:$0xf0] }
 0x2e8   : > { %s5570_s30 = scalar_lea.vmem %s4863_s6, %s3296_s7 [#allocation4]  ;;  %4287 = vrcp.f32 %v4661_v49  ;;  %v3328_v14 = vor.u32 %v3687_v36, %v3327_v62  ;;  %v3323_v22 = vld [vmem:[#allocation9 + $0x90] sm:$0xf]  ;;  %v3686_v28 = vld [vmem:[#allocation9 + $0x98] sm:$0xf0]  ;;  %v3319_v46 = vld [vmem:[#allocation9 + $0x78] sm:$0xf] }
 0x2e9   : > { %v1575_v5 = vld [vmem:[%s5570_s30 + $0x10] sm:$0xff]  ;;  %v1573_v40 = vld [vmem:[%s5570_s30] sm:$0xff]  ;;  %v1576_v56 = vld [vmem:[%s5570_s30 + $0x18] sm:$0xff]  ;;  %v3324_v29 = vor.u32 %v3686_v28, %v3323_v22  ;;  %vm1933_vm6 = vcmask 261120   ;;  %v1665_v62 = vperm.slane %v4880_v0, 0  ;;  %s4662_s1 = smov 96  }
 0x2ea   : > { %1581 = vadd.xlane.f32.xlu1 %v1575_v5  ;;  %1577 = vadd.xlane.f32.xlu0 %v1573_v40  ;;  %v1574_v45 = vld [vmem:[%s5570_s30 + $0x8] sm:$0xff]  ;;  %v3315_v42 = vld [vmem:[#allocation9 + $0x60] sm:$0xf]  ;;  %v3683_v63 = vld [vmem:[#allocation9 + $0x50] sm:$0xf0]  ;;  %s4663_s27 = smov 64  }
 0x2eb   : > { %1744 = vmatpush.bf16.msra.mxu0 %v3328_v14  ;;  %v3685_v21 = vld [vmem:[#allocation9 + $0x80] sm:$0xf0]  ;;  %v3684_v13 = vld [vmem:[#allocation9 + $0x68] sm:$0xf0]  ;;  %v3311_v59 = vld [vmem:[#allocation9 + $0x48] sm:$0xf] }
 0x2ec   : > { %v3320_v54 = vor.u32 %v3685_v21, %v3319_v46  ;;  %v3316_v18 = vor.u32 %v3684_v13, %v3315_v42  ;;  %v3312_v41 = vor.u32 %v3683_v63, %v3311_v59  ;;  %v3307_v61 = vld [vmem:[#allocation9 + $0x30] sm:$0xf]  ;;  %v3682_v11 = vld [vmem:[#allocation9 + $0x38] sm:$0xf0]  ;;  %v3303_v15 = vld [vmem:[#allocation9 + $0x18] sm:$0xf] }
 0x2ed   : > { %v3308_v10 = vor.u32 %v3682_v11, %v3307_v61  ;;  %v3681_v9 = vld [vmem:[#allocation9 + $0x20] sm:$0xf0]  ;;  %v3299_v60 = vld [vmem:[#allocation9] sm:$0xf]  ;;  %v3680_v53 = vld [vmem:[#allocation9 + $0x8] sm:$0xf0] }
 0x2ee   : > { %v4288_v55 = vpop.eup %4287  ;;  %v3304_v35 = vor.u32 %v3681_v9, %v3303_v15  ;;  %v3300_v30 = vor.u32 %v3680_v53, %v3299_v60  ;;  %v3694_v36 = vld [vmem:[#allocation2 + $0x30] sm:$0xff]  ;;  %v3693_v63 = vld [vmem:[#allocation2 + $0x28] sm:$0xff]  ;;  %v3692_v9 = vld [vmem:[#allocation2 + $0x20] sm:$0xff]  ;;  %s4664_s24 = smov 32   ;;  %vm2872_vm0 = vcmask 523264   ;;  %vm2877_vm1 = vcmask 785408  }
 0x2ef   : > { %v1586_v48 = vmul.f32 128.0, %v4288_v55  ;;  %vm1590_vm2 = vweird.f32 %v4288_v55  ;;  %1745 = vmatpush.bf16.msra.mxu0 %v3324_v29  ;;  %v1959_v42 = vsel %vm1933_vm6, %v3694_v36, 0  ;;  %v1953_v53 = vsel %vm1933_vm6, %v3692_v9, 0  ;;  %v3708_v36 = vld [vmem:[#allocation2 + $0xa0] sm:$0xff]  ;;  %s5897_s4 = sld [smem:[#allocation19_spill]]  ;;  %s3658_s12 = sshll.u32 %s4629_s11, 2 }
 0x2f0   : > { %s5898_s6 = sld [smem:[#allocation29_spill]]  ;;  %s3069_s11 = scalar_lea.sflag [#allocation6], %s401_s3 }
 0x2f1   : > { %v1587_v47 = vsub.f32 1.0, %v1586_v48  ;;  %s5899_s7 = sld [smem:[#allocation30_spill]] }
 0x2f2   : > { %1583 = vadd.xlane.f32.xlu1 %v1576_v56  ;;  %1579 = vadd.xlane.f32.xlu0 %v1574_v45 }
 0x2f3   : > { %v1588_v2 = vmul.f32 %v4288_v55, %v1587_v47  ;;  %1746 = vmatpush.bf16.msra.mxu0 %v3320_v54  ;;  %v1672_v54 = vperm.slane %v4885_v1, 0  ;;  %v1956_v1 = vsel %vm1933_vm6, %v3693_v63, 0 }
 0x2f5   : > { %v1589_v39 = vadd.f32 %v4288_v55, %v1588_v2  ;;  %s3659_s13 = sshll.u32 %s5897_s4, 4 }
 0x2f6   : > { %s3080_s19 = sadd.s32 %s3659_s13, %s3658_s12 }
 0x2f7   : > { %v5576_v7 = vsel %vm1590_vm2, %v4288_v55, %v1589_v39  ;;  %1747 = vmatpush.bf16.msra.mxu0 %v3316_v18  ;;  %s3660_s18 = sshll.u32 %s3080_s19, 3 }
 0x2fb   : > { %1748 = vmatpush.bf16.msra.mxu0 %v3312_v41 }
 0x2ff   : > { %1749 = vmatpush.bf16.msra.mxu0 %v3308_v10 }
 0x303   : > { %1750 = vmatpush.bf16.msra.mxu0 %v3304_v35 }
 0x307   : > { %1751 = vmatpush.bf16.msra.mxu0 %v3300_v30 }
 0x35d   : > { %v1582_v50 = vpop.xlane.xlu1 %1581  ;;  %v1578_v31 = vpop.xlane.xlu0 %1577 }
 0x35e   : > { %v1594_v24 = vmul.f32 %v5576_v7, %v1582_v50  ;;  %v1592_v19 = vmul.f32 %v5576_v7, %v1578_v31 }
 0x360   : > { %v5580_v44 = vsub.f32 %v1575_v5, %v1594_v24  ;;  %v5582_v43 = vsub.f32 %v1573_v40, %v1592_v19 }
 0x362   : > { %v1602_v6 = vmul.f32 %v5580_v44, %v5580_v44  ;;  %v1600_v8 = vmul.f32 %v5582_v43, %v5582_v43 }
 0x364   : > { %1608 = vadd.xlane.f32.xlu0 %v1602_v6  ;;  %1604 = vadd.xlane.f32.xlu2 %v1600_v8  ;;  %v3695_v6 = vld [vmem:[#allocation2 + $0x38] sm:$0xff] }
 0x365   : > { %v1584_v12 = vpop.xlane.xlu1 %1583  ;;  %v1580_v16 = vpop.xlane.xlu0 %1579 }
 0x366   : > { %v1595_v34 = vmul.f32 %v5576_v7, %v1584_v12  ;;  %v1593_v33 = vmul.f32 %v5576_v7, %v1580_v16 }
 0x368   : > { %v5590_v25 = vsub.f32 %v1576_v56, %v1595_v34  ;;  %v5592_v57 = vsub.f32 %v1574_v45, %v1593_v33  ;;  %v1962_v34 = vsel %vm1933_vm6, %v3695_v6, 0 }
 0x369   : > { %1964 = vmatpush.bf16.xpose.msra.mxu1 %v1962_v34  ;;  %v3701_v34 = vld [vmem:[#allocation2 + $0x68] sm:$0xff] }
 0x36a   : > { %v1603_v26 = vmul.f32 %v5590_v25, %v5590_v25  ;;  %v1601_v38 = vmul.f32 %v5592_v57, %v5592_v57 }
 0x36c   : > { %1610 = vadd.xlane.f32.xlu1 %v1603_v26  ;;  %1606 = vadd.xlane.f32.xlu2 %v1601_v38 }
 0x371   : > { %1965 = vmatpush.bf16.xpose.msra.mxu1 %v1959_v42 }
 0x379   : > { %1966 = vmatpush.bf16.xpose.msra.mxu1 %v1956_v1  ;;  %v3714_v1 = vld [vmem:[#allocation2 + $0xd0] sm:$0xff] }
 0x381   : > { %1967 = vmatpush.bf16.xpose.msra.mxu1 %v1953_v53  ;;  %v3713_v53 = vld [vmem:[#allocation2 + $0xc8] sm:$0xff] }
 0x3d7   : > { %v1605_v17 = vpop.xlane.xlu2 %1604  ;;  %v1609_v37 = vpop.xlane.xlu0 %1608 }
 0x3d8   : > { %v1612_v23 = vmul.f32 %v1605_v17, %v5576_v7  ;;  %v1614_v27 = vmul.f32 %v1609_v37, %v5576_v7  ;;  %v3691_v37 = vld [vmem:[#allocation2 + $0x18] sm:$0xff] }
 0x3da   : > { %v1616_v32 = vadd.f32 1e-05, %v1612_v23  ;;  %v5600_v20 = vadd.f32 1e-05, %v1614_v27  ;;  %v3690_v27 = vld [vmem:[#allocation2 + $0x10] sm:$0xff] }
 0x3dc   : > { %4289 = vrsqrt.f32 %v1616_v32  ;;  %vm1626_vm4 = vweird.f32 %v1616_v32  ;;  %vm1646_vm12 = vweird.f32 %v5600_v20 }
 0x3dd   : > { %4291 = vrsqrt.f32 %v5600_v20 }
 0x3df   : > { %v1611_v3 = vpop.xlane.xlu1 %1610  ;;  %v1607_v51 = vpop.xlane.xlu2 %1606 }
 0x3e0   : > { %v1615_v58 = vmul.f32 %v1611_v3, %v5576_v7  ;;  %v1613_v52 = vmul.f32 %v1607_v51, %v5576_v7  ;;  %v3688_v3 = vld [vmem:[#allocation2] sm:$0xff] }
 0x3e1   : > { %v1941_v51 = vsel %vm1933_vm6, %v3688_v3, 0  ;;  %v3696_v3 = vld [vmem:[#allocation2 + $0x40] sm:$0xff] }
 0x3e2   : > { %v4290_v4 = vpop.eup %4289  ;;  %v1619_v5 = vadd.f32 1e-05, %v1615_v58  ;;  %v1617_v40 = vadd.f32 1e-05, %v1613_v52  ;;  %v3711_v58 = vld [vmem:[#allocation2 + $0xb8] sm:$0xff] }
 0x3e3   : > { %v1621_v56 = vmul.f32 %v4290_v4, %v1616_v32  ;;  %v4292_v55 = vpop.eup %4291  ;;  %vm1627_vm3 = vweird.f32 %v4290_v4  ;;  %v1950_v32 = vsel %vm1933_vm6, %v3691_v37, 0  ;;  %v3719_v52 = vld [vmem:[#allocation2 + $0xf8] sm:$0xff]  ;;  %v2241_v37 = vsel %vm1933_vm6, %v3713_v53, 0 }
 0x3e4   : > { %4293 = vrsqrt.f32 %v1619_v5  ;;  %v1641_v31 = vmul.f32 %v4292_v55, %v5600_v20  ;;  %vm1628_vm5 = vmor %vm1626_vm4, %vm1627_vm3  ;;  %vm1636_vm8 = vweird.f32 %v1617_v40  ;;  %vm1656_vm10 = vweird.f32 %v1619_v5  ;;  %1968 = vmatpush.bf16.xpose.msra.mxu1 %v1950_v32  ;;  %v3689_v20 = vld [vmem:[#allocation2 + $0x8] sm:$0xff]  ;;  %v3712_v32 = vld [vmem:[#allocation2 + $0xc0] sm:$0xff] }
 0x3e5   : > { %v1622_v45 = vmul.f32 %v4290_v4, %v1621_v56  ;;  %4295 = vrsqrt.f32 %v1617_v40  ;;  %vm1647_vm13 = vweird.f32 %v4292_v55  ;;  %v2259_v56 = vsel %vm1933_vm6, %v3719_v52, 0 }
 0x3e6   : > { %v1642_v8 = vmul.f32 %v4292_v55, %v1641_v31  ;;  %vm1648_vm15 = vmor %vm1646_vm12, %vm1647_vm13  ;;  %2261 = vmatpush.bf16.xpose.msrb.mxu0 %v2259_v56 }
 0x3e7   : > { %v1623_v49 = vmul.f32 0.5, %v1622_v45 }
 0x3e8   : > { %v1643_v14 = vmul.f32 0.5, %v1642_v8  ;;  %v3709_v8 = vld [vmem:[#allocation2 + $0xa8] sm:$0xff] }
 0x3e9   : > { %v1624_v48 = vsub.f32 1.5, %v1623_v49  ;;  %v3710_v49 = vld [vmem:[#allocation2 + $0xb0] sm:$0xff] }
 0x3ea   : > { %v4294_v47 = vpop.eup %4293  ;;  %v1644_v13 = vsub.f32 1.5, %v1643_v14  ;;  %v3716_v14 = vld [vmem:[#allocation2 + $0xe0] sm:$0xff] }
 0x3eb   : > { %v4296_v2 = vpop.eup %4295  ;;  %v1651_v39 = vmul.f32 %v4294_v47, %v1619_v5  ;;  %v1625_v50 = vmul.f32 %v4290_v4, %v1624_v48  ;;  %vm1657_vm11 = vweird.f32 %v4294_v47  ;;  %v3703_v5 = vld [vmem:[#allocation2 + $0x78] sm:$0xff]  ;;  %v3702_v48 = vld [vmem:[#allocation2 + $0x70] sm:$0xff] }
 0x3ec   : > { %v1631_v7 = vmul.f32 %v4296_v2, %v1617_v40  ;;  %vm1637_vm7 = vweird.f32 %v4296_v2  ;;  %vm1658_vm14 = vmor %vm1656_vm10, %vm1657_vm11  ;;  %v1645_v41 = vmul.f32 %v4292_v55, %v1644_v13  ;;  %v2160_v40 = vsel %vm1933_vm6, %v3711_v58, 0 }
 0x3ed   : > { %v1652_v24 = vmul.f32 %v4294_v47, %v1651_v39  ;;  %v1629_v16 = vsel %vm1628_vm5, %v4290_v4, %v1625_v50  ;;  %vm1638_vm9 = vmor %vm1636_vm8, %vm1637_vm7  ;;  %2162 = vmatpush.bf16.xpose.msra.mxu3 %v2160_v40  ;;  %v2061_v45 = vsel %vm1933_vm6, %v3703_v5, 0 }
 0x3ee   : > { %v1632_v19 = vmul.f32 %v4296_v2, %v1631_v7  ;;  %v1660_v38 = vmul.f32 %v1629_v16, %v5582_v43  ;;  %v1649_v11 = vsel %vm1648_vm15, %v4292_v55, %v1645_v41  ;;  %v3718_v55 = vld [vmem:[#allocation2 + $0xf0] sm:$0xff]  ;;  %2063 = vmatpush.bf16.xpose.msra.mxu2 %v2061_v45 }
 0x3ef   : > { %v1653_v33 = vmul.f32 0.5, %v1652_v24  ;;  %v1662_v15 = vmul.f32 %v1649_v11, %v5580_v44  ;;  %v1944_v44 = vsel %vm1933_vm6, %v3689_v20, 0  ;;  %v2256_v39 = vsel %vm1933_vm6, %v3718_v55, 0  ;;  %v3697_v20 = vld [vmem:[#allocation2 + $0x48] sm:$0xff] }
 0x3f0   : > { %v1633_v12 = vmul.f32 0.5, %v1632_v19  ;;  %v1667_v21 = vmul.f32 %v1665_v62, %v1660_v38  ;;  %v2058_v24 = vsel %vm1933_vm6, %v3702_v48, 0  ;;  %2262 = vmatpush.bf16.xpose.msrb.mxu0 %v2256_v39 }
 0x3f1   : > { %v1654_v28 = vsub.f32 1.5, %v1653_v33  ;;  %v1669_v60 = vmul.f32 %v1665_v62, %v1662_v15  ;;  %v2154_v33 = vsel %vm1933_vm6, %v3709_v8, 0  ;;  %v3705_v15 = vld [vmem:[#allocation2 + $0x88] sm:$0xff] }
 0x3f2   : > { %v1634_v26 = vsub.f32 1.5, %v1633_v12  ;;  %v1674_v18 = vadd.f32 %v1672_v54, %v1667_v21  ;;  %v3717_v12 = vld [vmem:[#allocation2 + $0xe8] sm:$0xff]  ;;  %v2142_v9 = vsel %vm1933_vm6, %v3705_v15, 0 }
 0x3f3   : > { %v1655_v0 = vmul.f32 %v4294_v47, %v1654_v28  ;;  %v1676_v23 = vadd.f32 %v1672_v54, %v1669_v60  ;;  %v3704_v60 = vld [vmem:[#allocation2 + $0x80] sm:$0xff] }
 0x3f4   : > { %v1635_v22 = vmul.f32 %v4296_v2, %v1634_v26  ;;  %v2253_v26 = vsel %vm1933_vm6, %v3717_v12, 0 }
 0x3f5   : > { %v1659_v61 = vsel %vm1658_vm14, %v4294_v47, %v1655_v0 }
 0x3f6   : > { %v1639_v29 = vsel %vm1638_vm9, %v4296_v2, %v1635_v22  ;;  %v1663_v10 = vmul.f32 %v1659_v61, %v5590_v25  ;;  %v1947_v25 = vsel %vm1933_vm6, %v3690_v27, 0  ;;  %v2157_v2 = vsel %vm1933_vm6, %v3710_v49, 0  ;;  %2064 = vmatpush.bf16.xpose.msra.mxu2 %v2058_v24  ;;  %v3700_v22 = vld [vmem:[#allocation2 + $0x60] sm:$0xff]  ;;  %v3706_v61 = vld [vmem:[#allocation2 + $0x90] sm:$0xff] }
 0x3f7   : > { %v1661_v46 = vmul.f32 %v1639_v29, %v5592_v57  ;;  %1969 = vmatpush.bf16.xpose.msra.mxu1 %v1947_v25  ;;  %2163 = vmatpush.bf16.xpose.msra.mxu3 %v2157_v2  ;;  %v2151_v29 = vsel %vm1933_vm6, %v3708_v36, 0  ;;  %v2145_v11 = vsel %vm1933_vm6, %v3706_v61, 0  ;;  %v2238_v25 = vsel %vm1933_vm6, %v3712_v32, 0 }
 0x3f8   : > { %v1670_v35 = vmul.f32 %v1665_v62, %v1663_v10  ;;  %2263 = vmatpush.bf16.xpose.msrb.mxu0 %v2253_v26  ;;  %v2244_v10 = vsel %vm1933_vm6, %v3714_v1, 0 }
 0x3f9   : > { %v1668_v43 = vmul.f32 %v1665_v62, %v1661_v46  ;;  %v2055_v62 = vsel %vm1933_vm6, %v3701_v34, 0  ;;  %v2250_v46 = vsel %vm1933_vm6, %v3716_v14, 0 }
 0x3fa   : > { %v1677_v17 = vadd.f32 %v1672_v54, %v1670_v35  ;;  %v3699_v35 = vld [vmem:[#allocation2 + $0x58] sm:$0xff] }
 0x3fb   : > { %v1675_v59 = vadd.f32 %v1672_v54, %v1668_v43  ;;  %v2052_v54 = vsel %vm1933_vm6, %v3700_v22, 0 }
 0x3fc   : > { %v1679_v30 = vpack.c.bf16 %v1677_v17, %v1676_v23  ;;  %v2049_v17 = vsel %vm1933_vm6, %v3699_v35, 0  ;;  %v2139_v23 = vsel %vm1933_vm6, %v3704_v60, 0 }
 0x3fd   : > { %v1678_v57 = vpack.c.bf16 %v1675_v59, %v1674_v18  ;;  %v3707_v18 = vld [vmem:[#allocation2 + $0x98] sm:$0xff] }
 0x3fe   : > { %2065 = vmatpush.bf16.xpose.msra.mxu2 %v2055_v62  ;;  %v3715_v59 = vld [vmem:[#allocation2 + $0xd8] sm:$0xff]  ;;  %v2148_v41 = vsel %vm1933_vm6, %v3707_v18, 0 }
 0x3ff   : > { %1752 = vmatmul.bf16.vlgmr.msra.gmra.mxu0 %v1678_v57  ;;  %1970 = vmatpush.bf16.xpose.msra.mxu1 %v1944_v44  ;;  %v2247_v57 = vsel %vm1933_vm6, %v3715_v59, 0  ;;  %v2043_v44 = vsel %vm1933_vm6, %v3697_v20, 0 }
 0x400   : > { %2164 = vmatpush.bf16.xpose.msra.mxu3 %v2154_v33  ;;  %2264 = vmatpush.bf16.xpose.msrb.mxu0 %v2250_v46 }
 0x406   : > { %2066 = vmatpush.bf16.xpose.msra.mxu2 %v2052_v54 }
 0x407   : > { %1971 = vmatpush.bf16.xpose.msra.mxu1 %v1941_v51  ;;  %v2040_v51 = vsel %vm1933_vm6, %v3696_v3, 0 }
 0x408   : > { %2165 = vmatpush.bf16.xpose.msra.mxu3 %v2151_v29  ;;  %2265 = vmatpush.bf16.xpose.msrb.mxu0 %v2247_v57 }
 0x40e   : > { %2067 = vmatpush.bf16.xpose.msra.mxu2 %v2049_v17 }
 0x40f   : > { %1757 = vmatmul.bf16.gmra.mxu0 %v1679_v30  ;;  %v3698_v30 = vld [vmem:[#allocation2 + $0x50] sm:$0xff] }
 0x410   : > { %2166 = vmatpush.bf16.xpose.msra.mxu3 %v2148_v41  ;;  %2266 = vmatpush.bf16.xpose.msrb.mxu0 %v2244_v10  ;;  %v2046_v27 = vsel %vm1933_vm6, %v3698_v30, 0 }
 0x416   : > { %2068 = vmatpush.bf16.xpose.msra.mxu2 %v2046_v27 }
 0x418   : > { %2167 = vmatpush.bf16.xpose.msra.mxu3 %v2145_v11  ;;  %2267 = vmatpush.bf16.xpose.msrb.mxu0 %v2241_v37 }
 0x41e   : > { %2069 = vmatpush.bf16.xpose.msra.mxu2 %v2043_v44 }
 0x420   : > { %2168 = vmatpush.bf16.xpose.msra.mxu3 %v2142_v9  ;;  %2268 = vmatpush.bf16.xpose.msrb.mxu0 %v2238_v25 }
 0x426   : > { %2070 = vmatpush.bf16.xpose.msra.mxu2 %v2040_v51 }
 0x428   : > { %2169 = vmatpush.bf16.xpose.msra.mxu3 %v2139_v23 }
 0x47c   : > { %v1753_v4 = vpop.f32.mrf.mxu0 }
 0x47d   : > { %v1803_v47 = vpack.c.bf16 %v1753_v4, %v1753_v4 }
 0x47f   : > { %v1887_v19 = vunpack.c.l.b16 %v1803_v47 }
 0x484   : > { %v1755_v50 = vpop.f32.mrf.mxu0 }
 0x485   : > { %v1804_v31 = vpack.c.bf16 %v1755_v50, %v1755_v50  ;;  %v4230_v7 = vpack.i.bf16 %v1755_v50, %v1753_v4 }
 0x487   : > { %4231 = vrot.lane.b32.xlu0 %v4230_v7, %s4662_s1  ;;  %4226 = vrot.lane.b32.xlu2 %v4230_v7, %s4663_s27  ;;  %v1888_v6 = vunpack.c.l.b16 %v1804_v31 }
 0x489   : > { %v1891_v16 = vpack.c.b16 %v1888_v6, %v1887_v19 }
 0x48b   : > { %3361 = vmatmul.msk.bf16.vlgmr.msra.gmra.mxu1 %vm1933_vm6, %v1891_v16 }
 0x48c   : > { %v1758_v38 = vpop.f32.mrf.mxu0 }
 0x48d   : > { %v1805_v28 = vpack.c.bf16 %v1758_v38, %v1758_v38 }
 0x48f   : > { %4241 = vrot.lane.b32.xlu2 %v4230_v7, %s4664_s24  ;;  %v1889_v43 = vunpack.c.l.b16 %v1805_v28 }
 0x494   : > { %v1760_v21 = vpop.f32.mrf.mxu0 }
 0x495   : > { %v1806_v42 = vpack.c.bf16 %v1760_v21, %v1760_v21  ;;  %v4250_v13 = vpack.i.bf16 %v1760_v21, %v1758_v38 }
 0x497   : > { %4251 = vrot.lane.b32.xlu2 %v4250_v13, %s4664_s24  ;;  %4246 = vrot.lane.b32.xlu0 %v4250_v13, %s4662_s1  ;;  %v1890_v0 = vunpack.c.l.b16 %v1806_v42 }
 0x498   : > { %4236 = vrot.lane.b32.xlu1 %v4250_v13, %s4663_s27 }
 0x499   : > { %v1892_v63 = vpack.c.b16 %v1890_v0, %v1889_v43 }
 0x49b   : > { %3362 = vmatmul.msk.bf16.gmra.mxu1 %vm1933_vm6, %v1892_v63 }
 0x4e1   : > { %v4227_v58 = vpop.permute.xlu2 %4226 }
 0x4e2   : > { %v4229_v52 = vunpack.i.h.bf16 %v4227_v58  ;;  %v4228_v4 = vunpack.i.l.bf16 %v4227_v58 }
 0x4e4   : > { %v1812_v5 = vpack.c.bf16 %v4229_v52, %v4229_v52  ;;  %v1811_v40 = vpack.c.bf16 %v4228_v4, %v4228_v4 }
 0x4e6   : > { %v2087_v56 = vunpack.c.l.b16 %v1812_v5  ;;  %v2086_v45 = vunpack.c.l.b16 %v1811_v40 }
 0x4e8   : > { %v2090_v49 = vpack.c.b16 %v2087_v56, %v2086_v45 }
 0x4e9   : > { %v4242_v55 = vpop.permute.xlu2 %4241 }
 0x4ea   : > { %v4244_v48 = vunpack.i.h.bf16 %v4242_v55  ;;  %v4243_v47 = vunpack.i.l.bf16 %v4242_v55  ;;  %3429 = vmatmul.msk.bf16.vlgmr.msra.gmra.mxu3 %vm1933_vm6, %v2090_v49 }
 0x4ec   : > { %v1816_v2 = vpack.c.bf16 %v4244_v48, %v4244_v48  ;;  %v1815_v39 = vpack.c.bf16 %v4243_v47, %v4243_v47 }
 0x4ee   : > { %v2186_v50 = vunpack.c.l.b16 %v1816_v2  ;;  %v2185_v31 = vunpack.c.l.b16 %v1815_v39 }
 0x4f0   : > { %v2189_v7 = vpack.c.b16 %v2186_v50, %v2185_v31 }
 0x4f1   : > { %v4252_v24 = vpop.permute.xlu2 %4251 }
 0x4f2   : > { %3463 = vmatmul.msk.bf16.vlgmr.msrb.gmra.mxu0 %vm1933_vm6, %v2189_v7  ;;  %v4254_v19 = vunpack.i.h.bf16 %v4252_v24  ;;  %v4253_v6 = vunpack.i.l.bf16 %v4252_v24 }
 0x4f4   : > { %v1818_v8 = vpack.c.bf16 %v4254_v19, %v4254_v19  ;;  %v1817_v12 = vpack.c.bf16 %v4253_v6, %v4253_v6 }
 0x4f6   : > { %v2188_v26 = vunpack.c.l.b16 %v1818_v8  ;;  %v2187_v38 = vunpack.c.l.b16 %v1817_v12 }
 0x4f8   : > { %v2190_v29 = vpack.c.b16 %v2188_v26, %v2187_v38 }
 0x4f9   : > { %v4232_v16 = vpop.permute.xlu0 %4231 }
 0x4fa   : > { %v4234_v34 = vunpack.i.h.bf16 %v4232_v16  ;;  %v4233_v33 = vunpack.i.l.bf16 %v4232_v16 }
 0x4fc   : > { %v1808_v62 = vpack.c.bf16 %v4234_v34, %v4234_v34  ;;  %v1807_v36 = vpack.c.bf16 %v4233_v33, %v4233_v33 }
 0x4fe   : > { %v1988_v14 = vunpack.c.l.b16 %v1808_v62  ;;  %v1987_v22 = vunpack.c.l.b16 %v1807_v36 }
 0x500   : > { %v1991_v28 = vpack.c.b16 %v1988_v14, %v1987_v22  ;;  %v3743_v14 = vld [vmem:[#allocation3 + $0xb8] sm:$0xff]  ;;  %v3742_v22 = vld [vmem:[#allocation3 + $0xb0] sm:$0xff] }
 0x501   : > { %2722 = vmatpush.bf16.msrb.mxu3 %v3743_v14 }
 0x502   : > { %3395 = vmatmul.msk.bf16.vlgmr.msra.gmra.mxu2 %vm1933_vm6, %v1991_v28  ;;  %3464 = vmatmul.msk.bf16.gmra.mxu0 %vm1933_vm6, %v2190_v29 }
 0x505   : > { %2723 = vmatpush.bf16.msrb.mxu3 %v3742_v22  ;;  %v3746_v22 = vld [vmem:[#allocation3 + $0xd0] sm:$0xff] }
 0x508   : > { %v5664_v30 = vpop.f32.mrf.mxu1 }
 0x509   : > { %v4247_v46 = vpop.permute.xlu0 %4246 }
 0x50a   : > { %v4237_v21 = vpop.permute.xlu1 %4236  ;;  %v4249_v54 = vunpack.i.h.bf16 %v4247_v46  ;;  %v4248_v42 = vunpack.i.l.bf16 %v4247_v46 }
 0x50b   : > { %v4239_v13 = vunpack.i.h.bf16 %v4237_v21  ;;  %v4238_v43 = vunpack.i.l.bf16 %v4237_v21 }
 0x50c   : > { %v1810_v0 = vpack.c.bf16 %v4249_v54, %v4249_v54  ;;  %v1809_v18 = vpack.c.bf16 %v4248_v42, %v4248_v42 }
 0x50d   : > { %v1814_v59 = vpack.c.bf16 %v4239_v13, %v4239_v13  ;;  %v1813_v63 = vpack.c.bf16 %v4238_v43, %v4238_v43 }
 0x50e   : > { %v1990_v41 = vunpack.c.l.b16 %v1810_v0  ;;  %v1989_v57 = vunpack.c.l.b16 %v1809_v18 }
 0x50f   : > { %v2089_v61 = vunpack.c.l.b16 %v1814_v59  ;;  %v2088_v1 = vunpack.c.l.b16 %v1813_v63 }
 0x510   : > { %v1992_v11 = vpack.c.b16 %v1990_v41, %v1989_v57  ;;  %v5669_v20 = vpop.f32.mrf.mxu1 }
 0x511   : > { %v2091_v10 = vpack.c.b16 %v2089_v61, %v2088_v1 }
 0x512   : > { %3396 = vmatmul.msk.bf16.gmra.mxu2 %vm1933_vm6, %v1992_v11 }
 0x513   : > { %3430 = vmatmul.msk.bf16.gmra.mxu3 %vm1933_vm6, %v2091_v10 }
 0x518   : > { %v5689_v6 = vpop.f32.mrf.mxu1 }
 0x520   : > { %v5695_v42 = vpop.f32.mrf.mxu1 }
 0x56d   : > { %v2171_v15 = vpop.f32.mrf.mxu3 }
 0x56e   : > { %2296 = vmax.xlane.f32.xlu1 %v2171_v15 }
 0x56f   : > { %v2270_v53 = vpop.f32.mrf.mxu0 }
 0x575   : > { %v2173_v9 = vpop.f32.mrf.mxu3 }
 0x576   : > { %2298 = vmax.xlane.f32.xlu0 %v2173_v9 }
 0x577   : > { %v2272_v37 = vpop.f32.mrf.mxu0 }
 0x57f   : > { %v2275_v25 = vpop.f32.mrf.mxu0 }
 0x585   : > { %v2072_v35 = vpop.f32.mrf.mxu2 }
 0x586   : > { %2288 = vmax.xlane.f32.xlu2 %v2072_v35 }
 0x587   : > { %v5673_v44 = vpop.f32.mrf.mxu0 }
 0x58d   : > { %v2074_v60 = vpop.f32.mrf.mxu2 }
 0x58e   : > { %2290 = vmax.xlane.f32.xlu1 %v2074_v60 }
 0x595   : > { %v5659_v17 = vpop.f32.mrf.mxu2 }
 0x596   : > { %v5661_v23 = vpop.f32.mrf.mxu3  ;;  %2304 = vmax.xlane.f32.xlu1 %v2270_v53 }
 0x597   : > { %2300 = vmax.xlane.f32.xlu0 %v5661_v23 }
 0x59d   : > { %v5666_v32 = vpop.f32.mrf.mxu2 }
 0x59e   : > { %v2178_v27 = vpop.f32.mrf.mxu3  ;;  %2294 = vmax.xlane.f32.xlu1 %v5666_v32 }
 0x59f   : > { %2306 = vmax.xlane.f32.xlu0 %v2272_v37  ;;  %2302 = vmax.xlane.f32.xlu2 %v2178_v27 }
 0x5a6   : > { %2282 = vmax.xlane.f32.xlu1 %v5669_v20 }
 0x5a7   : > { %2308 = vmax.xlane.f32.xlu0 %v2275_v25  ;;  %2292 = vmax.xlane.f32.xlu2 %v5659_v17 }
 0x5af   : > { %2310 = vmax.xlane.f32.xlu2 %v5673_v44 }
 0x5b7   : > { %2280 = vmax.xlane.f32.xlu2 %v5664_v30 }
 0x5e1   : > { %v2297_v3 = vpop.xlane.xlu1 %2296 }
 0x5e2   : > { %v2320_v51 = vsub.f32 %v2171_v15, %v2297_v3  ;;  %v3738_v3 = vld [vmem:[#allocation3 + $0x90] sm:$0xff] }
 0x5e4   : > { %v2344_v58 = vmul.f32 1.442695, %v2320_v51  ;;  %v3734_v51 = vld [vmem:[#allocation3 + $0x70] sm:$0xff] }
 0x5e6   : > { %4297 = vpow2.f32 %v2344_v58  ;;  %v3737_v58 = vld [vmem:[#allocation3 + $0x88] sm:$0xff] }
 0x5e9   : > { %v2299_v52 = vpop.xlane.xlu0 %2298 }
 0x5ea   : > { %v2321_v4 = vsub.f32 %v2173_v9, %v2299_v52  ;;  %v3736_v52 = vld [vmem:[#allocation3 + $0x80] sm:$0xff] }
 0x5ec   : > { %v5677_v5 = vpop.eup %4297  ;;  %v2346_v40 = vmul.f32 1.442695, %v2321_v4  ;;  %v3733_v4 = vld [vmem:[#allocation3 + $0x68] sm:$0xff] }
 0x5ed   : > { %2376 = vadd.xlane.f32.xlu1 %v5677_v5 }
 0x5ee   : > { %4299 = vpow2.f32 %v2346_v40  ;;  %v3732_v40 = vld [vmem:[#allocation3 + $0x60] sm:$0xff] }
 0x5f4   : > { %v5680_v56 = vpop.eup %4299 }
 0x5f5   : > { %2378 = vadd.xlane.f32.xlu0 %v5680_v56 }
 0x5f9   : > { %v2289_v45 = vpop.xlane.xlu2 %2288 }
 0x5fa   : > { %v2316_v49 = vsub.f32 %v2072_v35, %v2289_v45 }
 0x5fc   : > { %v2336_v55 = vmul.f32 1.442695, %v2316_v49  ;;  %v3731_v49 = vld [vmem:[#allocation3 + $0x58] sm:$0xff] }
 0x5fe   : > { %4301 = vpow2.f32 %v2336_v55  ;;  %v3751_v55 = vld [vmem:[#allocation3 + $0xf8] sm:$0xff] }
 0x5ff   : > { %2801 = vmatpush.bf16.msra.mxu0 %v3751_v55 }
 0x601   : > { %v2291_v48 = vpop.xlane.xlu1 %2290 }
 0x602   : > { %v2317_v47 = vsub.f32 %v2074_v60, %v2291_v48  ;;  %v3730_v48 = vld [vmem:[#allocation3 + $0x50] sm:$0xff] }
 0x604   : > { %v5683_v2 = vpop.eup %4301  ;;  %v2338_v39 = vmul.f32 1.442695, %v2317_v47  ;;  %v3750_v47 = vld [vmem:[#allocation3 + $0xf0] sm:$0xff] }
 0x605   : > { %2368 = vadd.xlane.f32.xlu0 %v5683_v2  ;;  %2802 = vmatpush.bf16.msra.mxu0 %v3750_v47 }
 0x606   : > { %4303 = vpow2.f32 %v2338_v39 }
 0x609   : > { %v2305_v50 = vpop.xlane.xlu1 %2304 }
 0x60a   : > { %v2301_v31 = vpop.xlane.xlu0 %2300  ;;  %v2324_v7 = vsub.f32 %v2270_v53, %v2305_v50 }
 0x60b   : > { %v2322_v36 = vsub.f32 %v5661_v23, %v2301_v31  ;;  %v3729_v31 = vld [vmem:[#allocation3 + $0x48] sm:$0xff] }
 0x60c   : > { %v5686_v24 = vpop.eup %4303  ;;  %v2352_v19 = vmul.f32 1.442695, %v2324_v7  ;;  %v3749_v7 = vld [vmem:[#allocation3 + $0xe8] sm:$0xff] }
 0x60d   : > { %2370 = vadd.xlane.f32.xlu2 %v5686_v24  ;;  %v2348_v28 = vmul.f32 1.442695, %v2322_v36  ;;  %2803 = vmatpush.bf16.msra.mxu0 %v3749_v7 }
 0x60e   : > { %4305 = vpow2.f32 %v2352_v19 }
 0x611   : > { %v2295_v8 = vpop.xlane.xlu1 %2294 }
 0x612   : > { %v2307_v12 = vpop.xlane.xlu0 %2306  ;;  %v2303_v16 = vpop.xlane.xlu2 %2302  ;;  %v2319_v63 = vsub.f32 %v5666_v32, %v2295_v8  ;;  %v3728_v8 = vld [vmem:[#allocation3 + $0x40] sm:$0xff] }
 0x613   : > { %v2325_v34 = vsub.f32 %v2272_v37, %v2307_v12  ;;  %v2323_v33 = vsub.f32 %v2178_v27, %v2303_v16  ;;  %v3748_v12 = vld [vmem:[#allocation3 + $0xe0] sm:$0xff] }
 0x614   : > { %v5691_v26 = vpop.eup %4305  ;;  %v2342_v11 = vmul.f32 1.442695, %v2319_v63  ;;  %2804 = vmatpush.bf16.msra.mxu0 %v3748_v12  ;;  %v3724_v63 = vld [vmem:[#allocation3 + $0x20] sm:$0xff] }
 0x615   : > { %v2354_v38 = vmul.f32 1.442695, %v2325_v34  ;;  %v2350_v62 = vmul.f32 1.442695, %v2323_v33  ;;  %2384 = vadd.xlane.f32.xlu2 %v5691_v26 }
 0x617   : > { %4307 = vpow2.f32 %v2354_v38  ;;  %v3747_v38 = vld [vmem:[#allocation3 + $0xd8] sm:$0xff] }
 0x618   : > { %4309 = vpow2.f32 %v2350_v62  ;;  %2805 = vmatpush.bf16.msra.mxu0 %v3747_v38 }
 0x619   : > { %v2283_v54 = vpop.xlane.xlu1 %2282  ;;  %4311 = vpow2.f32 %v2348_v28 }
 0x61a   : > { %v2309_v29 = vpop.xlane.xlu0 %2308  ;;  %v2293_v46 = vpop.xlane.xlu2 %2292  ;;  %v2313_v18 = vsub.f32 %v5669_v20, %v2283_v54  ;;  %v3739_v20 = vld [vmem:[#allocation3 + $0x98] sm:$0xff] }
 0x61b   : > { %v2326_v21 = vsub.f32 %v2275_v25, %v2309_v29  ;;  %v2318_v59 = vsub.f32 %v5659_v17, %v2293_v46  ;;  %v3740_v25 = vld [vmem:[#allocation3 + $0xa0] sm:$0xff]  ;;  %v3727_v29 = vld [vmem:[#allocation3 + $0x38] sm:$0xff]  ;;  %v3745_v46 = vld [vmem:[#allocation3 + $0xc8] sm:$0xff] }
 0x61c   : > { %v2330_v41 = vmul.f32 1.442695, %v2313_v18  ;;  %2806 = vmatpush.bf16.msra.mxu0 %v3746_v22  ;;  %2564 = vmatpush.bf16.msrb.mxu1 %v3727_v29  ;;  %v3725_v18 = vld [vmem:[#allocation3 + $0x28] sm:$0xff] }
 0x61d   : > { %v5697_v13 = vpop.eup %4307  ;;  %v2356_v43 = vmul.f32 1.442695, %v2326_v21  ;;  %2286 = vmax.xlane.f32.xlu2 %v5695_v42  ;;  %v2340_v61 = vmul.f32 1.442695, %v2318_v59  ;;  %v3744_v21 = vld [vmem:[#allocation3 + $0xc0] sm:$0xff] }
 0x61e   : > { %v5700_v0 = vpop.eup %4309  ;;  %2386 = vadd.xlane.f32.xlu1 %v5697_v13 }
 0x61f   : > { %4313 = vpow2.f32 %v2356_v43  ;;  %2382 = vadd.xlane.f32.xlu0 %v5700_v0  ;;  %v5707_v1 = vpop.eup %4311 }
 0x620   : > { %4315 = vpow2.f32 %v2330_v41  ;;  %2807 = vmatpush.bf16.msra.mxu0 %v3745_v46 }
 0x621   : > { %4317 = vpow2.f32 %v2340_v61 }
 0x622   : > { %v2311_v57 = vpop.xlane.xlu2 %2310  ;;  %4319 = vpow2.f32 %v2342_v11 }
 0x623   : > { %v2327_v15 = vsub.f32 %v5673_v44, %v2311_v57  ;;  %v3735_v44 = vld [vmem:[#allocation3 + $0x78] sm:$0xff] }
 0x624   : > { %2643 = vmatpush.bf16.msrb.mxu2 %v3735_v44  ;;  %2808 = vmatpush.bf16.msra.mxu0 %v3744_v21 }
 0x625   : > { %v5709_v10 = vpop.eup %4313  ;;  %v2358_v9 = vmul.f32 1.442695, %v2327_v15 }
 0x626   : > { %2388 = vadd.xlane.f32.xlu2 %v5709_v10  ;;  %2380 = vadd.xlane.f32.xlu1 %v5707_v1  ;;  %v5716_v53 = vpop.eup %4315 }
 0x627   : > { %2284 = vmax.xlane.f32.xlu0 %v5689_v6  ;;  %v5718_v17 = vpop.eup %4317  ;;  %4321 = vpow2.f32 %v2358_v9  ;;  %v3723_v9 = vld [vmem:[#allocation3 + $0x18] sm:$0xff] }
 0x628   : > { %v5720_v37 = vpop.eup %4319  ;;  %2644 = vmatpush.bf16.msrb.mxu2 %v3734_v51 }
 0x62a   : > { %v2281_v35 = vpop.xlane.xlu2 %2280 }
 0x62b   : > { %v2312_v60 = vsub.f32 %v5664_v30, %v2281_v35  ;;  %v3741_v30 = vld [vmem:[#allocation3 + $0xa8] sm:$0xff] }
 0x62c   : > { %2724 = vmatpush.bf16.msrb.mxu3 %v3741_v30  ;;  %2645 = vmatpush.bf16.msrb.mxu2 %v3733_v4  ;;  %v3722_v30 = vld [vmem:[#allocation3 + $0x10] sm:$0xff] }
 0x62d   : > { %v2328_v23 = vmul.f32 1.442695, %v2312_v60  ;;  %v5725_v32 = vpop.eup %4321 }
 0x62e   : > { %2372 = vadd.xlane.f32.xlu1 %v5718_v17  ;;  %2362 = vadd.xlane.f32.xlu2 %v5716_v53 }
 0x62f   : > { %4323 = vpow2.f32 %v2328_v23  ;;  %2374 = vadd.xlane.f32.xlu0 %v5720_v37 }
 0x630   : > { %2725 = vmatpush.bf16.msrb.mxu3 %v3740_v25  ;;  %2646 = vmatpush.bf16.msrb.mxu2 %v3732_v40 }
 0x634   : > { %2726 = vmatpush.bf16.msrb.mxu3 %v3739_v20  ;;  %2647 = vmatpush.bf16.msrb.mxu2 %v3731_v49 }
 0x635   : > { %v5727_v27 = vpop.eup %4323 }
 0x636   : > { %2390 = vadd.xlane.f32.xlu1 %v5725_v32 }
 0x637   : > { %2360 = vadd.xlane.f32.xlu0 %v5727_v27 }
 0x638   : > { %2727 = vmatpush.bf16.msrb.mxu3 %v3738_v3  ;;  %2648 = vmatpush.bf16.msrb.mxu2 %v3730_v48 }
 0x63c   : > { %2728 = vmatpush.bf16.msrb.mxu3 %v3737_v58  ;;  %2649 = vmatpush.bf16.msrb.mxu2 %v3729_v31 }
 0x640   : > { %2729 = vmatpush.bf16.msrb.mxu3 %v3736_v52  ;;  %2650 = vmatpush.bf16.msrb.mxu2 %v3728_v8  ;;  %v3720_v52 = vld [vmem:[#allocation3] sm:$0xff] }
 0x644   : > { %3784 = vmatpush.bf16.msra.mxu3 %v3751_v55 }
 0x648   : > { %3785 = vmatpush.bf16.msra.mxu3 %v3750_v47 }
 0x64c   : > { %3786 = vmatpush.bf16.msra.mxu3 %v3749_v7 }
 0x650   : > { %3787 = vmatpush.bf16.msra.mxu3 %v3748_v12 }
 0x654   : > { %3788 = vmatpush.bf16.msra.mxu3 %v3747_v38 }
 0x658   : > { %3789 = vmatpush.bf16.msra.mxu3 %v3746_v22 }
 0x65c   : > { %3790 = vmatpush.bf16.msra.mxu3 %v3745_v46 }
 0x660   : > { %v2377_v45 = vpop.xlane.xlu1 %2376  ;;  %3791 = vmatpush.bf16.msra.mxu3 %v3744_v21 }
 0x661   : > { %4325 = vrcp.f32 %v2377_v45 }
 0x667   : > { %v4326_v50 = vpop.eup %4325 }
 0x668   : > { %v2379_v39 = vpop.xlane.xlu0 %2378  ;;  %v2416_v19 = vmul.f32 %v4326_v50, %v5677_v5 }
 0x669   : > { %4327 = vrcp.f32 %v2379_v39 }
 0x66a   : > { %v2432_v33 = vpack.c.bf16 %v2416_v19, %v2416_v19 }
 0x66c   : > { %v2666_v36 = vunpack.c.l.b16 %v2432_v33 }
 0x66f   : > { %v4328_v16 = vpop.eup %4327 }
 0x670   : > { %v2417_v34 = vmul.f32 %v4328_v16, %v5680_v56  ;;  %v3726_v56 = vld [vmem:[#allocation3 + $0x30] sm:$0xff] }
 0x671   : > { %2565 = vmatpush.bf16.msrb.mxu1 %v3726_v56 }
 0x672   : > { %v2433_v62 = vpack.c.bf16 %v2417_v34, %v2417_v34 }
 0x674   : > { %v2667_v14 = vunpack.c.l.b16 %v2433_v62 }
 0x675   : > { %2566 = vmatpush.bf16.msrb.mxu1 %v3725_v18 }
 0x676   : > { %v2670_v28 = vpack.c.b16 %v2667_v14, %v2666_v36 }
 0x678   : > { %v2369_v5 = vpop.xlane.xlu0 %2368  ;;  %2730 = vmatmul.bf16.vlgmr.msrb.gmra.mxu3 %v2670_v28 }
 0x679   : > { %4329 = vrcp.f32 %v2369_v5  ;;  %2567 = vmatpush.bf16.msrb.mxu1 %v3724_v63 }
 0x67d   : > { %2568 = vmatpush.bf16.msrb.mxu1 %v3723_v9 }
 0x67f   : > { %v4330_v43 = vpop.eup %4329 }
 0x680   : > { %v2371_v54 = vpop.xlane.xlu2 %2370  ;;  %v2412_v59 = vmul.f32 %v4330_v43, %v5683_v2 }
 0x681   : > { %4331 = vrcp.f32 %v2371_v54  ;;  %2569 = vmatpush.bf16.msrb.mxu1 %v3722_v30 }
 0x682   : > { %v2428_v11 = vpack.c.bf16 %v2412_v59, %v2412_v59 }
 0x684   : > { %v2587_v35 = vunpack.c.l.b16 %v2428_v11 }
 0x687   : > { %v4332_v41 = vpop.eup %4331 }
 0x688   : > { %v2385_v57 = vpop.xlane.xlu2 %2384  ;;  %v2413_v61 = vmul.f32 %v4332_v41, %v5686_v24  ;;  %v3721_v24 = vld [vmem:[#allocation3 + $0x8] sm:$0xff] }
 0x689   : > { %4333 = vrcp.f32 %v2385_v57  ;;  %2570 = vmatpush.bf16.msrb.mxu1 %v3721_v24 }
 0x68a   : > { %v2429_v15 = vpack.c.bf16 %v2413_v61, %v2413_v61 }
 0x68c   : > { %v2588_v60 = vunpack.c.l.b16 %v2429_v15 }
 0x68d   : > { %2571 = vmatpush.bf16.msrb.mxu1 %v3720_v52 }
 0x68e   : > { %v2591_v23 = vpack.c.b16 %v2588_v60, %v2587_v35 }
 0x68f   : > { %v4334_v44 = vpop.eup %4333 }
 0x690   : > { %2651 = vmatmul.bf16.vlgmr.msrb.gmra.mxu2 %v2591_v23  ;;  %v2287_v25 = vpop.xlane.xlu2 %2286  ;;  %v2420_v58 = vmul.f32 %v4334_v44, %v5691_v26 }
 0x691   : > { %v2315_v2 = vsub.f32 %v5695_v42, %v2287_v25  ;;  %v2387_v20 = vpop.xlane.xlu1 %2386 }
 0x692   : > { %v2383_v3 = vpop.xlane.xlu0 %2382  ;;  %4335 = vrcp.f32 %v2387_v20  ;;  %v2436_v40 = vpack.c.bf16 %v2420_v58, %v2420_v58 }
 0x693   : > { %v2334_v51 = vmul.f32 1.442695, %v2315_v2  ;;  %4337 = vrcp.f32 %v2383_v3 }
 0x694   : > { %v2745_v26 = vunpack.c.l.b16 %v2436_v40 }
 0x695   : > { %4339 = vpow2.f32 %v2334_v51 }
 0x698   : > { %v4336_v4 = vpop.eup %4335 }
 0x699   : > { %v2421_v45 = vmul.f32 %v4336_v4, %v5697_v13  ;;  %v2389_v49 = vpop.xlane.xlu2 %2388  ;;  %v2381_v55 = vpop.xlane.xlu1 %2380 }
 0x69a   : > { %v4338_v42 = vpop.eup %4337  ;;  %v2285_v48 = vpop.xlane.xlu0 %2284  ;;  %4341 = vrcp.f32 %v2381_v55 }
 0x69b   : > { %v5738_v47 = vpop.eup %4339  ;;  %v2437_v39 = vpack.c.bf16 %v2421_v45, %v2421_v45  ;;  %v2314_v50 = vsub.f32 %v5689_v6, %v2285_v48  ;;  %v2419_v19 = vmul.f32 %v4338_v42, %v5700_v0 }
 0x69c   : > { %2366 = vadd.xlane.f32.xlu0 %v5738_v47 }
 0x69d   : > { %v2746_v31 = vunpack.c.l.b16 %v2437_v39  ;;  %v2332_v7 = vmul.f32 1.442695, %v2314_v50  ;;  %v2435_v38 = vpack.c.bf16 %v2419_v19, %v2419_v19 }
 0x69f   : > { %4343 = vpow2.f32 %v2332_v7  ;;  %v2749_v8 = vpack.c.b16 %v2746_v31, %v2745_v26  ;;  %v2669_v14 = vunpack.c.l.b16 %v2435_v38  ;;  %v3759_v38 = vld [vmem:[#allocation10 + $0x38] sm:$0xff] }
 0x6a0   : > { %v4342_v13 = vpop.eup %4341  ;;  %4345 = vrcp.f32 %v2389_v49  ;;  %2952 = vmatpush.bf16.msra.mxu1 %v3759_v38 }
 0x6a1   : > { %2809 = vmatmul.bf16.vlgmr.msra.gmra.mxu0 %v2749_v8  ;;  %v2373_v12 = vpop.xlane.xlu1 %2372  ;;  %v2363_v34 = vpop.xlane.xlu2 %2362  ;;  %v2418_v33 = vmul.f32 %v4342_v13, %v5707_v1 }
 0x6a2   : > { %v2375_v16 = vpop.xlane.xlu0 %2374 }
 0x6a3   : > { %4347 = vrcp.f32 %v2375_v16  ;;  %v2434_v6 = vpack.c.bf16 %v2418_v33, %v2418_v33 }
 0x6a4   : > { %4349 = vrcp.f32 %v2373_v12 }
 0x6a5   : > { %v4344_v62 = vpop.eup %4343  ;;  %4351 = vrcp.f32 %v2363_v34  ;;  %v2668_v36 = vunpack.c.l.b16 %v2434_v6  ;;  %v3758_v6 = vld [vmem:[#allocation10 + $0x30] sm:$0xff] }
 0x6a6   : > { %2364 = vadd.xlane.f32.xlu1 %v4344_v62  ;;  %v4346_v0 = vpop.eup %4345  ;;  %2953 = vmatpush.bf16.msra.mxu1 %v3758_v6 }
 0x6a7   : > { %v2671_v22 = vpack.c.b16 %v2669_v14, %v2668_v36  ;;  %v2422_v43 = vmul.f32 %v4346_v0, %v5709_v10  ;;  %v3756_v36 = vld [vmem:[#allocation10 + $0x20] sm:$0xff]  ;;  %v3755_v14 = vld [vmem:[#allocation10 + $0x18] sm:$0xff]  ;;  %v3754_v0 = vld [vmem:[#allocation10 + $0x10] sm:$0xff] }
 0x6a9   : > { %v4348_v28 = vpop.eup %4347  ;;  %v2391_v5 = vpop.xlane.xlu1 %2390  ;;  %2735 = vmatmul.bf16.gmra.mxu3 %v2671_v22  ;;  %v2438_v11 = vpack.c.bf16 %v2422_v43, %v2422_v43  ;;  %v3753_v22 = vld [vmem:[#allocation10 + $0x8] sm:$0xff] }
 0x6aa   : > { %v4350_v29 = vpop.eup %4349  ;;  %v2361_v46 = vpop.xlane.xlu0 %2360  ;;  %4353 = vrcp.f32 %v2391_v5  ;;  %v2415_v56 = vmul.f32 %v4348_v28, %v5720_v37  ;;  %v3752_v28 = vld [vmem:[#allocation10] sm:$0xff] }
 0x6ab   : > { %v4352_v1 = vpop.eup %4351  ;;  %4355 = vrcp.f32 %v2361_v46  ;;  %v2414_v21 = vmul.f32 %v4350_v29, %v5718_v17  ;;  %v2747_v23 = vunpack.c.l.b16 %v2438_v11 }
 0x6ac   : > { %v2431_v54 = vpack.c.bf16 %v2415_v56, %v2415_v56  ;;  %v2409_v63 = vmul.f32 %v4352_v1, %v5716_v53 }
 0x6ad   : > { %v2430_v18 = vpack.c.bf16 %v2414_v21, %v2414_v21 }
 0x6ae   : > { %v2590_v59 = vunpack.c.l.b16 %v2431_v54  ;;  %v2425_v35 = vpack.c.bf16 %v2409_v63, %v2409_v63 }
 0x6af   : > { %v2589_v41 = vunpack.c.l.b16 %v2430_v18 }
 0x6b0   : > { %v4354_v57 = vpop.eup %4353  ;;  %v2509_v25 = vunpack.c.l.b16 %v2425_v35  ;;  %v3767_v35 = vld [vmem:[#allocation12 + $0x38] sm:$0xff] }
 0x6b1   : > { %v4356_v61 = vpop.eup %4355  ;;  %v2423_v15 = vmul.f32 %v4354_v57, %v5725_v32  ;;  %v2592_v9 = vpack.c.b16 %v2590_v59, %v2589_v41  ;;  %3041 = vmatpush.bf16.msra.mxu2 %v3767_v35 }
 0x6b2   : > { %v2408_v37 = vmul.f32 %v4356_v61, %v5727_v27 }
 0x6b3   : > { %v2439_v60 = vpack.c.bf16 %v2423_v15, %v2423_v15  ;;  %2656 = vmatmul.bf16.gmra.mxu2 %v2592_v9 }
 0x6b4   : > { %v2424_v17 = vpack.c.bf16 %v2408_v37, %v2408_v37 }
 0x6b5   : > { %v2748_v30 = vunpack.c.l.b16 %v2439_v60  ;;  %v3766_v60 = vld [vmem:[#allocation12 + $0x30] sm:$0xff] }
 0x6b6   : > { %v2508_v10 = vunpack.c.l.b16 %v2424_v17  ;;  %3042 = vmatpush.bf16.msra.mxu2 %v3766_v60  ;;  %v3765_v17 = vld [vmem:[#allocation12 + $0x28] sm:$0xff] }
 0x6b7   : > { %v2750_v2 = vpack.c.b16 %v2748_v30, %v2747_v23  ;;  %v3764_v23 = vld [vmem:[#allocation12 + $0x20] sm:$0xff] }
 0x6b8   : > { %v2512_v20 = vpack.c.b16 %v2509_v25, %v2508_v10  ;;  %v3763_v10 = vld [vmem:[#allocation12 + $0x18] sm:$0xff] }
 0x6b9   : > { %2814 = vmatmul.bf16.vlgmr.msra.gmra.mxu3 %v2750_v2 }
 0x6ba   : > { %2572 = vmatmul.bf16.vlgmr.msrb.gmra.mxu1 %v2512_v20  ;;  %3043 = vmatpush.bf16.msra.mxu2 %v3765_v17 }
 0x6be   : > { %3044 = vmatpush.bf16.msra.mxu2 %v3764_v23 }
 0x6c2   : > { %3045 = vmatpush.bf16.msra.mxu2 %v3763_v10 }
 0x6fb   : > { %v2731_v53 = vpop.f32.mrf.mxu3 }
 0x703   : > { %v2733_v44 = vpop.f32.mrf.mxu3 }
 0x704   : > { %v4260_v3 = vpack.i.bf16 %v2733_v44, %v2731_v53 }
 0x706   : > { %4261 = vrot.lane.b32.xlu1 %v4260_v3, %s4663_s27 }
 0x70f   : > { %v2367_v32 = vpop.xlane.xlu0 %2366 }
 0x710   : > { %4357 = vrcp.f32 %v2367_v32 }
 0x713   : > { %v2652_v24 = vpop.f32.mrf.mxu2 }
 0x716   : > { %v4358_v51 = vpop.eup %4357 }
 0x717   : > { %v2411_v4 = vmul.f32 %v4358_v51, %v5738_v47 }
 0x719   : > { %v2365_v27 = vpop.xlane.xlu1 %2364  ;;  %v2427_v55 = vpack.c.bf16 %v2411_v4, %v2411_v4 }
 0x71a   : > { %4359 = vrcp.f32 %v2365_v27 }
 0x71b   : > { %v2654_v58 = vpop.f32.mrf.mxu2  ;;  %v2511_v39 = vunpack.c.l.b16 %v2427_v55 }
 0x71c   : > { %v4255_v52 = vpack.i.bf16 %v2654_v58, %v2652_v24 }
 0x71e   : > { %v2810_v40 = vpop.f32.mrf.mxu0  ;;  %4256 = vrot.lane.b32.xlu2 %v4255_v52, %s4664_s24 }
 0x720   : > { %v4360_v45 = vpop.eup %4359 }
 0x721   : > { %v2410_v49 = vmul.f32 %v4360_v45, %v4344_v62  ;;  %v3757_v62 = vld [vmem:[#allocation10 + $0x28] sm:$0xff] }
 0x722   : > { %2954 = vmatpush.bf16.msra.mxu1 %v3757_v62  ;;  %v4361_v62 = vld [vmem:[%s5570_s30] sm:$0xff] }
 0x723   : > { %v2426_v42 = vpack.c.bf16 %v2410_v49, %v2410_v49 }
 0x725   : > { %v2510_v48 = vunpack.c.l.b16 %v2426_v42  ;;  %v3762_v42 = vld [vmem:[#allocation12 + $0x10] sm:$0xff] }
 0x726   : > { %v2812_v50 = vpop.f32.mrf.mxu0  ;;  %2955 = vmatpush.bf16.msra.mxu1 %v3756_v36  ;;  %3046 = vmatpush.bf16.msra.mxu2 %v3762_v42 }
 0x727   : > { %v4265_v26 = vpack.i.bf16 %v2812_v50, %v2810_v40  ;;  %v2513_v31 = vpack.c.b16 %v2511_v39, %v2510_v48  ;;  %v3761_v48 = vld [vmem:[#allocation12 + $0x8] sm:$0xff]  ;;  %v3760_v39 = vld [vmem:[#allocation12] sm:$0xff] }
 0x729   : > { %2577 = vmatmul.bf16.gmra.mxu1 %v2513_v31  ;;  %4266 = vrot.lane.b32.xlu0 %v4265_v26, %s4662_s1  ;;  %v4285_v26 = vld [vmem:[%s5843_s5] ss:$0 sm:$0xff] }
 0x72a   : > { %2956 = vmatpush.bf16.msra.mxu1 %v3755_v14  ;;  %3047 = vmatpush.bf16.msra.mxu2 %v3761_v48 }
 0x72c   : > { %v2736_v7 = vpop.f32.mrf.mxu3 }
 0x72e   : > { %2957 = vmatpush.bf16.msra.mxu1 %v3754_v0  ;;  %3048 = vmatpush.bf16.msra.mxu2 %v3760_v39 }
 0x732   : > { %2958 = vmatpush.bf16.msra.mxu1 %v3753_v22  ;;  %v4362_v22 = vld [vmem:[%s5570_s30 + $0x8] sm:$0xff] }
 0x734   : > { %v2738_v19 = vpop.f32.mrf.mxu3 }
 0x735   : > { %v4275_v13 = vpack.i.bf16 %v2738_v19, %v2736_v7 }
 0x736   : > { %v2657_v8 = vpop.f32.mrf.mxu2  ;;  %2959 = vmatpush.bf16.msra.mxu1 %v3752_v28 }
 0x737   : > { %4276 = vrot.lane.b32.xlu0 %v4275_v13, %s4663_s27  ;;  %v2573_v5 = vpop.f32.mrf.mxu1 }
 0x73c   : > { %v2815_v47 = vpop.f32.mrf.mxu3 }
 0x73e   : > { %v2659_v12 = vpop.f32.mrf.mxu2 }
 0x73f   : > { %v4270_v16 = vpack.i.bf16 %v2659_v12, %v2657_v8  ;;  %v2575_v21 = vpop.f32.mrf.mxu1 }
 0x741   : > { %4271 = vrot.lane.b32.xlu2 %v4270_v16, %s4664_s24  ;;  %s3083_s24 = sshll.u32 %s4887_s22, 4  ;;  %s3084_s24 = int_to_ptr.vmem [resolvable:$true] %s3083_s24 }
 0x744   : > { %v2817_v34 = vpop.f32.mrf.mxu3 }
 0x745   : > { %v4280_v33 = vpack.i.bf16 %v2817_v34, %v2815_v47 }
 0x747   : > { %4281 = vrot.lane.b32.xlu1 %v4280_v33, %s4662_s1  ;;  %v4286_v33 = vld [vmem:[%s5898_s6] ss:$0 sm:$0xff]  ;;  %s3082_s1 = scalar_lea.hbm %s5899_s7, %s3660_s18  ;;  %s4535_s6 = scalar_lea.hbm %s5899_s7, 256 }
 0x748   : > { %s3085_s20 = sshll.u32 %s3082_s1, 4  ;;  %s3086_s20 = int_to_ptr.hbm [resolvable:$true] %s3085_s20 }
 0x749   : > { %s4529_s25 = sshra.s32 %s3086_s20, 4  ;;  %s4530_s25 = int_to_ptr.hbm [resolvable:$true] %s4529_s25 }
 0x74a   : > { %s4531_s4 = scalar_lea.hbm %s4530_s25, 32  ;;  %p4536_p2 = scmp.lt.s32.totalorder %s4530_s25, %s5899_s7 }
 0x74b   : > { %p4532_p1 = scmp.ne.s32.totalorder %s4530_s25, %s4531_s4  ;;  %p4537_p3 = scmp.lt.s32.totalorder %s4535_s6, %s4531_s4 }
 0x74d   : > { %p4533_p11 = pnand %p4532_p1, %p4782_p6  ;;  %p4538_p5 = por %p4537_p3, %p4536_p2 }
 0x74f   : > { %p4534_p0 = pneg %p4533_p11 }
 0x751   : > { %p4539_p7 = pnand %p4538_p5, %p4534_p0 }
 0x778   : > { %v4257_v29 = vpop.permute.xlu2 %4256  ;;  %v4262_v46 = vpop.permute.xlu1 %4261 }
 0x779   : > { %v4259_v56 = vunpack.i.h.bf16 %v4257_v29  ;;  %v4258_v1 = vunpack.i.l.bf16 %v4257_v29  ;;  %v4264_v54 = vunpack.i.h.bf16 %v4262_v46  ;;  %v4263_v43 = vunpack.i.l.bf16 %v4262_v46  ;;  %v4363_v46 = vld [vmem:[%s5570_s30 + $0x10] sm:$0xff] }
 0x77b   : > { %v2869_v18 = vsel %vm1933_vm6, %v2575_v21, %v4259_v56  ;;  %v2868_v59 = vsel %vm1933_vm6, %v2573_v5, %v4258_v1 }
 0x77c   : > { %v2873_v61 = vsel %vm2872_vm0, %v2868_v59, %v4263_v43  ;;  %v2874_v11 = vsel %vm2872_vm0, %v2869_v18, %v4264_v54  ;;  %v4364_v54 = vld [vmem:[%s5570_s30 + $0x18] sm:$0xff] }
 0x79b   : > { %v4267_v63 = vpop.permute.xlu0 %4266  ;;  %v4272_v25 = vpop.permute.xlu2 %4271 }
 0x79c   : > { %v4269_v41 = vunpack.i.h.bf16 %v4267_v63  ;;  %v4268_v57 = vunpack.i.l.bf16 %v4267_v63  ;;  %v4274_v53 = vunpack.i.h.bf16 %v4272_v25  ;;  %v4273_v3 = vunpack.i.l.bf16 %v4272_v25 }
 0x79e   : > { %v2878_v15 = vsel %vm2877_vm1, %v2873_v61, %v4268_v57  ;;  %v2879_v9 = vsel %vm2877_vm1, %v2874_v11, %v4269_v41 }
 0x79f   : > { %v2882_v37 = vpack.c.bf16 %v2879_v9, %v2878_v15 }
 0x7a1   : > { %2960 = vmatmul.bf16.vlgmr.msra.gmra.mxu1 %v2882_v37 }
 0x7a6   : > { %v2578_v30 = vpop.f32.mrf.mxu1 }
 0x7a7   : > { %v2870_v51 = vsel %vm1933_vm6, %v2578_v30, %v4273_v3 }
 0x7a9   : > { %v4277_v2 = vpop.permute.xlu0 %4276 }
 0x7aa   : > { %v4278_v44 = vunpack.i.l.bf16 %v4277_v2  ;;  %v4279_v24 = vunpack.i.h.bf16 %v4277_v2 }
 0x7ac   : > { %v2875_v40 = vsel %vm2872_vm0, %v2870_v51, %v4278_v44 }
 0x7ae   : > { %v2580_v20 = vpop.f32.mrf.mxu1 }
 0x7af   : > { %v2871_v32 = vsel %vm1933_vm6, %v2580_v20, %v4274_v53 }
 0x7b0   : > { %v2876_v4 = vsel %vm2872_vm0, %v2871_v32, %v4279_v24 }
 0x7b9   : > { %v4282_v27 = vpop.permute.xlu1 %4281 }
 0x7ba   : > { %v4284_v58 = vunpack.i.h.bf16 %v4282_v27  ;;  %v4283_v52 = vunpack.i.l.bf16 %v4282_v27 }
 0x7bc   : > { %v2880_v45 = vsel %vm2877_vm1, %v2875_v40, %v4283_v52  ;;  %v2881_v49 = vsel %vm2877_vm1, %v2876_v4, %v4284_v58 }
 0x7bd   : > { %v2883_v55 = vpack.c.bf16 %v2881_v49, %v2880_v45 }
 0x7bf   : > { %2965 = vmatmul.bf16.gmra.mxu1 %v2883_v55 }
 0x81e   : > { %v2961_v50 = vpop.f32.mrf.mxu1 }
 0x81f   : > { %v2962_v7 = vadd.f32 %v4285_v26, %v2961_v50 }
 0x826   : > { %v2963_v31 = vpop.f32.mrf.mxu1 }
 0x827   : > { %v2964_v19 = vadd.f32 %v4285_v26, %v2963_v31 }
 0x829   : > { %v2971_v8 = vpack.c.bf16 %v2964_v19, %v2962_v7 }
 0x82b   : > { %3049 = vmatmul.bf16.vlgmr.msra.gmra.mxu2 %v2971_v8 }
 0x83c   : > { %v2966_v13 = vpop.f32.mrf.mxu1 }
 0x83d   : > { %v2967_v12 = vadd.f32 %v4285_v26, %v2966_v13 }
 0x844   : > { %v2968_v47 = vpop.f32.mrf.mxu1 }
 0x845   : > { %v2969_v16 = vadd.f32 %v4285_v26, %v2968_v47 }
 0x847   : > { %v2972_v34 = vpack.c.bf16 %v2969_v16, %v2967_v12 }
 0x849   : > { %3054 = vmatmul.bf16.gmra.mxu2 %v2972_v34 }
 0x8ae   : > { %v3050_v38 = vpop.f32.mrf.mxu2 }
 0x8af   : > { %v3051_v6 = vadd.f32 %v4286_v33, %v3050_v38 }
 0x8b1   : > { %v3060_v36 = vadd.f32 %v4361_v62, %v3051_v6 }
 0x8b3   : > { %3064 = vst [vmem:[%s4887_s22] sm:$0xff] %v3060_v36 }
 0x8b6   : > { %v3052_v14 = vpop.f32.mrf.mxu2 }
 0x8b7   : > { %v3053_v0 = vadd.f32 %v4286_v33, %v3052_v14 }
 0x8b9   : > { %v3061_v28 = vadd.f32 %v4362_v22, %v3053_v0 }
 0x8bb   : > { %3065 = vst [vmem:[%s4887_s22 + $0x8] sm:$0xff] %v3061_v28 }
 0x8cc   : > { %v3055_v5 = vpop.f32.mrf.mxu2 }
 0x8cd   : > { %v3056_v29 = vadd.f32 %v4286_v33, %v3055_v5 }
 0x8cf   : > { %v3062_v56 = vadd.f32 %v4363_v46, %v3056_v29 }
 0x8d1   : > { %3066 = vst [vmem:[%s4887_s22 + $0x10] sm:$0xff] %v3062_v56 }
 0x8d4   : > { %v3057_v1 = vpop.f32.mrf.mxu2 }
 0x8d5   : > { %v3058_v21 = vadd.f32 %v4286_v33, %v3057_v1 }
 0x8d7   : > { %v3063_v43 = vadd.f32 %v4364_v54, %v3058_v21 }
 0x8d9   : > { %3067 = vst [vmem:[%s4887_s22 + $0x18] sm:$0xff] %v3063_v43 }
 0x8da   : > { %4542 = shalt.err (!%p4539_p7)
}
 0x8db   : > { %s4665_s3 = smov 128   ;;  %s4666_s22 = smov 8  }
 0x8dc   : > { %3810 = dma.vmem_to_hbm [thread:$0]  (%p4782_p6), %s3084_s24, 512, %s3086_s20, %s3069_s11, %s4665_s3, %s4665_s3, %s4666_s22  }
 0x8dd PF: > { %s5901_s30 = sld [smem:[#allocation18_spill]]  ;;  %p3842_p8 = scmp.ge.s32.totalorder %s4645_s15, 2 }
 0x8df   : > { %p3830_p9 = pnand %p3842_p8, %p4788_p10 }
 0x8e1   : > { %p3831_p12 = pneg %p3830_p9 }
 0x8e3   : > { %s3100_s18 = sand.u32 1, %s5901_s30  }
 0x8e4   : > { %s3101_s21 = scalar_lea.sflag [#allocation6], %s3100_s18 }
 0x8e5   : > { %4600 = dma.done.wait (%p3831_p12), %s3101_s21, 512  }
 0x8e6   : > { %4602 = vsyncadd (%p3831_p12), %s3101_s21, 4294966784  ;;  %s26_s15 = sadd.s32 1, %s4645_s15   ;;  %s5903_s11 = sld [smem:[#allocation20_spill]] }
 0x8e7   : > { %p23_p13 = scmp.ge.s32.totalorder %s26_s15, 10   ;;  %s5904_s13 = sld [smem:[#allocation23_spill]] }
 0x8e8   : > { %s5905_s16 = sld [smem:[#allocation24_spill]]  ;;  %s5906_s27 = smov %s4609_s28 }
 0x8e9   : > { %s5907_s28 = smov %s4613_s29  ;;  %s5908_s29 = smov %s4851_s26 }
 0x8ea   : > { %s5909_s30 = smov %s4621_s9  ;;  %s5910_s9 = smov %s4625_s10 }
 0x8eb   : > { %s5911_s10 = smov %s4848_s23  ;;  %s5912_s12 = smov %s4641_s14 }
 0x8ec   :  { %25 = sbr.rel (!%p23_p13) target bundleno = 18 (0x12), region = 118 }
 0x8ee   : > { %s5913_s14 = smov %s5905_s16 }
 0x8f1   :  { %3107 = vsyncpa [#allocation5], 1 }
 0x8f2   :  { %3109 = vsyncpa [#allocation5 + $0x1], 1 }
 0x8f3   :  { %3110 = vsyncpa [#allocation8], 1 }
 0x8f4   :  { %3111 = vsyncpa [#allocation11], 1 }
 0x8f5   :  { %3112 = vsyncpa [#allocation6], 1 }
 0x8f6   :  { %3114 = vsyncpa [#allocation6 + $0x1], 1 }

</bundles_post_ra>
